<compile_context>
chip_gen: v6e
topology: v6e:2x2x1
jax: 0.10.0
libtpu: 0.0.40
codegen_flags: <defaults>
</compile_context>

<pallas_src>
import functools
import math

import jax
import jax.numpy as jnp
from jax.experimental import pallas as pl
from jax.experimental.pallas import tpu as pltpu

# ---------------------------------------------------------------------------
# config (stand-ins for cfg.*)
# ---------------------------------------------------------------------------
POOLING_SIZE = 7
FEAT_STRIDE = 16
DOUT_BASE = 32              # dout_base_model
RPN_HIDDEN = 64             # RPN_Conv output channels (512 in the real model)
ANCHOR_SCALES = (1.0, 2.0, 4.0)
ANCHOR_RATIOS = (0.5, 1.0, 2.0)
NUM_ANCHORS = len(ANCHOR_SCALES) * len(ANCHOR_RATIOS)
HEAD_HIDDEN = 64            # _head_to_tail output dim (4096 in VGG16)
CLASSES = ("__background__", "car", "person", "bike", "dog")
N_CLASSES = len(CLASSES)
ROIS_PER_IMAGE = 8
RPN_HEAD_PAD = 128          # lane-dense output width of the fused RPN head


def _round_up(x, m):
    return ((x + m - 1) // m) * m


# ---------------------------------------------------------------------------
# generic tiled linear:  o = act(x @ w + b)
#   grid = (M-blocks ["parallel" -> megacore on v7x], K-blocks ["arbitrary"])
#   bf16 MXU inputs, f32 VMEM accumulator, epilogue in f32.
# TODO(synk): for real model dims (fc1 25088x4096) also raise
#             vmem_limit_bytes / use pl.Buffered(3) on the streamed x spec.
# ---------------------------------------------------------------------------
def _linear_kernel(x_ref, w_ref, b_ref, o_ref, acc_ref, *, act):
    @pl.when(pl.program_id(1) == 0)
    def _():
        acc_ref[...] = jnp.zeros_like(acc_ref)

    acc_ref[...] += jnp.dot(x_ref[...], w_ref[...],
                            preferred_element_type=jnp.float32)

    @pl.when(pl.program_id(1) == pl.num_programs(1) - 1)
    def _():
        y = acc_ref[...] + b_ref[...]
        if act == "relu":
            y = jnp.maximum(y, 0.0)
        o_ref[...] = y.astype(o_ref.dtype)


def pallas_linear(x, w, b, act="none", out_dtype=jnp.float32,
                  tm_target=256, tk_target=512):
    M, K = x.shape
    Kw, N = w.shape
    assert K == Kw
    x = x.astype(jnp.bfloat16)
    w = w.astype(jnp.bfloat16)
    b2 = b.reshape(1, N).astype(jnp.float32)

    tm = min(tm_target, _round_up(M, 8))
    Mp = _round_up(M, tm)
    if Mp != M:
        x = jnp.pad(x, ((0, Mp - M), (0, 0)))
    tk = tk_target if (K > tk_target and K % tk_target == 0) else K
    nm, nk = Mp // tm, K // tk

    out = pl.pallas_call(
        functools.partial(_linear_kernel, act=act),
        out_shape=jax.ShapeDtypeStruct((Mp, N), out_dtype),
        grid=(nm, nk),
        in_specs=[
            pl.BlockSpec((tm, tk), lambda i, k: (i, k)),
            pl.BlockSpec((tk, N), lambda i, k: (k, 0)),
            pl.BlockSpec((1, N), lambda i, k: (0, 0)),
        ],
        out_specs=pl.BlockSpec((tm, N), lambda i, k: (i, 0)),
        scratch_shapes=[pltpu.VMEM((tm, N), jnp.float32)],
        compiler_params=pltpu.CompilerParams(
            dimension_semantics=("parallel", "arbitrary")),
    )(x, w, b2)
    return out[:M]


# ---------------------------------------------------------------------------
# fused RPN: 3x3-conv hidden + (cls | bbox) heads in one kernel.
# Head weights are concatenated and zero-padded to 128 lanes -> lane-dense
# unmasked stores; the wrapper slices the valid 2A + 4A columns back out.
# ---------------------------------------------------------------------------
def _rpn_head_kernel(cols_ref, wc_ref, bc_ref, wh_ref, bh_ref, o_ref):
    h = jnp.dot(cols_ref[...], wc_ref[...], preferred_element_type=jnp.float32)
    h = jnp.maximum(h + bc_ref[...], 0.0)
    y = jnp.dot(h.astype(jnp.bfloat16), wh_ref[...],
                preferred_element_type=jnp.float32)
    o_ref[...] = y + bh_ref[...]


def pallas_rpn_head(cols, conv_w, conv_b, heads_w, heads_b, tm_target=256):
    M, K = cols.shape
    Hd = conv_w.shape[1]
    Np = heads_w.shape[1]
    cols = cols.astype(jnp.bfloat16)
    conv_w = conv_w.astype(jnp.bfloat16)
    heads_w = heads_w.astype(jnp.bfloat16)
    bc = conv_b.reshape(1, Hd).astype(jnp.float32)
    bh = heads_b.reshape(1, Np).astype(jnp.float32)

    tm = min(tm_target, _round_up(M, 8))
    Mp = _round_up(M, tm)
    if Mp != M:
        cols = jnp.pad(cols, ((0, Mp - M), (0, 0)))
    nm = Mp // tm

    out = pl.pallas_call(
        _rpn_head_kernel,
        out_shape=jax.ShapeDtypeStruct((Mp, Np), jnp.float32),
        grid=(nm,),
        in_specs=[
            pl.BlockSpec((tm, K), lambda i: (i, 0)),
            pl.BlockSpec((K, Hd), lambda i: (0, 0)),
            pl.BlockSpec((1, Hd), lambda i: (0, 0)),
            pl.BlockSpec((Hd, Np), lambda i: (0, 0)),
            pl.BlockSpec((1, Np), lambda i: (0, 0)),
        ],
        out_specs=pl.BlockSpec((tm, Np), lambda i: (i, 0)),
        compiler_params=pltpu.CompilerParams(
            dimension_semantics=("parallel",)),
    )(cols, conv_w, bc, heads_w, bh)
    return out[:M]


# ---------------------------------------------------------------------------
# fused netD_pixel: three 1x1 convs + sigmoid + per-RoI spatial mean.
# The mean over the 7x7=49 positions of each RoI is done with a constant
# block-diagonal averaging matrix so no in-kernel reshapes are needed.
# ---------------------------------------------------------------------------
def _netd_kernel(px_ref, avg_ref, w1_ref, b1_ref, w2_ref, b2_ref,
                 w3_ref, b3_ref, dmap_ref, dscore_ref):
    h = jnp.dot(px_ref[...], w1_ref[...], preferred_element_type=jnp.float32)
    h = jnp.maximum(h + b1_ref[...], 0.0).astype(jnp.bfloat16)
    h = jnp.dot(h, w2_ref[...], preferred_element_type=jnp.float32)
    h = jnp.maximum(h + b2_ref[...], 0.0).astype(jnp.bfloat16)
    logit = jnp.dot(h, w3_ref[...], preferred_element_type=jnp.float32)
    logit = logit + b3_ref[...]
    # sigmoid = rcp(1 + exp(-x)): exp + reciprocal both live on the EUP slot.
    d = pl.reciprocal(1.0 + jnp.exp(-logit), approx=True)
    dmap_ref[...] = d
    dscore_ref[...] = jnp.dot(avg_ref[...], d,
                              preferred_element_type=jnp.float32)


def pallas_netd_pixel(px, w1, b1, w2, b2, w3, b3, rois_per_block=8):
    Mpx, C = px.shape
    P2 = POOLING_SIZE * POOLING_SIZE
    R = Mpx // P2
    tr = min(rois_per_block, R)
    assert R % tr == 0
    trk = tr * P2
    nblk = R // tr
    avg = jnp.kron(jnp.eye(tr, dtype=jnp.float32),
                   jnp.full((1, P2), 1.0 / P2, jnp.float32))       # (tr, tr*P2)

    px = px.astype(jnp.bfloat16)
    w1 = w1.astype(jnp.bfloat16)
    w2 = w2.astype(jnp.bfloat16)
    w3 = w3.astype(jnp.bfloat16)
    b1 = b1.reshape(1, -1).astype(jnp.float32)
    b2 = b2.reshape(1, -1).astype(jnp.float32)
    b3 = b3.reshape(1, -1).astype(jnp.float32)
    C1, C2 = w1.shape[1], w2.shape[1]

    d_map, d_score = pl.pallas_call(
        _netd_kernel,
        out_shape=(jax.ShapeDtypeStruct((Mpx, 1), jnp.float32),
                   jax.ShapeDtypeStruct((R, 1), jnp.float32)),
        grid=(nblk,),
        in_specs=[
            pl.BlockSpec((trk, C), lambda i: (i, 0)),
            pl.BlockSpec((tr, trk), lambda i: (0, 0)),
            pl.BlockSpec((C, C1), lambda i: (0, 0)),
            pl.BlockSpec((1, C1), lambda i: (0, 0)),
            pl.BlockSpec((C1, C2), lambda i: (0, 0)),
            pl.BlockSpec((1, C2), lambda i: (0, 0)),
            pl.BlockSpec((C2, 1), lambda i: (0, 0)),
            pl.BlockSpec((1, 1), lambda i: (0, 0)),
        ],
        out_specs=(pl.BlockSpec((trk, 1), lambda i: (i, 0)),
                   pl.BlockSpec((tr, 1), lambda i: (i, 0))),
        compiler_params=pltpu.CompilerParams(
            dimension_semantics=("parallel",)),
    )(px, avg, w1, b1, w2, b2, w3, b3)
    return d_map, d_score


# ---------------------------------------------------------------------------
# fused RCNN head: _head_to_tail fc1 -> fc2 -> {cls_score, bbox_pred} ->
# softmax(cls) in one kernel; the two head matmuls share the fc2 activation.
# ---------------------------------------------------------------------------
def _rcnn_head_kernel(flat_ref, w1_ref, b1_ref, w2_ref, b2_ref,
                      wc_ref, bc_ref, wb_ref, bb_ref, cls_ref, bbox_ref):
    h = jnp.dot(flat_ref[...], w1_ref[...], preferred_element_type=jnp.float32)
    h = jnp.maximum(h + b1_ref[...], 0.0).astype(jnp.bfloat16)
    h = jnp.dot(h, w2_ref[...], preferred_element_type=jnp.float32)
    h = jnp.maximum(h + b2_ref[...], 0.0).astype(jnp.bfloat16)
    cls_s = jnp.dot(h, wc_ref[...], preferred_element_type=jnp.float32)
    cls_s = cls_s + bc_ref[...]
    bbox_ref[...] = (jnp.dot(h, wb_ref[...],
                             preferred_element_type=jnp.float32) + bb_ref[...])
    m = jnp.max(cls_s, axis=-1, keepdims=True)
    e = jnp.exp(cls_s - m)
    cls_ref[...] = e * pl.reciprocal(jnp.sum(e, axis=-1, keepdims=True),
                                     approx=True)


def pallas_rcnn_head(flat, w1, b1, w2, b2, wc, bc, wb, bb, rois_per_block=8):
    R, K = flat.shape
    tr = min(rois_per_block, R)
    assert R % tr == 0
    nblk = R // tr

    flat = flat.astype(jnp.bfloat16)
    w1 = w1.astype(jnp.bfloat16)
    w2 = w2.astype(jnp.bfloat16)
    wc = wc.astype(jnp.bfloat16)
    wb = wb.astype(jnp.bfloat16)
    b1 = b1.reshape(1, -1).astype(jnp.float32)
    b2 = b2.reshape(1, -1).astype(jnp.float32)
    bc = bc.reshape(1, -1).astype(jnp.float32)
    bb = bb.reshape(1, -1).astype(jnp.float32)
    H1, H2 = w1.shape[1], w2.shape[1]
    NC, NB = wc.shape[1], wb.shape[1]

    cls_prob, bbox_pred = pl.pallas_call(
        _rcnn_head_kernel,
        out_shape=(jax.ShapeDtypeStruct((R, NC), jnp.float32),
                   jax.ShapeDtypeStruct((R, NB), jnp.float32)),
        grid=(nblk,),
        in_specs=[
            pl.BlockSpec((tr, K), lambda i: (i, 0)),
            pl.BlockSpec((K, H1), lambda i: (0, 0)),
            pl.BlockSpec((1, H1), lambda i: (0, 0)),
            pl.BlockSpec((H1, H2), lambda i: (0, 0)),
            pl.BlockSpec((1, H2), lambda i: (0, 0)),
            pl.BlockSpec((H2, NC), lambda i: (0, 0)),
            pl.BlockSpec((1, NC), lambda i: (0, 0)),
            pl.BlockSpec((H2, NB), lambda i: (0, 0)),
            pl.BlockSpec((1, NB), lambda i: (0, 0)),
        ],
        out_specs=(pl.BlockSpec((tr, NC), lambda i: (i, 0)),
                   pl.BlockSpec((tr, NB), lambda i: (i, 0))),
        compiler_params=pltpu.CompilerParams(
            dimension_semantics=("parallel",)),
    )(flat, w1, b1, w2, b2, wc, bc, wb, bb)
    return cls_prob, bbox_pred


# ---------------------------------------------------------------------------
# plain-JAX glue
# ---------------------------------------------------------------------------
def im2col_3x3_pad1(feat):
    """feat: (B,H,W,C) -> (B*H*W, 9*C) patches for a 3x3 / pad=1 conv."""
    # TODO(synk): replace this HBM-materialized im2col (9x traffic at real
    #             C=512) with an in-kernel halo-DMA 3x3 conv.
    B, H, W, C = feat.shape
    fp = jnp.pad(feat, ((0, 0), (1, 1), (1, 1), (0, 0)))
    cols = []
    for dy in range(3):
        for dx in range(3):
            cols.append(fp[:, dy:dy + H, dx:dx + W, :])
    patches = jnp.concatenate(cols, axis=-1)                    # (B,H,W,9C)
    return patches.reshape(B * H * W, 9 * C)


def patch_embed_cols(im_nhwc, patch):
    """Non-overlapping patch im2col: (B,H,W,C)->(B*Hf*Wf, patch*patch*C)."""
    B, H, W, C = im_nhwc.shape
    Hf, Wf = H // patch, W // patch
    x = im_nhwc.reshape(B, Hf, patch, Wf, patch, C)
    x = x.transpose(0, 1, 3, 2, 4, 5).reshape(B * Hf * Wf, patch * patch * C)
    return x, (B, Hf, Wf)


def make_anchors(Hf, Wf, stride=FEAT_STRIDE):
    ys = (jnp.arange(Hf, dtype=jnp.float32) + 0.5) * stride
    xs = (jnp.arange(Wf, dtype=jnp.float32) + 0.5) * stride
    cy, cx = jnp.meshgrid(ys, xs, indexing="ij")
    whs = []
    for r in ANCHOR_RATIOS:
        for s in ANCHOR_SCALES:
            whs.append((stride * s * math.sqrt(1.0 / r),
                        stride * s * math.sqrt(r)))
    aw = jnp.asarray([w for w, _ in whs], jnp.float32)          # (A,)
    ah = jnp.asarray([h for _, h in whs], jnp.float32)
    cx = cx[..., None]
    cy = cy[..., None]
    anchors = jnp.stack([cx - aw / 2, cy - ah / 2, cx + aw / 2, cy + ah / 2],
                        axis=-1)                                # (Hf,Wf,A,4)
    return anchors.reshape(Hf * Wf, NUM_ANCHORS, 4)


def proposal_layer(rpn_head, B, Hf, Wf, im_info, rois_per_image=ROIS_PER_IMAGE):
    """Simplified RPN proposal layer: anchor decode + per-image top-k.

    TODO(synk): NMS of the reference proposal layer is not implemented.
    """
    A = NUM_ANCHORS
    cls = rpn_head[:, :2 * A].reshape(B, Hf * Wf, A, 2)
    deltas = rpn_head[:, 2 * A:6 * A].reshape(B, Hf * Wf, A, 4)
    score = (cls[..., 1] - cls[..., 0]).reshape(B, Hf * Wf * A)  # monotone in fg prob

    anchors = make_anchors(Hf, Wf)                               # (Hf*Wf, A, 4)
    aw = anchors[..., 2] - anchors[..., 0]
    ah = anchors[..., 3] - anchors[..., 1]
    acx = anchors[..., 0] + 0.5 * aw
    acy = anchors[..., 1] + 0.5 * ah
    dx, dy, dw, dh = (deltas[..., 0], deltas[..., 1],
                      deltas[..., 2], deltas[..., 3])
    pcx = acx[None] + dx * aw[None]
    pcy = acy[None] + dy * ah[None]
    pw = jnp.exp(jnp.clip(dw, -4.0, 4.0)) * aw[None]
    ph = jnp.exp(jnp.clip(dh, -4.0, 4.0)) * ah[None]
    im_h = im_info[:, 0][:, None, None]
    im_w = im_info[:, 1][:, None, None]
    x1 = jnp.clip(pcx - 0.5 * pw, 0.0, im_w - 1.0)
    y1 = jnp.clip(pcy - 0.5 * ph, 0.0, im_h - 1.0)
    x2 = jnp.clip(pcx + 0.5 * pw, 0.0, im_w - 1.0)
    y2 = jnp.clip(pcy + 0.5 * ph, 0.0, im_h - 1.0)
    boxes = jnp.stack([x1, y1, x2, y2], axis=-1).reshape(B, Hf * Wf * A, 4)

    _, top_idx = jax.lax.top_k(score, rois_per_image)            # (B, R)
    sel = jnp.take_along_axis(boxes, top_idx[..., None], axis=1)  # (B, R, 4)
    bidx = jnp.broadcast_to(
        jnp.arange(B, dtype=jnp.float32)[:, None, None],
        (B, rois_per_image, 1))
    return jnp.concatenate([bidx, sel], axis=-1)                  # (B, R, 5)


def roi_align_avg(base_feat, rois_flat, pooled=POOLING_SIZE,
                  spatial_scale=1.0 / FEAT_STRIDE):
    """Bilinear RoIAlign (sampling_ratio=1 approximation of RoIAlignAvg)."""
    # TODO(synk): move the bilinear gather into a PrefetchScalarGridSpec
    #             Pallas kernel; it stays in XLA here.
    B, Hf, Wf, C = base_feat.shape

    def one(roi):
        b = roi[0].astype(jnp.int32)
        x1, y1, x2, y2 = (roi[1] * spatial_scale, roi[2] * spatial_scale,
                          roi[3] * spatial_scale, roi[4] * spatial_scale)
        ys = y1 + (jnp.arange(pooled, dtype=jnp.float32) + 0.5) * (y2 - y1) / pooled
        xs = x1 + (jnp.arange(pooled, dtype=jnp.float32) + 0.5) * (x2 - x1) / pooled
        yy, xx = jnp.meshgrid(ys, xs, indexing="ij")
        yy = jnp.clip(yy, 0.0, Hf - 1.0)
        xx = jnp.clip(xx, 0.0, Wf - 1.0)
        y0 = jnp.floor(yy).astype(jnp.int32)
        x0 = jnp.floor(xx).astype(jnp.int32)
        y1i = jnp.minimum(y0 + 1, Hf - 1)
        x1i = jnp.minimum(x0 + 1, Wf - 1)
        ly = (yy - y0.astype(jnp.float32))[..., None]
        lx = (xx - x0.astype(jnp.float32))[..., None]
        fm = jnp.take(base_feat, b, axis=0)                      # (Hf,Wf,C)
        v00 = fm[y0, x0]
        v01 = fm[y0, x1i]
        v10 = fm[y1i, x0]
        v11 = fm[y1i, x1i]
        return (v00 * (1 - ly) * (1 - lx) + v01 * (1 - ly) * lx
                + v10 * ly * (1 - lx) + v11 * ly * lx)

    return jax.vmap(one)(rois_flat)


# ---------------------------------------------------------------------------
# parameter construction (deterministic, mirrors _init_weights)
# ---------------------------------------------------------------------------
def init_params(key):
    ks = jax.random.split(key, 16)
    n = lambda k, shape, std: std * jax.random.normal(k, shape, jnp.float32)
    z = lambda shape: jnp.zeros(shape, jnp.float32)
    p = {}
    # RCNN_base: single stride-16 "patch conv" backbone (3*16*16 -> DOUT_BASE)
    p["base_w"] = n(ks[0], (3 * FEAT_STRIDE * FEAT_STRIDE, DOUT_BASE), 0.01)
    p["base_b"] = z((DOUT_BASE,))
    # RPN: 3x3 conv + 1x1 cls + 1x1 bbox heads
    p["rpn_conv_w"] = n(ks[1], (9 * DOUT_BASE, RPN_HIDDEN), 0.01)
    p["rpn_conv_b"] = z((RPN_HIDDEN,))
    p["rpn_cls_w"] = n(ks[2], (RPN_HIDDEN, 2 * NUM_ANCHORS), 0.01)
    p["rpn_cls_b"] = z((2 * NUM_ANCHORS,))
    p["rpn_bbox_w"] = n(ks[3], (RPN_HIDDEN, 4 * NUM_ANCHORS), 0.01)
    p["rpn_bbox_b"] = z((4 * NUM_ANCHORS,))
    # netD_pixel: three 1x1 convs
    p["d1_w"] = n(ks[4], (DOUT_BASE, 16), 0.01)
    p["d1_b"] = z((16,))
    p["d2_w"] = n(ks[5], (16, 16), 0.01)
    p["d2_b"] = z((16,))
    p["d3_w"] = n(ks[6], (16, 1), 0.01)
    p["d3_b"] = z((1,))
    # _head_to_tail: two FC layers
    p["fc1_w"] = n(ks[7], (DOUT_BASE * POOLING_SIZE * POOLING_SIZE, HEAD_HIDDEN), 0.01)
    p["fc1_b"] = z((HEAD_HIDDEN,))
    p["fc2_w"] = n(ks[8], (HEAD_HIDDEN, HEAD_HIDDEN), 0.01)
    p["fc2_b"] = z((HEAD_HIDDEN,))
    # RCNN_cls_score / RCNN_bbox_pred (class-specific, not class_agnostic)
    p["cls_w"] = n(ks[9], (HEAD_HIDDEN, N_CLASSES), 0.01)
    p["cls_b"] = z((N_CLASSES,))
    p["bbox_w"] = n(ks[10], (HEAD_HIDDEN, 4 * N_CLASSES), 0.001)
    p["bbox_b"] = z((4 * N_CLASSES,))
    return p


# ---------------------------------------------------------------------------
# forward pass (eval mode, target=False, context=False, class_agnostic=False)
# ---------------------------------------------------------------------------
def faster_rcnn_forward(params, im_data_nchw, im_info, gt_boxes, num_boxes):
    B, C, H, W = im_data_nchw.shape
    im = jnp.transpose(im_data_nchw, (0, 2, 3, 1)).astype(jnp.bfloat16)  # NHWC bf16

    # ---- RCNN_base: stride-16 patch conv as an M-tiled pipelined matmul ----
    # TODO(synk): fold the patch im2col into the kernel's BlockSpec/index_map
    #             to avoid one extra HBM round trip of the image.
    cols, (_, Hf, Wf) = patch_embed_cols(im, FEAT_STRIDE)
    base_flat = pallas_linear(cols, params["base_w"], params["base_b"],
                              act="relu", out_dtype=jnp.bfloat16)
    base_feat = base_flat.reshape(B, Hf, Wf, DOUT_BASE)

    # ---- RCNN_rpn: fused conv + cls/bbox heads, then simplified proposals ----
    rpn_cols = im2col_3x3_pad1(base_feat)                    # bf16, (B*Hf*Wf, 9C)
    heads_w = jnp.concatenate([params["rpn_cls_w"], params["rpn_bbox_w"]], axis=1)
    heads_b = jnp.concatenate([params["rpn_cls_b"], params["rpn_bbox_b"]], axis=0)
    pad = RPN_HEAD_PAD - heads_w.shape[1]
    heads_w = jnp.pad(heads_w, ((0, 0), (0, pad)))
    heads_b = jnp.pad(heads_b, ((0, pad),))
    rpn_head = pallas_rpn_head(rpn_cols, params["rpn_conv_w"],
                               params["rpn_conv_b"], heads_w, heads_b)
    rois = proposal_layer(rpn_head, B, Hf, Wf, im_info)      # (B,R,5)
    rpn_loss_cls = jnp.float32(0.0)
    rpn_loss_bbox = jnp.float32(0.0)

    # ---- RoIAlignAvg (POOLING_MODE == 'align') ----
    rois_flat = rois.reshape(-1, 5)
    pooled_feat = roi_align_avg(base_feat, rois_flat)        # (R,7,7,C) f32
    R = pooled_feat.shape[0]
    P2 = POOLING_SIZE * POOLING_SIZE

    # ---- netD_pixel fused: d1->d2->d3->sigmoid->per-RoI mean (one kernel) ----
    px = pooled_feat.reshape(R * P2, DOUT_BASE)
    d_map, d_score = pallas_netd_pixel(px, params["d1_w"], params["d1_b"],
                                       params["d2_w"], params["d2_b"],
                                       params["d3_w"], params["d3_b"])
    d_map = d_map.reshape(R, POOLING_SIZE, POOLING_SIZE, 1)
    d_instance = d_map            # grad_reverse is identity in the forward pass
    d_score_total_qs = d_score.reshape(B, ROIS_PER_IMAGE)

    # ---- _head_to_tail + cls/bbox heads + softmax fused into one kernel ----
    flat = pooled_feat.reshape(R, P2 * DOUT_BASE)
    cls_prob, bbox_pred = pallas_rcnn_head(
        flat, params["fc1_w"], params["fc1_b"], params["fc2_w"], params["fc2_b"],
        params["cls_w"], params["cls_b"], params["bbox_w"], params["bbox_b"])

    cls_prob = cls_prob.reshape(B, ROIS_PER_IMAGE, -1)
    bbox_pred = bbox_pred.reshape(B, ROIS_PER_IMAGE, -1)

    RCNN_loss_cls = jnp.float32(0.0)
    RCNN_loss_bbox = jnp.float32(0.0)
    rois_label = None
    lossQ = -1
    # TODO(synk): training-only proposal-target layer, S_agent/T_agent DQN
    #             selection loops, replay buffers and cls/bbox losses are not
    #             translated (no inference compute).
    return (rois, cls_prob, bbox_pred, rpn_loss_cls, rpn_loss_bbox,
            RCNN_loss_cls, RCNN_loss_bbox, rois_label, d_instance, lossQ,
            d_score_total_qs)


# ---------------------------------------------------------------------------
if __name__ == "__main__":
    key = jax.random.PRNGKey(0)
    pkey, dkey = jax.random.split(key)
    params = init_params(pkey)

    B, C, H, W = 2, 3, 64, 64
    im_data = jax.random.normal(dkey, (B, C, H, W), jnp.float32)   # NCHW input
    im_info = jnp.tile(jnp.array([[H, W, 1.0]], jnp.float32), (B, 1))
    gt_boxes = jnp.zeros((B, 5, 5), jnp.float32)
    num_boxes = jnp.zeros((B,), jnp.int32)

    fwd = jax.jit(faster_rcnn_forward)
    outs = fwd(params, im_data, im_info, gt_boxes, num_boxes)
    (rois, cls_prob, bbox_pred, _, _, _, _, _, d_instance, lossQ,
     d_score_qs) = outs
    jax.block_until_ready(cls_prob)
    jax.block_until_ready(bbox_pred)
    jax.block_until_ready(d_instance)

    assert rois.shape == (B, ROIS_PER_IMAGE, 5)
    assert cls_prob.shape == (B, ROIS_PER_IMAGE, N_CLASSES)
    assert bbox_pred.shape == (B, ROIS_PER_IMAGE, 4 * N_CLASSES)
    assert d_instance.shape == (B * ROIS_PER_IMAGE, POOLING_SIZE, POOLING_SIZE, 1)
    assert d_score_qs.shape == (B, ROIS_PER_IMAGE)
    assert bool(jnp.all(jnp.isfinite(cls_prob)))
    assert bool(jnp.all(jnp.isfinite(bbox_pred)))
    assert bool(jnp.all(jnp.isfinite(d_instance)))
    # approx-reciprocal softmax: probabilities sum to 1 within EUP rcp tolerance
    assert bool(jnp.allclose(jnp.sum(cls_prob, axis=-1), 1.0, atol=1e-2))
    print("KERNEL_OK")
</pallas_src>

<mosaic_0001>
module attributes {stable_mosaic.version = 11 : i64} {
  func.func @_linear_kernel(%arg0: i32, %arg1: i32, %arg2: memref<32x768xbf16, #tpu.memory_space<vmem>>, %arg3: memref<768x32xbf16, #tpu.memory_space<vmem>>, %arg4: memref<1x32xf32, #tpu.memory_space<vmem>>, %arg5: memref<32x32xbf16, #tpu.memory_space<vmem>>, %arg6: memref<32x32xf32, #tpu.memory_space<vmem>>) attributes {dimension_semantics = [#tpu.dimension_semantics<parallel>, #tpu.dimension_semantics<arbitrary>], iteration_bounds = array<i64: 1, 1>, scalar_prefetch = 0 : i64, scratch_operands = 1 : i64, tpu.core_type = #tpu.core_type<tc>, window_params = [{transform_indices = @transform_0, window_bounds = array<i64: 32, 768>}, {transform_indices = @transform_1, window_bounds = array<i64: 768, 32>}, {pipeline_mode = #tpu.pipeline_mode<synchronous>, transform_indices = @transform_2, window_bounds = array<i64: 1, 32>}, {transform_indices = @transform_3, window_bounds = array<i64: 32, 32>}]} {
    %c0_i32 = arith.constant 0 : i32
    %0 = arith.cmpi eq, %arg1, %c0_i32 : i32
    %1 = arith.extui %0 : i1 to i32
    %c0_i32_0 = arith.constant 0 : i32
    %2 = arith.cmpi ne, %1, %c0_i32_0 : i32
    scf.if %2 {
      %cst_10 = arith.constant 0.000000e+00 : f32
      %12 = vector.broadcast %cst_10 : f32 to vector<32x32xf32>
      %c0_11 = arith.constant 0 : index
      %c0_12 = arith.constant 0 : index
      %13 = vector.load %arg6[%c0_11, %c0_12] : memref<32x32xf32, #tpu.memory_space<vmem>>, vector<32x32xf32>
      tpu.vector_store %arg6[%c0_11, %c0_12], %12 {strides = array<i32>} : memref<32x32xf32, #tpu.memory_space<vmem>>, vector<32x32xf32>,
    } else {
    }
    %c0 = arith.constant 0 : index
    %c0_1 = arith.constant 0 : index
    %3 = vector.load %arg6[%c0, %c0_1] : memref<32x32xf32, #tpu.memory_space<vmem>>, vector<32x32xf32>
    %c0_2 = arith.constant 0 : index
    %c0_3 = arith.constant 0 : index
    %4 = vector.load %arg2[%c0_2, %c0_3] : memref<32x768xbf16, #tpu.memory_space<vmem>>, vector<32x768xbf16>
    %c0_4 = arith.constant 0 : index
    %c0_5 = arith.constant 0 : index
    %5 = vector.load %arg3[%c0_4, %c0_5] : memref<768x32xbf16, #tpu.memory_space<vmem>>, vector<768x32xbf16>
    %cst = arith.constant dense<0.000000e+00> : vector<32x32xf32>
    %6 = tpu.matmul %4, %5, %cst {dimension_numbers = #tpu.dot_dimension_numbers<[1], [0], [0], [1], [0, 0, 1, 1], [], []>} : vector<32x768xbf16>, vector<768x32xbf16>, vector<32x32xf32> -> vector<32x32xf32>
    %7 = arith.addf %3, %6 : vector<32x32xf32>
    %c0_6 = arith.constant 0 : index
    %c0_7 = arith.constant 0 : index
    %8 = vector.load %arg6[%c0_6, %c0_7] : memref<32x32xf32, #tpu.memory_space<vmem>>, vector<32x32xf32>
    tpu.vector_store %arg6[%c0_6, %c0_7], %7 {strides = array<i32>} : memref<32x32xf32, #tpu.memory_space<vmem>>, vector<32x32xf32>,
    %c0_i32_8 = arith.constant 0 : i32
    %9 = arith.cmpi eq, %arg1, %c0_i32_8 : i32
    %10 = arith.extui %9 : i1 to i32
    %c0_i32_9 = arith.constant 0 : i32
    %11 = arith.cmpi ne, %10, %c0_i32_9 : i32
    scf.if %11 {
      %c0_10 = arith.constant 0 : index
      %c0_11 = arith.constant 0 : index
      %12 = vector.load %arg6[%c0_10, %c0_11] : memref<32x32xf32, #tpu.memory_space<vmem>>, vector<32x32xf32>
      %c0_12 = arith.constant 0 : index
      %c0_13 = arith.constant 0 : index
      %13 = vector.load %arg4[%c0_12, %c0_13] : memref<1x32xf32, #tpu.memory_space<vmem>>, vector<1x32xf32>
      %14 = vector.broadcast %13 : vector<1x32xf32> to vector<32x32xf32>
      %15 = arith.addf %12, %14 : vector<32x32xf32>
      %cst_14 = arith.constant 0.000000e+00 : f32
      %16 = vector.broadcast %cst_14 : f32 to vector<32x32xf32>
      %17 = arith.maximumf %15, %16 : vector<32x32xf32>
      %18 = arith.truncf %17 : vector<32x32xf32> to vector<32x32xbf16>
      %c0_15 = arith.constant 0 : index
      %c0_16 = arith.constant 0 : index
      %19 = vector.load %arg5[%c0_15, %c0_16] : memref<32x32xbf16, #tpu.memory_space<vmem>>, vector<32x32xbf16>
      tpu.vector_store %arg5[%c0_15, %c0_16], %18 {strides = array<i32>} : memref<32x32xbf16, #tpu.memory_space<vmem>>, vector<32x32xbf16>,
    } else {
    }
    return
  }
  func.func @transform_0(%arg0: i32, %arg1: i32) -> (i32, i32) {
    %c0_i32 = arith.constant 0 : i32
    return %arg0, %arg1 : i32, i32
  }
  func.func @transform_1(%arg0: i32, %arg1: i32) -> (i32, i32) {
    %c0_i32 = arith.constant 0 : i32
    %c0_i32_0 = arith.constant 0 : i32
    return %arg1, %c0_i32 : i32, i32
  }
  func.func @transform_2(%arg0: i32, %arg1: i32) -> (i32, i32) {
    %c0_i32 = arith.constant 0 : i32
    %c0_i32_0 = arith.constant 0 : i32
    %c0_i32_1 = arith.constant 0 : i32
    return %c0_i32, %c0_i32_0 : i32, i32
  }
  func.func @transform_3(%arg0: i32, %arg1: i32) -> (i32, i32) {
    %c0_i32 = arith.constant 0 : i32
    %c0_i32_0 = arith.constant 0 : i32
    return %arg0, %c0_i32 : i32, i32
  }
}

module attributes {stable_mosaic.version = 11 : i64} {
  func.func @_rpn_head_kernel(%arg0: i32, %arg1: memref<32x288xbf16, #tpu.memory_space<vmem>>, %arg2: memref<288x64xbf16, #tpu.memory_space<vmem>>, %arg3: memref<1x64xf32, #tpu.memory_space<vmem>>, %arg4: memref<64x128xbf16, #tpu.memory_space<vmem>>, %arg5: memref<1x128xf32, #tpu.memory_space<vmem>>, %arg6: memref<32x128xf32, #tpu.memory_space<vmem>>) attributes {dimension_semantics = [#tpu.dimension_semantics<parallel>], iteration_bounds = array<i64: 1>, scalar_prefetch = 0 : i64, scratch_operands = 0 : i64, tpu.core_type = #tpu.core_type<tc>, window_params = [{transform_indices = @transform_0, window_bounds = array<i64: 32, 288>}, {pipeline_mode = #tpu.pipeline_mode<synchronous>, transform_indices = @transform_1, window_bounds = array<i64: 288, 64>}, {pipeline_mode = #tpu.pipeline_mode<synchronous>, transform_indices = @transform_2, window_bounds = array<i64: 1, 64>}, {pipeline_mode = #tpu.pipeline_mode<synchronous>, transform_indices = @transform_3, window_bounds = array<i64: 64, 128>}, {pipeline_mode = #tpu.pipeline_mode<synchronous>, transform_indices = @transform_4, window_bounds = array<i64: 1, 128>}, {transform_indices = @transform_5, window_bounds = array<i64: 32, 128>}]} {
    %c0 = arith.constant 0 : index
    %c0_0 = arith.constant 0 : index
    %0 = vector.load %arg1[%c0, %c0_0] : memref<32x288xbf16, #tpu.memory_space<vmem>>, vector<32x288xbf16>
    %c0_1 = arith.constant 0 : index
    %c0_2 = arith.constant 0 : index
    %1 = vector.load %arg2[%c0_1, %c0_2] : memref<288x64xbf16, #tpu.memory_space<vmem>>, vector<288x64xbf16>
    %cst = arith.constant dense<0.000000e+00> : vector<32x64xf32>
    %2 = tpu.matmul %0, %1, %cst {dimension_numbers = #tpu.dot_dimension_numbers<[1], [0], [0], [1], [0, 0, 1, 1], [], []>} : vector<32x288xbf16>, vector<288x64xbf16>, vector<32x64xf32> -> vector<32x64xf32>
    %c0_3 = arith.constant 0 : index
    %c0_4 = arith.constant 0 : index
    %3 = vector.load %arg3[%c0_3, %c0_4] : memref<1x64xf32, #tpu.memory_space<vmem>>, vector<1x64xf32>
    %4 = vector.broadcast %3 : vector<1x64xf32> to vector<32x64xf32>
    %5 = arith.addf %2, %4 : vector<32x64xf32>
    %cst_5 = arith.constant 0.000000e+00 : f32
    %6 = vector.broadcast %cst_5 : f32 to vector<32x64xf32>
    %7 = arith.maximumf %5, %6 : vector<32x64xf32>
    %8 = arith.truncf %7 : vector<32x64xf32> to vector<32x64xbf16>
    %c0_6 = arith.constant 0 : index
    %c0_7 = arith.constant 0 : index
    %9 = vector.load %arg4[%c0_6, %c0_7] : memref<64x128xbf16, #tpu.memory_space<vmem>>, vector<64x128xbf16>
    %cst_8 = arith.constant dense<0.000000e+00> : vector<32x128xf32>
    %10 = tpu.matmul %8, %9, %cst_8 {dimension_numbers = #tpu.dot_dimension_numbers<[1], [0], [0], [1], [0, 0, 1, 1], [], []>} : vector<32x64xbf16>, vector<64x128xbf16>, vector<32x128xf32> -> vector<32x128xf32>
    %c0_9 = arith.constant 0 : index
    %c0_10 = arith.constant 0 : index
    %11 = vector.load %arg5[%c0_9, %c0_10] : memref<1x128xf32, #tpu.memory_space<vmem>>, vector<1x128xf32>
    %12 = vector.broadcast %11 : vector<1x128xf32> to vector<32x128xf32>
    %13 = arith.addf %10, %12 : vector<32x128xf32>
    %c0_11 = arith.constant 0 : index
    %c0_12 = arith.constant 0 : index
    %14 = vector.load %arg6[%c0_11, %c0_12] : memref<32x128xf32, #tpu.memory_space<vmem>>, vector<32x128xf32>
    tpu.vector_store %arg6[%c0_11, %c0_12], %13 {strides = array<i32>} : memref<32x128xf32, #tpu.memory_space<vmem>>, vector<32x128xf32>,
    return
  }
  func.func @transform_0(%arg0: i32) -> (i32, i32) {
    %c0_i32 = arith.constant 0 : i32
    %c0_i32_0 = arith.constant 0 : i32
    return %arg0, %c0_i32 : i32, i32
  }
  func.func @transform_1(%arg0: i32) -> (i32, i32) {
    %c0_i32 = arith.constant 0 : i32
    %c0_i32_0 = arith.constant 0 : i32
    %c0_i32_1 = arith.constant 0 : i32
    return %c0_i32, %c0_i32_0 : i32, i32
  }
  func.func @transform_2(%arg0: i32) -> (i32, i32) {
    %c0_i32 = arith.constant 0 : i32
    %c0_i32_0 = arith.constant 0 : i32
    %c0_i32_1 = arith.constant 0 : i32
    return %c0_i32, %c0_i32_0 : i32, i32
  }
  func.func @transform_3(%arg0: i32) -> (i32, i32) {
    %c0_i32 = arith.constant 0 : i32
    %c0_i32_0 = arith.constant 0 : i32
    %c0_i32_1 = arith.constant 0 : i32
    return %c0_i32, %c0_i32_0 : i32, i32
  }
  func.func @transform_4(%arg0: i32) -> (i32, i32) {
    %c0_i32 = arith.constant 0 : i32
    %c0_i32_0 = arith.constant 0 : i32
    %c0_i32_1 = arith.constant 0 : i32
    return %c0_i32, %c0_i32_0 : i32, i32
  }
  func.func @transform_5(%arg0: i32) -> (i32, i32) {
    %c0_i32 = arith.constant 0 : i32
    %c0_i32_0 = arith.constant 0 : i32
    return %arg0, %c0_i32 : i32, i32
  }
}

module attributes {stable_mosaic.version = 11 : i64} {
  func.func @_netd_kernel(%arg0: i32, %arg1: memref<392x32xbf16, #tpu.memory_space<vmem>>, %arg2: memref<8x392xf32, #tpu.memory_space<vmem>>, %arg3: memref<32x16xbf16, #tpu.memory_space<vmem>>, %arg4: memref<1x16xf32, #tpu.memory_space<vmem>>, %arg5: memref<16x16xbf16, #tpu.memory_space<vmem>>, %arg6: memref<1x16xf32, #tpu.memory_space<vmem>>, %arg7: memref<16x1xbf16, #tpu.memory_space<vmem>>, %arg8: memref<1x1xf32, #tpu.memory_space<vmem>>, %arg9: memref<392x1xf32, #tpu.memory_space<vmem>>, %arg10: memref<8x1xf32, #tpu.memory_space<vmem>>) attributes {dimension_semantics = [#tpu.dimension_semantics<parallel>], iteration_bounds = array<i64: 2>, scalar_prefetch = 0 : i64, scratch_operands = 0 : i64, tpu.core_type = #tpu.core_type<tc>, window_params = [{transform_indices = @transform_0, window_bounds = array<i64: 392, 32>}, {pipeline_mode = #tpu.pipeline_mode<synchronous>, transform_indices = @transform_1, window_bounds = array<i64: 8, 392>}, {pipeline_mode = #tpu.pipeline_mode<synchronous>, transform_indices = @transform_2, window_bounds = array<i64: 32, 16>}, {pipeline_mode = #tpu.pipeline_mode<synchronous>, transform_indices = @transform_3, window_bounds = array<i64: 1, 16>}, {pipeline_mode = #tpu.pipeline_mode<synchronous>, transform_indices = @transform_4, window_bounds = array<i64: 16, 16>}, {pipeline_mode = #tpu.pipeline_mode<synchronous>, transform_indices = @transform_5, window_bounds = array<i64: 1, 16>}, {pipeline_mode = #tpu.pipeline_mode<synchronous>, transform_indices = @transform_6, window_bounds = array<i64: 16, 1>}, {pipeline_mode = #tpu.pipeline_mode<synchronous>, transform_indices = @transform_7, window_bounds = array<i64: 1, 1>}, {transform_indices = @transform_8, window_bounds = array<i64: 392, 1>}, {transform_indices = @transform_9, window_bounds = array<i64: 8, 1>}]} {
    %c0 = arith.constant 0 : index
    %c0_0 = arith.constant 0 : index
    %0 = vector.load %arg1[%c0, %c0_0] : memref<392x32xbf16, #tpu.memory_space<vmem>>, vector<392x32xbf16>
    %c0_1 = arith.constant 0 : index
    %c0_2 = arith.constant 0 : index
    %1 = vector.load %arg3[%c0_1, %c0_2] : memref<32x16xbf16, #tpu.memory_space<vmem>>, vector<32x16xbf16>
    %cst = arith.constant dense<0.000000e+00> : vector<392x16xf32>
    %2 = tpu.matmul %0, %1, %cst {dimension_numbers = #tpu.dot_dimension_numbers<[1], [0], [0], [1], [0, 0, 1, 1], [], []>} : vector<392x32xbf16>, vector<32x16xbf16>, vector<392x16xf32> -> vector<392x16xf32>
    %c0_3 = arith.constant 0 : index
    %c0_4 = arith.constant 0 : index
    %3 = vector.load %arg4[%c0_3, %c0_4] : memref<1x16xf32, #tpu.memory_space<vmem>>, vector<1x16xf32>
    %4 = vector.broadcast %3 : vector<1x16xf32> to vector<392x16xf32>
    %5 = arith.addf %2, %4 : vector<392x16xf32>
    %cst_5 = arith.constant 0.000000e+00 : f32
    %6 = vector.broadcast %cst_5 : f32 to vector<392x16xf32>
    %7 = arith.maximumf %5, %6 : vector<392x16xf32>
    %8 = arith.truncf %7 : vector<392x16xf32> to vector<392x16xbf16>
    %c0_6 = arith.constant 0 : index
    %c0_7 = arith.constant 0 : index
    %9 = vector.load %arg5[%c0_6, %c0_7] : memref<16x16xbf16, #tpu.memory_space<vmem>>, vector<16x16xbf16>
    %cst_8 = arith.constant dense<0.000000e+00> : vector<392x16xf32>
    %10 = tpu.matmul %8, %9, %cst_8 {dimension_numbers = #tpu.dot_dimension_numbers<[1], [0], [0], [1], [0, 0, 1, 1], [], []>} : vector<392x16xbf16>, vector<16x16xbf16>, vector<392x16xf32> -> vector<392x16xf32>
    %c0_9 = arith.constant 0 : index
    %c0_10 = arith.constant 0 : index
    %11 = vector.load %arg6[%c0_9, %c0_10] : memref<1x16xf32, #tpu.memory_space<vmem>>, vector<1x16xf32>
    %12 = vector.broadcast %11 : vector<1x16xf32> to vector<392x16xf32>
    %13 = arith.addf %10, %12 : vector<392x16xf32>
    %cst_11 = arith.constant 0.000000e+00 : f32
    %14 = vector.broadcast %cst_11 : f32 to vector<392x16xf32>
    %15 = arith.maximumf %13, %14 : vector<392x16xf32>
    %16 = arith.truncf %15 : vector<392x16xf32> to vector<392x16xbf16>
    %c0_12 = arith.constant 0 : index
    %c0_13 = arith.constant 0 : index
    %17 = vector.load %arg7[%c0_12, %c0_13] : memref<16x1xbf16, #tpu.memory_space<vmem>>, vector<16x1xbf16>
    %cst_14 = arith.constant dense<0.000000e+00> : vector<392x1xf32>
    %18 = tpu.matmul %16, %17, %cst_14 {dimension_numbers = #tpu.dot_dimension_numbers<[1], [0], [0], [1], [0, 0, 1, 1], [], []>} : vector<392x16xbf16>, vector<16x1xbf16>, vector<392x1xf32> -> vector<392x1xf32>
    %c0_15 = arith.constant 0 : index
    %c0_16 = arith.constant 0 : index
    %19 = vector.load %arg8[%c0_15, %c0_16] : memref<1x1xf32, #tpu.memory_space<vmem>>, vector<1x1xf32>
    %20 = vector.broadcast %19 : vector<1x1xf32> to vector<392x1xf32>
    %21 = arith.addf %18, %20 : vector<392x1xf32>
    %cst_17 = arith.constant 0.000000e+00 : f32
    %22 = vector.broadcast %cst_17 : f32 to vector<392x1xf32>
    %23 = arith.subf %22, %21 : vector<392x1xf32>
    %24 = math.exp %23 : vector<392x1xf32>
    %cst_18 = arith.constant 1.000000e+00 : f32
    %25 = vector.broadcast %cst_18 : f32 to vector<392x1xf32>
    %26 = arith.addf %25, %24 : vector<392x1xf32>
    %27 = tpu.reciprocal %26 {approx = true} : vector<392x1xf32> -> vector<392x1xf32>
    %c0_19 = arith.constant 0 : index
    %c0_20 = arith.constant 0 : index
    %28 = vector.load %arg9[%c0_19, %c0_20] : memref<392x1xf32, #tpu.memory_space<vmem>>, vector<392x1xf32>
    tpu.vector_store %arg9[%c0_19, %c0_20], %27 {strides = array<i32>} : memref<392x1xf32, #tpu.memory_space<vmem>>, vector<392x1xf32>,
    %c0_21 = arith.constant 0 : index
    %c0_22 = arith.constant 0 : index
    %29 = vector.load %arg2[%c0_21, %c0_22] : memref<8x392xf32, #tpu.memory_space<vmem>>, vector<8x392xf32>
    %cst_23 = arith.constant dense<0.000000e+00> : vector<8x1xf32>
    %30 = tpu.matmul %29, %27, %cst_23 {dimension_numbers = #tpu.dot_dimension_numbers<[1], [0], [0], [1], [0, 0, 1, 1], [], []>} : vector<8x392xf32>, vector<392x1xf32>, vector<8x1xf32> -> vector<8x1xf32>
    %c0_24 = arith.constant 0 : index
    %c0_25 = arith.constant 0 : index
    %31 = vector.load %arg10[%c0_24, %c0_25] : memref<8x1xf32, #tpu.memory_space<vmem>>, vector<8x1xf32>
    tpu.vector_store %arg10[%c0_24, %c0_25], %30 {strides = array<i32>} : memref<8x1xf32, #tpu.memory_space<vmem>>, vector<8x1xf32>,
    return
  }
  func.func @transform_0(%arg0: i32) -> (i32, i32) {
    %c0_i32 = arith.constant 0 : i32
    %c0_i32_0 = arith.constant 0 : i32
    return %arg0, %c0_i32 : i32, i32
  }
  func.func @transform_1(%arg0: i32) -> (i32, i32) {
    %c0_i32 = arith.constant 0 : i32
    %c0_i32_0 = arith.constant 0 : i32
    %c0_i32_1 = arith.constant 0 : i32
    return %c0_i32, %c0_i32_0 : i32, i32
  }
  func.func @transform_2(%arg0: i32) -> (i32, i32) {
    %c0_i32 = arith.constant 0 : i32
    %c0_i32_0 = arith.constant 0 : i32
    %c0_i32_1 = arith.constant 0 : i32
    return %c0_i32, %c0_i32_0 : i32, i32
  }
  func.func @transform_3(%arg0: i32) -> (i32, i32) {
    %c0_i32 = arith.constant 0 : i32
    %c0_i32_0 = arith.constant 0 : i32
    %c0_i32_1 = arith.constant 0 : i32
    return %c0_i32, %c0_i32_0 : i32, i32
  }
  func.func @transform_4(%arg0: i32) -> (i32, i32) {
    %c0_i32 = arith.constant 0 : i32
    %c0_i32_0 = arith.constant 0 : i32
    %c0_i32_1 = arith.constant 0 : i32
    return %c0_i32, %c0_i32_0 : i32, i32
  }
  func.func @transform_5(%arg0: i32) -> (i32, i32) {
    %c0_i32 = arith.constant 0 : i32
    %c0_i32_0 = arith.constant 0 : i32
    %c0_i32_1 = arith.constant 0 : i32
    return %c0_i32, %c0_i32_0 : i32, i32
  }
  func.func @transform_6(%arg0: i32) -> (i32, i32) {
    %c0_i32 = arith.constant 0 : i32
    %c0_i32_0 = arith.constant 0 : i32
    %c0_i32_1 = arith.constant 0 : i32
    return %c0_i32, %c0_i32_0 : i32, i32
  }
  func.func @transform_7(%arg0: i32) -> (i32, i32) {
    %c0_i32 = arith.constant 0 : i32
    %c0_i32_0 = arith.constant 0 : i32
    %c0_i32_1 = arith.constant 0 : i32
    return %c0_i32, %c0_i32_0 : i32, i32
  }
  func.func @transform_8(%arg0: i32) -> (i32, i32) {
    %c0_i32 = arith.constant 0 : i32
    %c0_i32_0 = arith.constant 0 : i32
    return %arg0, %c0_i32 : i32, i32
  }
  func.func @transform_9(%arg0: i32) -> (i32, i32) {
    %c0_i32 = arith.constant 0 : i32
    %c0_i32_0 = arith.constant 0 : i32
    return %arg0, %c0_i32 : i32, i32
  }
}

module attributes {stable_mosaic.version = 11 : i64} {
  func.func @_rcnn_head_kernel(%arg0: i32, %arg1: memref<8x1568xbf16, #tpu.memory_space<vmem>>, %arg2: memref<1568x64xbf16, #tpu.memory_space<vmem>>, %arg3: memref<1x64xf32, #tpu.memory_space<vmem>>, %arg4: memref<64x64xbf16, #tpu.memory_space<vmem>>, %arg5: memref<1x64xf32, #tpu.memory_space<vmem>>, %arg6: memref<64x5xbf16, #tpu.memory_space<vmem>>, %arg7: memref<1x5xf32, #tpu.memory_space<vmem>>, %arg8: memref<64x20xbf16, #tpu.memory_space<vmem>>, %arg9: memref<1x20xf32, #tpu.memory_space<vmem>>, %arg10: memref<8x5xf32, #tpu.memory_space<vmem>>, %arg11: memref<8x20xf32, #tpu.memory_space<vmem>>) attributes {dimension_semantics = [#tpu.dimension_semantics<parallel>], iteration_bounds = array<i64: 2>, scalar_prefetch = 0 : i64, scratch_operands = 0 : i64, tpu.core_type = #tpu.core_type<tc>, window_params = [{transform_indices = @transform_0, window_bounds = array<i64: 8, 1568>}, {pipeline_mode = #tpu.pipeline_mode<synchronous>, transform_indices = @transform_1, window_bounds = array<i64: 1568, 64>}, {pipeline_mode = #tpu.pipeline_mode<synchronous>, transform_indices = @transform_2, window_bounds = array<i64: 1, 64>}, {pipeline_mode = #tpu.pipeline_mode<synchronous>, transform_indices = @transform_3, window_bounds = array<i64: 64, 64>}, {pipeline_mode = #tpu.pipeline_mode<synchronous>, transform_indices = @transform_4, window_bounds = array<i64: 1, 64>}, {pipeline_mode = #tpu.pipeline_mode<synchronous>, transform_indices = @transform_5, window_bounds = array<i64: 64, 5>}, {pipeline_mode = #tpu.pipeline_mode<synchronous>, transform_indices = @transform_6, window_bounds = array<i64: 1, 5>}, {pipeline_mode = #tpu.pipeline_mode<synchronous>, transform_indices = @transform_7, window_bounds = array<i64: 64, 20>}, {pipeline_mode = #tpu.pipeline_mode<synchronous>, transform_indices = @transform_8, window_bounds = array<i64: 1, 20>}, {transform_indices = @transform_9, window_bounds = array<i64: 8, 5>}, {transform_indices = @transform_10, window_bounds = array<i64: 8, 20>}]} {
    %c0 = arith.constant 0 : index
    %c0_0 = arith.constant 0 : index
    %0 = vector.load %arg1[%c0, %c0_0] : memref<8x1568xbf16, #tpu.memory_space<vmem>>, vector<8x1568xbf16>
    %c0_1 = arith.constant 0 : index
    %c0_2 = arith.constant 0 : index
    %1 = vector.load %arg2[%c0_1, %c0_2] : memref<1568x64xbf16, #tpu.memory_space<vmem>>, vector<1568x64xbf16>
    %cst = arith.constant dense<0.000000e+00> : vector<8x64xf32>
    %2 = tpu.matmul %0, %1, %cst {dimension_numbers = #tpu.dot_dimension_numbers<[1], [0], [0], [1], [0, 0, 1, 1], [], []>} : vector<8x1568xbf16>, vector<1568x64xbf16>, vector<8x64xf32> -> vector<8x64xf32>
    %c0_3 = arith.constant 0 : index
    %c0_4 = arith.constant 0 : index
    %3 = vector.load %arg3[%c0_3, %c0_4] : memref<1x64xf32, #tpu.memory_space<vmem>>, vector<1x64xf32>
    %4 = vector.broadcast %3 : vector<1x64xf32> to vector<8x64xf32>
    %5 = arith.addf %2, %4 : vector<8x64xf32>
    %cst_5 = arith.constant 0.000000e+00 : f32
    %6 = vector.broadcast %cst_5 : f32 to vector<8x64xf32>
    %7 = arith.maximumf %5, %6 : vector<8x64xf32>
    %8 = arith.truncf %7 : vector<8x64xf32> to vector<8x64xbf16>
    %c0_6 = arith.constant 0 : index
    %c0_7 = arith.constant 0 : index
    %9 = vector.load %arg4[%c0_6, %c0_7] : memref<64x64xbf16, #tpu.memory_space<vmem>>, vector<64x64xbf16>
    %cst_8 = arith.constant dense<0.000000e+00> : vector<8x64xf32>
    %10 = tpu.matmul %8, %9, %cst_8 {dimension_numbers = #tpu.dot_dimension_numbers<[1], [0], [0], [1], [0, 0, 1, 1], [], []>} : vector<8x64xbf16>, vector<64x64xbf16>, vector<8x64xf32> -> vector<8x64xf32>
    %c0_9 = arith.constant 0 : index
    %c0_10 = arith.constant 0 : index
    %11 = vector.load %arg5[%c0_9, %c0_10] : memref<1x64xf32, #tpu.memory_space<vmem>>, vector<1x64xf32>
    %12 = vector.broadcast %11 : vector<1x64xf32> to vector<8x64xf32>
    %13 = arith.addf %10, %12 : vector<8x64xf32>
    %cst_11 = arith.constant 0.000000e+00 : f32
    %14 = vector.broadcast %cst_11 : f32 to vector<8x64xf32>
    %15 = arith.maximumf %13, %14 : vector<8x64xf32>
    %16 = arith.truncf %15 : vector<8x64xf32> to vector<8x64xbf16>
    %c0_12 = arith.constant 0 : index
    %c0_13 = arith.constant 0 : index
    %17 = vector.load %arg6[%c0_12, %c0_13] : memref<64x5xbf16, #tpu.memory_space<vmem>>, vector<64x5xbf16>
    %cst_14 = arith.constant dense<0.000000e+00> : vector<8x5xf32>
    %18 = tpu.matmul %16, %17, %cst_14 {dimension_numbers = #tpu.dot_dimension_numbers<[1], [0], [0], [1], [0, 0, 1, 1], [], []>} : vector<8x64xbf16>, vector<64x5xbf16>, vector<8x5xf32> -> vector<8x5xf32>
    %c0_15 = arith.constant 0 : index
    %c0_16 = arith.constant 0 : index
    %19 = vector.load %arg7[%c0_15, %c0_16] : memref<1x5xf32, #tpu.memory_space<vmem>>, vector<1x5xf32>
    %20 = vector.broadcast %19 : vector<1x5xf32> to vector<8x5xf32>
    %21 = arith.addf %18, %20 : vector<8x5xf32>
    %c0_17 = arith.constant 0 : index
    %c0_18 = arith.constant 0 : index
    %22 = vector.load %arg8[%c0_17, %c0_18] : memref<64x20xbf16, #tpu.memory_space<vmem>>, vector<64x20xbf16>
    %cst_19 = arith.constant dense<0.000000e+00> : vector<8x20xf32>
    %23 = tpu.matmul %16, %22, %cst_19 {dimension_numbers = #tpu.dot_dimension_numbers<[1], [0], [0], [1], [0, 0, 1, 1], [], []>} : vector<8x64xbf16>, vector<64x20xbf16>, vector<8x20xf32> -> vector<8x20xf32>
    %c0_20 = arith.constant 0 : index
    %c0_21 = arith.constant 0 : index
    %24 = vector.load %arg9[%c0_20, %c0_21] : memref<1x20xf32, #tpu.memory_space<vmem>>, vector<1x20xf32>
    %25 = vector.broadcast %24 : vector<1x20xf32> to vector<8x20xf32>
    %26 = arith.addf %23, %25 : vector<8x20xf32>
    %c0_22 = arith.constant 0 : index
    %c0_23 = arith.constant 0 : index
    %27 = vector.load %arg11[%c0_22, %c0_23] : memref<8x20xf32, #tpu.memory_space<vmem>>, vector<8x20xf32>
    tpu.vector_store %arg11[%c0_22, %c0_23], %26 {strides = array<i32>} : memref<8x20xf32, #tpu.memory_space<vmem>>, vector<8x20xf32>,
    %cst_24 = arith.constant dense<0xFF800000> : vector<8xf32>
    %28 = vector.multi_reduction <maximumf>, %21, %cst_24 [1] : vector<8x5xf32> to vector<8xf32>
    %29 = vector.shape_cast %28 : vector<8xf32> to vector<8x1xf32>
    %30 = vector.broadcast %29 : vector<8x1xf32> to vector<8x5xf32>
    %31 = arith.subf %21, %30 : vector<8x5xf32>
    %32 = math.exp %31 : vector<8x5xf32>
    %cst_25 = arith.constant dense<0.000000e+00> : vector<8xf32>
    %33 = vector.multi_reduction <add>, %32, %cst_25 [1] : vector<8x5xf32> to vector<8xf32>
    %34 = vector.shape_cast %33 : vector<8xf32> to vector<8x1xf32>
    %35 = tpu.reciprocal %34 {approx = true} : vector<8x1xf32> -> vector<8x1xf32>
    %36 = vector.broadcast %35 : vector<8x1xf32> to vector<8x5xf32>
    %37 = arith.mulf %32, %36 : vector<8x5xf32>
    %c0_26 = arith.constant 0 : index
    %c0_27 = arith.constant 0 : index
    %38 = vector.load %arg10[%c0_26, %c0_27] : memref<8x5xf32, #tpu.memory_space<vmem>>, vector<8x5xf32>
    tpu.vector_store %arg10[%c0_26, %c0_27], %37 {strides = array<i32>} : memref<8x5xf32, #tpu.memory_space<vmem>>, vector<8x5xf32>,
    return
  }
  func.func @transform_0(%arg0: i32) -> (i32, i32) {
    %c0_i32 = arith.constant 0 : i32
    %c0_i32_0 = arith.constant 0 : i32
    return %arg0, %c0_i32 : i32, i32
  }
  func.func @transform_1(%arg0: i32) -> (i32, i32) {
    %c0_i32 = arith.constant 0 : i32
    %c0_i32_0 = arith.constant 0 : i32
    %c0_i32_1 = arith.constant 0 : i32
    return %c0_i32, %c0_i32_0 : i32, i32
  }
  func.func @transform_2(%arg0: i32) -> (i32, i32) {
    %c0_i32 = arith.constant 0 : i32
    %c0_i32_0 = arith.constant 0 : i32
    %c0_i32_1 = arith.constant 0 : i32
    return %c0_i32, %c0_i32_0 : i32, i32
  }
  func.func @transform_3(%arg0: i32) -> (i32, i32) {
    %c0_i32 = arith.constant 0 : i32
    %c0_i32_0 = arith.constant 0 : i32
    %c0_i32_1 = arith.constant 0 : i32
    return %c0_i32, %c0_i32_0 : i32, i32
  }
  func.func @transform_4(%arg0: i32) -> (i32, i32) {
    %c0_i32 = arith.constant 0 : i32
    %c0_i32_0 = arith.constant 0 : i32
    %c0_i32_1 = arith.constant 0 : i32
    return %c0_i32, %c0_i32_0 : i32, i32
  }
  func.func @transform_5(%arg0: i32) -> (i32, i32) {
    %c0_i32 = arith.constant 0 : i32
    %c0_i32_0 = arith.constant 0 : i32
    %c0_i32_1 = arith.constant 0 : i32
    return %c0_i32, %c0_i32_0 : i32, i32
  }
  func.func @transform_6(%arg0: i32) -> (i32, i32) {
    %c0_i32 = arith.constant 0 : i32
    %c0_i32_0 = arith.constant 0 : i32
    %c0_i32_1 = arith.constant 0 : i32
    return %c0_i32, %c0_i32_0 : i32, i32
  }
  func.func @transform_7(%arg0: i32) -> (i32, i32) {
    %c0_i32 = arith.constant 0 : i32
    %c0_i32_0 = arith.constant 0 : i32
    %c0_i32_1 = arith.constant 0 : i32
    return %c0_i32, %c0_i32_0 : i32, i32
  }
  func.func @transform_8(%arg0: i32) -> (i32, i32) {
    %c0_i32 = arith.constant 0 : i32
    %c0_i32_0 = arith.constant 0 : i32
    %c0_i32_1 = arith.constant 0 : i32
    return %c0_i32, %c0_i32_0 : i32, i32
  }
  func.func @transform_9(%arg0: i32) -> (i32, i32) {
    %c0_i32 = arith.constant 0 : i32
    %c0_i32_0 = arith.constant 0 : i32
    return %arg0, %c0_i32 : i32, i32
  }
  func.func @transform_10(%arg0: i32) -> (i32, i32) {
    %c0_i32 = arith.constant 0 : i32
    %c0_i32_0 = arith.constant 0 : i32
    return %arg0, %c0_i32 : i32, i32
  }
}

</mosaic_0001>

<bundles_post_ra>
// kernel: faster_rcnn_forward.4
= control target key start
LH: loop header
LB: loop body
LE: loop exit
PB: predicated region body
PF: predicated region fallthrough
CT: control target
= control target key end

     0   :  { %vm19_vm0 = vcmask 261120   ;;  %v923_v60 = vmov 0.0   ;;  %vm678_vm1 = vcmask 257024   ;;  %s1147_s1 = inlined_call_operand.vmem [shape: bf16[768,32], index: 1, kind: input, shape index: {}]   ;;  %s1148_s0 = inlined_call_operand.vmem [shape: bf16[32,768], index: 0, kind: input, shape index: {}]   ;;  %s1149_s2 = inlined_call_operand.vmem [shape: f32[1,32], index: 2, kind: input, shape index: {}]   ;;  %s1150_s3 = inlined_call_operand.vmem [shape: bf16[32,32], index: 3, kind: output, shape index: {}]  }
   0x1   :  { %v857_v0 = vld [vmem:[%s1147_s1 + $0x78] sm:$0xff]   ;;  %v861_v4 = vld [vmem:[%s1147_s1 + $0x70] sm:$0xff]   ;;  %v865_v8 = vld [vmem:[%s1147_s1 + $0x68] sm:$0xff]   ;;  %20 = vst.msk [vmem:[#allocation2] sm:$0xff] %vm19_vm0, %v923_v60 }
   0x2   :  { %v858_v1 = vld [vmem:[%s1147_s1 + $0xf8] sm:$0xff]   ;;  %756 = vmatprep.subr.bf16.mxu0 %v857_v0  ;;  %v862_v5 = vld [vmem:[%s1147_s1 + $0xf0] sm:$0xff]   ;;  %v866_v9 = vld [vmem:[%s1147_s1 + $0xe8] sm:$0xff]   ;;  %21 = vst.msk [vmem:[#allocation2 + $0x8] sm:$0xff] %vm19_vm0, %v923_v60 }
   0x3   :  { %v859_v2 = vld [vmem:[%s1147_s1 + $0x38] sm:$0xff]   ;;  %784 = vmatprep.subr.bf16.mxu1 %v858_v1  ;;  %v863_v6 = vld [vmem:[%s1147_s1 + $0x30] sm:$0xff]   ;;  %v867_v10 = vld [vmem:[%s1147_s1 + $0x28] sm:$0xff]   ;;  %22 = vst.msk [vmem:[#allocation2 + $0x10] sm:$0xff] %vm19_vm0, %v923_v60 }
   0x4   :  { %v860_v3 = vld [vmem:[%s1147_s1 + $0xb8] sm:$0xff]   ;;  %757 = vmatpush3.bf16.msra.mxu0 %v859_v2  ;;  %v864_v7 = vld [vmem:[%s1147_s1 + $0xb0] sm:$0xff]   ;;  %v868_v11 = vld [vmem:[%s1147_s1 + $0xa8] sm:$0xff]   ;;  %23 = vst.msk [vmem:[#allocation2 + $0x18] sm:$0xff] %vm19_vm0, %v923_v60 }
   0x5   :  { %785 = vmatpush3.bf16.msra.mxu1 %v860_v3  ;;  %758 = vmatprep.subr.bf16.mxu0 %v861_v4  ;;  %v869_v12 = vld [vmem:[%s1147_s1 + $0x60] sm:$0xff]   ;;  %v873_v16 = vld [vmem:[%s1147_s1 + $0x58] sm:$0xff]   ;;  %v877_v20 = vld [vmem:[%s1147_s1 + $0x50] sm:$0xff]  }
   0x6   :  { %786 = vmatprep.subr.bf16.mxu1 %v862_v5  ;;  %v870_v13 = vld [vmem:[%s1147_s1 + $0xe0] sm:$0xff]   ;;  %v874_v17 = vld [vmem:[%s1147_s1 + $0xd8] sm:$0xff]   ;;  %v878_v21 = vld [vmem:[%s1147_s1 + $0xd0] sm:$0xff]  }
   0x7   :  { %v871_v14 = vld [vmem:[%s1147_s1 + $0x20] sm:$0xff]   ;;  %v875_v18 = vld [vmem:[%s1147_s1 + $0x18] sm:$0xff]   ;;  %v879_v22 = vld [vmem:[%s1147_s1 + $0x10] sm:$0xff]  }
   0x8   :  { %759 = vmatpush3.bf16.msra.mxu0 %v863_v6  ;;  %v872_v15 = vld [vmem:[%s1147_s1 + $0xa0] sm:$0xff]   ;;  %v876_v19 = vld [vmem:[%s1147_s1 + $0x98] sm:$0xff]   ;;  %v880_v23 = vld [vmem:[%s1147_s1 + $0x90] sm:$0xff]  }
   0x9   :  { %787 = vmatpush3.bf16.msra.mxu1 %v864_v7  ;;  %760 = vmatprep.subr.bf16.mxu0 %v865_v8  ;;  %v881_v24 = vld [vmem:[%s1147_s1 + $0x48] sm:$0xff]   ;;  %v885_v28 = vld [vmem:[%s1147_s1 + $0x40] sm:$0xff]   ;;  %v895_v36 = vld [vmem:[%s1147_s1 + $0x178] sm:$0xff]  }
   0xa   :  { %788 = vmatprep.subr.bf16.mxu1 %v866_v9  ;;  %v882_v25 = vld [vmem:[%s1147_s1 + $0xc8] sm:$0xff]   ;;  %v886_v29 = vld [vmem:[%s1147_s1 + $0xc0] sm:$0xff]   ;;  %v896_v37 = vld [vmem:[%s1147_s1 + $0x138] sm:$0xff]  }
   0xb   :  { %v883_v26 = vld [vmem:[%s1147_s1 + $0x8] sm:$0xff]   ;;  %v887_v30 = vld [vmem:[%s1147_s1] sm:$0xff]   ;;  %v897_v38 = vld [vmem:[%s1147_s1 + $0x170] sm:$0xff]  }
   0xc   :  { %761 = vmatpush3.bf16.msra.mxu0 %v867_v10  ;;  %v884_v27 = vld [vmem:[%s1147_s1 + $0x88] sm:$0xff]   ;;  %v888_v31 = vld [vmem:[%s1147_s1 + $0x80] sm:$0xff]   ;;  %v898_v39 = vld [vmem:[%s1147_s1 + $0x130] sm:$0xff]  }
   0xd   :  { %789 = vmatpush3.bf16.msra.mxu1 %v868_v11  ;;  %762 = vmatprep.subr.bf16.mxu0 %v869_v12  ;;  %v889_v32 = vld [vmem:[%s1148_s0] ss:$24 sps:$4 sm:$0xff]   ;;  %v891_v33 = vld [vmem:[%s1148_s0 + $0x4] ss:$24 sps:$4 sm:$0xff]   ;;  %v899_v40 = vld [vmem:[%s1147_s1 + $0x168] sm:$0xff]  }
   0xe   :  { %790 = vmatprep.subr.bf16.mxu1 %v870_v13  ;;  %v892_v34 = vld [vmem:[%s1148_s0 + $0x8] ss:$24 sps:$4 sm:$0xff]   ;;  %v894_v35 = vld [vmem:[%s1148_s0 + $0xc] ss:$24 sps:$4 sm:$0xff]   ;;  %516 = vmatprep.mubr.bf16.mxu0 %v891_v33  ;;  %v906_v45 = vld [vmem:[%s1148_s0 + $0x3c] ss:$24 sps:$4 sm:$0xff]  }
   0xf   :  { %565 = vmatprep.mubr.bf16.mxu1 %v894_v35  ;;  %v900_v41 = vld [vmem:[%s1147_s1 + $0x128] sm:$0xff]   ;;  %v901_v42 = vld [vmem:[%s1147_s1 + $0x160] sm:$0xff]   ;;  %v903_v46 = vld [vmem:[%s1147_s1 + $0x158] sm:$0xff]  }
  0x10   :  { %763 = vmatpush3.bf16.msra.mxu0 %v871_v14  ;;  %v902_v43 = vld [vmem:[%s1147_s1 + $0x120] sm:$0xff]   ;;  %v904_v44 = vld [vmem:[%s1148_s0 + $0x34] ss:$24 sps:$4 sm:$0xff]   ;;  %v909_v47 = vld [vmem:[%s1148_s0 + $0x30] ss:$24 sps:$4 sm:$0xff]  }
  0x11   :  { %791 = vmatpush3.bf16.msra.mxu1 %v872_v15  ;;  %764 = vmatprep.subr.bf16.mxu0 %v873_v16  ;;  %v910_v48 = vld [vmem:[%s1148_s0 + $0x38] ss:$24 sps:$4 sm:$0xff]   ;;  %v919_v52 = vld [vmem:[%s1148_s0 + $0x14] ss:$24 sps:$4 sm:$0xff]   ;;  %v922_v54 = vld [vmem:[%s1148_s0 + $0x44] ss:$24 sps:$4 sm:$0xff]  }
  0x12   :  { %792 = vmatprep.subr.bf16.mxu1 %v874_v17  ;;  %v908_v49 = vld [vmem:[%s1147_s1 + $0x118] sm:$0xff]   ;;  %v911_v50 = vld [vmem:[%s1147_s1 + $0x150] sm:$0xff]   ;;  %v913_v53 = vld [vmem:[%s1147_s1 + $0x148] sm:$0xff]  }
  0x13   :  { %v912_v51 = vld [vmem:[%s1147_s1 + $0x110] sm:$0xff]   ;;  %v914_v55 = vld [vmem:[%s1147_s1 + $0x108] sm:$0xff]   ;;  %v915_v56 = vld [vmem:[%s1147_s1 + $0x140] sm:$0xff]  }
  0x14   :  { %765 = vmatpush3.bf16.msra.mxu0 %v875_v18  ;;  %v916_v57 = vld [vmem:[%s1147_s1 + $0x100] sm:$0xff]   ;;  %v917_v58 = vld [vmem:[%s1148_s0 + $0x10] ss:$24 sps:$4 sm:$0xff]  }
  0x15   :  { %793 = vmatpush3.bf16.msra.mxu1 %v876_v19  ;;  %766 = vmatprep.subr.bf16.mxu0 %v877_v20  ;;  %v920_v59 = vld [vmem:[%s1148_s0 + $0x40] ss:$24 sps:$4 sm:$0xff]  }
  0x16   :  { %794 = vmatprep.subr.bf16.mxu1 %v878_v21 }
  0x18   :  { %767 = vmatpush3.bf16.msra.mxu0 %v879_v22 }
  0x19   :  { %795 = vmatpush3.bf16.msra.mxu1 %v880_v23  ;;  %768 = vmatprep.subr.bf16.mxu0 %v881_v24 }
  0x1a   :  { %796 = vmatprep.subr.bf16.mxu1 %v882_v25 }
  0x1c   :  { %769 = vmatpush3.bf16.msra.mxu0 %v883_v26 }
  0x1d   :  { %797 = vmatpush3.bf16.msra.mxu1 %v884_v27  ;;  %770 = vmatprep.subr.bf16.mxu0 %v885_v28  ;;  %v24_v28 = vld [vmem:[#allocation2] sm:$0xff] }
  0x1e   :  { %798 = vmatprep.subr.bf16.mxu1 %v886_v29 }
  0x20   :  { %771 = vmatpush3.bf16.msra.mxu0 %v887_v30 }
  0x21   :  { %799 = vmatpush3.bf16.msra.mxu1 %v888_v31  ;;  %812 = vmatprep.subr.bf16.mxu0 %v895_v36 }
  0x22   :  { %840 = vmatprep.subr.bf16.mxu1 %v895_v36 }
  0x23   :  { %517 = vmatmul.mubr.bf16.vlgmr.msra.gmra.mxu0 %v889_v32  ;;  %v26_v32 = vld [vmem:[#allocation2 + $0x10] sm:$0xff] }
  0x24   :  { %566 = vmatmul.mubr.bf16.vlgmr.msra.gmra.mxu1 %v892_v34  ;;  %813 = vmatpush3.bf16.msra.mxu0 %v896_v37 }
  0x25   :  { %848 = vmatpush3.bf16.msra.mxu1 %v896_v37  ;;  %814 = vmatprep.subr.bf16.mxu0 %v897_v38 }
  0x26   :  { %841 = vmatprep.subr.bf16.mxu1 %v897_v38  ;;  %524 = vmatprep.mubr.bf16.mxu0 %v904_v44 }
  0x27   :  { %573 = vmatprep.mubr.bf16.mxu1 %v906_v45  ;;  %v27_v45 = vld [vmem:[#allocation2 + $0x18] sm:$0xff] }
  0x28   :  { %815 = vmatpush3.bf16.msra.mxu0 %v898_v39 }
  0x29   :  { %849 = vmatpush3.bf16.msra.mxu1 %v898_v39  ;;  %816 = vmatprep.subr.bf16.mxu0 %v899_v40 }
  0x2a   :  { %842 = vmatprep.subr.bf16.mxu1 %v899_v40 }
  0x2b   :  { %525 = vmatmul.mubr.bf16.gmra.mxu0 %v909_v47 }
  0x2c   :  { %817 = vmatpush3.bf16.msra.mxu0 %v900_v41  ;;  %574 = vmatmul.mubr.bf16.gmra.mxu1 %v910_v48 }
  0x2d   :  { %850 = vmatpush3.bf16.msra.mxu1 %v900_v41  ;;  %818 = vmatprep.subr.bf16.mxu0 %v901_v42 }
  0x2e   :  { %843 = vmatprep.subr.bf16.mxu1 %v901_v42  ;;  %614 = vmatprep.mubr.bf16.mxu0 %v919_v52  ;;  %v25_v42 = vld [vmem:[#allocation2 + $0x8] sm:$0xff] }
  0x2f   :  { %622 = vmatprep.mubr.bf16.mxu1 %v922_v54 }
  0x30   :  { %819 = vmatpush3.bf16.msra.mxu0 %v902_v43 }
  0x31   :  { %851 = vmatpush3.bf16.msra.mxu1 %v902_v43  ;;  %820 = vmatprep.subr.bf16.mxu0 %v903_v46 }
  0x32   :  { %844 = vmatprep.subr.bf16.mxu1 %v903_v46 }
  0x34   :  { %821 = vmatpush3.bf16.msra.mxu0 %v908_v49 }
  0x35   :  { %852 = vmatpush3.bf16.msra.mxu1 %v908_v49  ;;  %822 = vmatprep.subr.bf16.mxu0 %v911_v50  ;;  %v747_v49 = vld [vmem:[%s1149_s2] ss:$0 sm:$0xff] }
  0x36   :  { %845 = vmatprep.subr.bf16.mxu1 %v911_v50 }
  0x38   :  { %823 = vmatpush3.bf16.msra.mxu0 %v912_v51 }
  0x39   :  { %853 = vmatpush3.bf16.msra.mxu1 %v912_v51  ;;  %824 = vmatprep.subr.bf16.mxu0 %v913_v53 }
  0x3a   :  { %846 = vmatprep.subr.bf16.mxu1 %v913_v53 }
  0x3c   :  { %825 = vmatpush3.bf16.msra.mxu0 %v914_v55 }
  0x3d   :  { %854 = vmatpush3.bf16.msra.mxu1 %v914_v55  ;;  %826 = vmatprep.subr.bf16.mxu0 %v915_v56 }
  0x3e   :  { %847 = vmatprep.subr.bf16.mxu1 %v915_v56 }
  0x40   :  { %827 = vmatpush3.bf16.msra.mxu0 %v916_v57 }
  0x41   :  { %855 = vmatpush3.bf16.msra.mxu1 %v916_v57 }
  0x43   :  { %615 = vmatmul.mubr.bf16.vlgmr.msra.gmra.mxu0 %v917_v58 }
  0x44   :  { %623 = vmatmul.mubr.bf16.vlgmr.msra.gmra.mxu1 %v920_v59 }
  0xe3   :  { %v772_v61 = vpop.f32.mrf.mxu0 }
  0xe4   :  { %v800_v62 = vpop.f32.mrf.mxu1 }
  0xe5   :  { %v773_v63 = vpop.f32.mrf.mxu0 }
  0xe6   :  { %v801_v0 = vpop.f32.mrf.mxu1  ;;  %v774_v12 = vadd.f32 %v773_v63, %v772_v61 }
  0xe7   :  { %v775_v1 = vpop.f32.mrf.mxu0  ;;  %v802_v13 = vadd.f32 %v801_v0, %v800_v62 }
  0xe8   :  { %v803_v2 = vpop.f32.mrf.mxu1 }
  0xe9   :  { %v776_v3 = vpop.f32.mrf.mxu0  ;;  %v568_v20 = vadd.f32 %v802_v13, %v774_v12 }
  0xea   :  { %v804_v4 = vpop.f32.mrf.mxu1  ;;  %v777_v21 = vadd.f32 %v776_v3, %v775_v1 }
  0xeb   :  { %v778_v5 = vpop.f32.mrf.mxu0  ;;  %v805_v22 = vadd.f32 %v804_v4, %v803_v2 }
  0xec   :  { %v806_v6 = vpop.f32.mrf.mxu1 }
  0xed   :  { %v779_v7 = vpop.f32.mrf.mxu0  ;;  %v571_v36 = vadd.f32 %v805_v22, %v777_v21 }
  0xee   :  { %v807_v8 = vpop.f32.mrf.mxu1  ;;  %v780_v15 = vadd.f32 %v779_v7, %v778_v5 }
  0xef   :  { %v781_v9 = vpop.f32.mrf.mxu0  ;;  %v808_v16 = vadd.f32 %v807_v8, %v806_v6 }
  0xf0   :  { %v809_v10 = vpop.f32.mrf.mxu1 }
  0xf1   :  { %v782_v11 = vpop.f32.mrf.mxu0  ;;  %v576_v25 = vadd.f32 %v808_v16, %v780_v15 }
  0xf2   :  { %v810_v14 = vpop.f32.mrf.mxu1  ;;  %v783_v26 = vadd.f32 %v782_v11, %v781_v9 }
  0xf3   :  { %v811_v27 = vadd.f32 %v810_v14, %v809_v10 }
  0xf5   :  { %v579_v40 = vadd.f32 %v811_v27, %v783_v26 }
 0x103   :  { %v828_v17 = vpop.f32.mrf.mxu0 }
 0x104   :  { %v834_v18 = vpop.f32.mrf.mxu1 }
 0x105   :  { %v829_v19 = vpop.f32.mrf.mxu0 }
 0x106   :  { %v830_v23 = vadd.f32 %v829_v19, %v828_v17  ;;  %v835_v24 = vpop.f32.mrf.mxu1 }
 0x107   :  { %v836_v29 = vadd.f32 %v835_v24, %v834_v18  ;;  %v831_v30 = vpop.f32.mrf.mxu0 }
 0x108   :  { %v617_v31 = vadd.f32 %v830_v23, %v568_v20  ;;  %v837_v33 = vpop.f32.mrf.mxu1 }
 0x109   :  { %v625_v34 = vadd.f32 %v836_v29, %v576_v25  ;;  %v832_v35 = vpop.f32.mrf.mxu0 }
 0x10a   :  { %v631_v37 = vadd.f32 %v617_v31, %v24_v28  ;;  %v833_v38 = vadd.f32 %v832_v35, %v831_v30  ;;  %v838_v39 = vpop.f32.mrf.mxu1 }
 0x10b   :  { %v633_v41 = vadd.f32 %v625_v34, %v26_v32  ;;  %v839_v43 = vadd.f32 %v838_v39, %v837_v33 }
 0x10c   :  { %636 = vst.msk [vmem:[#allocation2] sm:$0xff] %vm19_vm0, %v631_v37  ;;  %v620_v44 = vadd.f32 %v833_v38, %v571_v36 }
 0x10d   :  { %638 = vst.msk [vmem:[#allocation2 + $0x10] sm:$0xff] %vm19_vm0, %v633_v41  ;;  %v628_v46 = vadd.f32 %v839_v43, %v579_v40 }
 0x10e   :  { %v632_v47 = vadd.f32 %v620_v44, %v25_v42 }
 0x10f   :  { %v634_v48 = vadd.f32 %v628_v46, %v27_v45 }
 0x110   :  { %637 = vst.msk [vmem:[#allocation2 + $0x8] sm:$0xff] %vm19_vm0, %v632_v47 }
 0x111   :  { %639 = vst.msk [vmem:[#allocation2 + $0x18] sm:$0xff] %vm19_vm0, %v634_v48 }
 0x113   :  { %v643_v50 = vld [vmem:[#allocation2] sm:$0xff] }
 0x114   :  { %v654_v51 = vadd.f32 %v747_v49, %v643_v50  ;;  %v645_v52 = vld [vmem:[#allocation2 + $0x10] sm:$0xff] }
 0x115   :  { %v656_v53 = vadd.f32 %v747_v49, %v645_v52 }
 0x116   :  { %v658_v54 = vmax.f32 %v654_v51, 0.0 }
 0x117   :  { %v660_v55 = vmax.f32 %v656_v53, 0.0  ;;  %v644_v56 = vld [vmem:[#allocation2 + $0x8] sm:$0xff] }
 0x118   :  { %v752_v57 = vpack.c.bf16 %v658_v54, %v658_v54  ;;  %v655_v58 = vadd.f32 %v747_v49, %v644_v56  ;;  %v646_v59 = vld [vmem:[#allocation2 + $0x18] sm:$0xff] }
 0x119   :  { %v754_v60 = vpack.c.bf16 %v660_v55, %v660_v55  ;;  %v657_v61 = vadd.f32 %v747_v49, %v646_v59 }
 0x11a   :  { %679 = vst.msk [vmem:[%s1150_s3] sm:$0xf] %vm678_vm1, %v752_v57  ;;  %v659_v62 = vmax.f32 %v655_v58, 0.0 }
 0x11b   :  { %681 = vst.msk [vmem:[%s1150_s3 + $0x8] sm:$0xf] %vm678_vm1, %v754_v60  ;;  %v661_v63 = vmax.f32 %v657_v61, 0.0 }
 0x11c   :  { %v753_v0 = vpack.c.bf16 %v659_v62, %v659_v62 }
 0x11d   :  { %v755_v1 = vpack.c.bf16 %v661_v63, %v661_v63 }
 0x11e   :  { %680 = vst.msk [vmem:[%s1150_s3 + $0x4] sm:$0xf] %vm678_vm1, %v753_v0 }
 0x11f   :  { %682 = vst.msk [vmem:[%s1150_s3 + $0xc] sm:$0xf] %vm678_vm1, %v755_v1 }

// kernel: faster_rcnn_forward.5
= control target key start
LH: loop header
LB: loop body
LE: loop exit
PB: predicated region body
PF: predicated region fallthrough
CT: control target
= control target key end

     0   :  { %vm210_vm0 = vcmask 261120   ;;  %vm360_vm1 = vcmask 523264   ;;  %s678_s1 = inlined_call_operand.vmem [shape: bf16[288,64], index: 1, kind: input, shape index: {}]   ;;  %s679_s0 = inlined_call_operand.vmem [shape: bf16[32,288], index: 0, kind: input, shape index: {}]   ;;  %s680_s3 = inlined_call_operand.vmem [shape: bf16[64,128], index: 3, kind: input, shape index: {}]   ;;  %s681_s2 = inlined_call_operand.vmem [shape: f32[1,64], index: 2, kind: input, shape index: {}]   ;;  %s682_s4 = inlined_call_operand.vmem [shape: f32[1,128], index: 4, kind: input, shape index: {}]   ;;  %s683_s5 = inlined_call_operand.vmem [shape: f32[32,128], index: 5, kind: output, shape index: {}]  }
   0x1   :  { %v516_v0 = vld [vmem:[%s678_s1 + $0x78] sm:$0xff]   ;;  %v518_v2 = vld [vmem:[%s678_s1 + $0x70] sm:$0xff]   ;;  %v520_v4 = vld [vmem:[%s678_s1 + $0x68] sm:$0xff]  }
   0x2   :  { %v517_v1 = vld [vmem:[%s678_s1 + $0x38] sm:$0xff]   ;;  %458 = vmatprep.subr.bf16.mxu0 %v516_v0  ;;  %v519_v3 = vld [vmem:[%s678_s1 + $0x30] sm:$0xff]   ;;  %v521_v5 = vld [vmem:[%s678_s1 + $0x28] sm:$0xff]  }
   0x3   :  { %459 = vmatpush3.bf16.msra.mxu0 %v517_v1  ;;  %v522_v6 = vld [vmem:[%s678_s1 + $0x60] sm:$0xff]   ;;  %v524_v8 = vld [vmem:[%s678_s1 + $0x58] sm:$0xff]   ;;  %v531_v10 = vld [vmem:[%s678_s1 + $0x88] sm:$0xff]  }
   0x4   :  { %460 = vmatprep.subr.bf16.mxu0 %v518_v2  ;;  %v523_v7 = vld [vmem:[%s678_s1 + $0x20] sm:$0xff]   ;;  %v525_v9 = vld [vmem:[%s678_s1 + $0x18] sm:$0xff]   ;;  %v526_v11 = vld [vmem:[%s678_s1 + $0x50] sm:$0xff]   ;;  %496 = vmatprep.subr.bf16.mxu1 %v531_v10 }
   0x5   :  { %v527_v12 = vld [vmem:[%s678_s1 + $0x10] sm:$0xff]   ;;  %v528_v13 = vld [vmem:[%s678_s1 + $0x48] sm:$0xff]   ;;  %497 = vmatpush3.bf16.msra.mxu1 %v531_v10  ;;  %v536_v15 = vld [vmem:[%s678_s1 + $0x80] sm:$0xff]  }
   0x6   :  { %v535_v14 = vld [vmem:[%s679_s0 + $0x4] ss:$12 sps:$4 sm:$0xff]   ;;  %v537_v16 = vld [vmem:[%s679_s0 + $0x8] ss:$12 sps:$4 sm:$0xff]   ;;  %498 = vmatprep.subr.bf16.mxu1 %v536_v15  ;;  %v538_v17 = vld [vmem:[%s679_s0 + $0x20] ss:$12 sps:$4 sm:$0xff]  }
   0x7   :  { %461 = vmatpush3.bf16.msra.mxu0 %v519_v3  ;;  %249 = vmatprep.mubr.bf16.mxu0 %v535_v14  ;;  %v529_v18 = vld [vmem:[%s678_s1 + $0x8] sm:$0xff]   ;;  %v530_v19 = vld [vmem:[%s678_s1 + $0x40] sm:$0xff]   ;;  %v542_v24 = vld [vmem:[%s680_s3 + $0x18] sm:$0xff]  }
   0x8   :  { %462 = vmatprep.subr.bf16.mxu0 %v520_v4  ;;  %500 = vmatprep.mubr.msk.bf16.mxu1 %vm210_vm0, %v537_v16  ;;  %v532_v20 = vld [vmem:[%s678_s1] sm:$0xff]   ;;  %v539_v22 = vld [vmem:[%s679_s0 + $0x1c] ss:$12 sps:$4 sm:$0xff]   ;;  %v543_v25 = vld [vmem:[%s680_s3 + $0x10] sm:$0xff]  }
   0x9   :  { %499 = vmatpush3.bf16.msra.mxu1 %v536_v15  ;;  %v533_v21 = vld [vmem:[%s679_s0] ss:$12 sps:$4 sm:$0xff]   ;;  %v541_v23 = vld [vmem:[%s679_s0 + $0x18] ss:$12 sps:$4 sm:$0xff]  }
   0xa   :  { %504 = vmatprep.subr.bf16.mxu1 %v542_v24  ;;  %v544_v26 = vld [vmem:[%s680_s3 + $0x8] sm:$0xff]   ;;  %v545_v27 = vld [vmem:[%s680_s3] sm:$0xff]  }
   0xb   :  { %463 = vmatpush3.bf16.msra.mxu0 %v521_v5  ;;  %v424_v32 = vld [vmem:[%s681_s2] ss:$0 sm:$0xff] }
   0xc   :  { %464 = vmatprep.subr.bf16.mxu0 %v522_v6  ;;  %501 = vmatmul.mubr.msk.bf16.vlgmr.msra.gmra.mxu1 %vm210_vm0, %v538_v17  ;;  %v451_v59 = vld [vmem:[%s682_s4] ss:$0 sm:$0xff] }
   0xd   :  { %505 = vmatpush3.bf16.msra.mxu1 %v542_v24 }
   0xe   :  { %506 = vmatprep.subr.bf16.mxu1 %v543_v25 }
   0xf   :  { %465 = vmatpush3.bf16.msra.mxu0 %v523_v7 }
  0x10   :  { %466 = vmatprep.subr.bf16.mxu0 %v524_v8 }
  0x11   :  { %507 = vmatpush3.bf16.msra.mxu1 %v543_v25 }
  0x12   :  { %508 = vmatprep.subr.bf16.mxu1 %v544_v26 }
  0x13   :  { %467 = vmatpush3.bf16.msra.mxu0 %v525_v9 }
  0x14   :  { %468 = vmatprep.subr.bf16.mxu0 %v526_v11 }
  0x15   :  { %509 = vmatpush3.bf16.msra.mxu1 %v544_v26 }
  0x16   :  { %510 = vmatprep.subr.bf16.mxu1 %v545_v27 }
  0x17   :  { %469 = vmatpush3.bf16.msra.mxu0 %v527_v12 }
  0x18   :  { %470 = vmatprep.subr.bf16.mxu0 %v528_v13 }
  0x19   :  { %511 = vmatpush3.bf16.msra.mxu1 %v545_v27 }
  0x1b   :  { %471 = vmatpush3.bf16.msra.mxu0 %v529_v18 }
  0x1c   :  { %472 = vmatprep.subr.bf16.mxu0 %v530_v19 }
  0x1f   :  { %473 = vmatpush3.bf16.msra.mxu0 %v532_v20 }
  0x22   :  { %250 = vmatmul.mubr.bf16.vlgmr.msra.gmra.mxu0 %v533_v21 }
  0x23   :  { %257 = vmatprep.mubr.bf16.mxu0 %v539_v22 }
  0x2a   :  { %258 = vmatmul.mubr.bf16.gmra.mxu0 %v541_v23 }
  0xcc   :  { %v502_v28 = vpop.f32.mrf.mxu1 }
  0xce   :  { %v300_v30 = vpop.f32.mrf.mxu1 }
  0xd0   :  { %v503_v35 = vpop.f32.mrf.mxu1 }
  0xd2   :  { %v303_v40 = vpop.f32.mrf.mxu1 }
  0xe2   :  { %v474_v29 = vpop.f32.mrf.mxu0 }
  0xe4   :  { %v475_v31 = vpop.f32.mrf.mxu0 }
  0xe5   :  { %v476_v33 = vadd.f32 %v475_v31, %v474_v29 }
  0xe6   :  { %v477_v34 = vpop.f32.mrf.mxu0 }
  0xe7   :  { %v252_v36 = vadd.f32 %v476_v33, %v424_v32 }
  0xe8   :  { %v478_v37 = vpop.f32.mrf.mxu0 }
  0xe9   :  { %v479_v38 = vadd.f32 %v478_v37, %v477_v34  ;;  %v301_v41 = vadd.f32 %v300_v30, %v252_v36 }
  0xea   :  { %v480_v39 = vpop.f32.mrf.mxu0 }
  0xeb   :  { %v255_v42 = vadd.f32 %v479_v38, %v424_v32  ;;  %v315_v47 = vmax.f32 %v301_v41, 0.0 }
  0xec   :  { %v481_v43 = vpop.f32.mrf.mxu0 }
  0xed   :  { %v482_v44 = vadd.f32 %v481_v43, %v480_v39  ;;  %v304_v45 = vadd.f32 %v303_v40, %v255_v42 }
  0xee   :  { %v483_v46 = vpop.f32.mrf.mxu0 }
  0xef   :  { %v260_v48 = vadd.f32 %v482_v44, %v424_v32  ;;  %v316_v49 = vmax.f32 %v304_v45, 0.0 }
  0xf0   :  { %v484_v50 = vpop.f32.mrf.mxu0 }
  0xf1   :  { %v319_v51 = vpack.c.bf16 %v316_v49, %v315_v47  ;;  %v485_v52 = vadd.f32 %v484_v50, %v483_v46  ;;  %v309_v53 = vadd.f32 %v502_v28, %v260_v48 }
  0xf3   :  { %v263_v54 = vadd.f32 %v485_v52, %v424_v32  ;;  %512 = vmatprep.mubr.msk.bf16.mxu1 %vm360_vm1, %v319_v51  ;;  %v317_v56 = vmax.f32 %v309_v53, 0.0 }
  0xf5   :  { %v312_v55 = vadd.f32 %v503_v35, %v263_v54 }
  0xf7   :  { %v318_v57 = vmax.f32 %v312_v55, 0.0 }
  0xf9   :  { %v320_v58 = vpack.c.bf16 %v318_v57, %v317_v56 }
  0xfb   :  { %513 = vmatmul.mubr.msk.bf16.vlgmr.msra.gmra.mxu1 %vm360_vm1, %v320_v58 }
 0x1bb   :  { %v514_v60 = vpop.f32.mrf.mxu1 }
 0x1bc   :  { %v410_v61 = vadd.f32 %v514_v60, %v451_v59 }
 0x1bd   :  { %v401_v62 = vpop.f32.mrf.mxu1 }
 0x1be   :  { %418 = vst [vmem:[%s683_s5 + $0x10] sm:$0xff] %v410_v61  ;;  %v402_v63 = vadd.f32 %v451_v59, %v401_v62 }
 0x1bf   :  { %v515_v0 = vpop.f32.mrf.mxu1 }
 0x1c0   :  { %416 = vst [vmem:[%s683_s5] sm:$0xff] %v402_v63  ;;  %v413_v1 = vadd.f32 %v515_v0, %v451_v59 }
 0x1c1   :  { %v404_v2 = vpop.f32.mrf.mxu1 }
 0x1c2   :  { %419 = vst [vmem:[%s683_s5 + $0x18] sm:$0xff] %v413_v1  ;;  %v405_v3 = vadd.f32 %v451_v59, %v404_v2 }
 0x1c4   :  { %417 = vst [vmem:[%s683_s5 + $0x8] sm:$0xff] %v405_v3 }

// kernel: faster_rcnn_forward.6
= control target key start
LH: loop header
LB: loop body
LE: loop exit
PB: predicated region body
PF: predicated region fallthrough
CT: control target
= control target key end

     0   :  { %s3018_s11 = smov 0   ;;  %s3747_s0 = inlined_call_operand.vmem [shape: bf16[784,32], index: 0, kind: input, shape index: {}]   ;;  %s3748_s1 = inlined_call_operand.vmem [shape: f32[8,392], index: 1, kind: input, shape index: {}]   ;;  %s3749_s2 = inlined_call_operand.vmem [shape: bf16[32,16], index: 2, kind: input, shape index: {}]   ;;  %s3750_s3 = inlined_call_operand.vmem [shape: f32[1,16], index: 3, kind: input, shape index: {}]   ;;  %s3751_s4 = inlined_call_operand.vmem [shape: bf16[16,16], index: 4, kind: input, shape index: {}]   ;;  %s3752_s5 = inlined_call_operand.vmem [shape: f32[1,16], index: 5, kind: input, shape index: {}]   ;;  %s3753_s6 = inlined_call_operand.vmem [shape: bf16[16,1], index: 6, kind: input, shape index: {}]   ;;  %s3754_s7 = inlined_call_operand.<no memory space> [shape: f32[1,1], index: 7, kind: input, shape index: {}]   ;;  %s3755_s8 = inlined_call_operand.vmem [shape: f32[784,1], index: 8, kind: output, shape index: {0}]   ;;  %s3756_s9 = inlined_call_operand.vmem [shape: f32[16,1], index: 9, kind: output, shape index: {1}]  }
   0x1   :  { %v15_v0 = vstv %s3754_s7 }
   0x2   :  { %16 = vst [vmem:[#allocation2] sm:$0x1] %v15_v0 }
   0x3 LB: > { %s3024_s12 = sadd.s32 4294967295, %s2961_s11   ;;  %p2181_p0 = scmp.ge.s32.totalorder %s2961_s11, 1  ;;  %s2961_s11 = sphi %s3018_s11, %s22_s11  }
   0x4   : > { %p293_p1 = scmp.lt.s32.totalorder %s2961_s11, 3 }
   0x6   : > { %p294_p2 = pnand %p2181_p0, %p293_p1 }
   0x7   : > { %s333_s16 = smul.u32 (!%p294_p2), 49, %s3024_s12  ;;  %p345_p4 = scmp.lt.s32.totalorder (!%p294_p2), %s3024_s12, 1 }
   0x8   : > { %297 = sbr.rel (%p294_p2) target bundleno = 1075 (0x433), region = 52 }
   0x9   : > { %p334_p3 = scmp.lt.s32.totalorder (!%p294_p2), %s333_s16, 97 }
   0xd   : > { %v2729_v1 = vld [vmem:[%s3749_s2 + $0x8] sm:$0xff]   ;;  %v2963_v2 = vmov 0.0   ;;  %v2730_v3 = vld [vmem:[%s3749_s2] sm:$0xff]   ;;  %vm2964_vm0 = vmmov 0   ;;  %s3758_s16 = smov (!%p334_p3, %s333_s16), 97  ;;  %vm545_vm1 = vcmask 261120  }
   0xe   : > { %2409 = vmatprep.subr.bf16.mxu0 %v2963_v2  ;;  %2717 = vmatprep.subr.bf16.mxu1 %v2963_v2  ;;  %v2733_v4 = vld [vmem:[%s3751_s4] sm:$0xff]   ;;  %s2182_s19 = sshll.u32 %s3758_s16, 2  ;;  %vm942_vm2 = vcmask 130048   ;;  %s2183_s29 = sshll.u32 %s3758_s16, 3  ;;  %vm1891_vm3 = vcmask 7168   ;;  %vm1945_vm4 = vcmask 64512  }
   0xf   : > { %2410 = vmatpush3.bf16.msra.mxu0 %v2729_v1  ;;  %2413 = vmatprep.mubr.msk.bf16.mxu0 %vm2964_vm0, %v2963_v2  ;;  %s3053_s22 = scalar_lea.vmem %s3747_s0, %s2182_s19  ;;  %v3155_v30 = vld [vmem:[%s3750_s3] ss:$0 sm:$0xff]  ;;  %s3427_s13 = scalar_lea.vmem %s3755_s8, %s2183_s29 }
  0x10   : > { %2411 = vmatprep.subr.bf16.mxu0 %v2963_v2  ;;  %2551 = vmatprep.mubr.msk.bf16.mxu1 %vm2964_vm0, %v2963_v2  ;;  %v2731_v5 = vld [vmem:[%s3053_s22] sm:$0xff]   ;;  %v2732_v6 = vld [vmem:[%s3053_s22 + $0x8] sm:$0xff]   ;;  %v2734_v7 = vld [vmem:[%s3053_s22 + $0x10] sm:$0xff]   ;;  %s3760_s12 = smov (!%p345_p4, %s3024_s12), 1 }
  0x11   : > { %2718 = vmatpush3.bf16.msra.mxu1 %v2733_v4  ;;  %v2735_v8 = vld [vmem:[%s3053_s22 + $0x18] sm:$0xff]   ;;  %v2736_v9 = vld [vmem:[%s3053_s22 + $0x20] sm:$0xff]   ;;  %v2737_v10 = vld [vmem:[%s3053_s22 + $0x28] sm:$0xff]   ;;  %s2184_s21 = sshll.u32 %s3760_s12, 3 }
  0x12   : > { %2615 = vmatprep.subr.bf16.mxu1 %v2963_v2  ;;  %v2738_v11 = vld [vmem:[%s3053_s22 + $0x30] sm:$0xff]   ;;  %v2739_v12 = vld [vmem:[%s3053_s22 + $0x38] sm:$0xff]   ;;  %v2740_v13 = vld [vmem:[%s3053_s22 + $0x40] sm:$0xff]   ;;  %s348_s24 = scalar_lea.vmem %s3756_s9, %s2184_s21 }
  0x13   : > { %2412 = vmatpush3.bf16.msra.mxu0 %v2730_v3  ;;  %v2741_v14 = vld [vmem:[%s3053_s22 + $0x48] sm:$0xff]   ;;  %v2742_v15 = vld [vmem:[%s3053_s22 + $0x50] sm:$0xff]   ;;  %v2743_v16 = vld [vmem:[%s3053_s22 + $0x58] sm:$0xff]  }
  0x14   : > { %2513 = vmatprep.subr.bf16.mxu0 %v2963_v2  ;;  %v2744_v17 = vld [vmem:[%s3053_s22 + $0x60] sm:$0xff]   ;;  %v2745_v18 = vld [vmem:[%s3053_s22 + $0x68] sm:$0xff]   ;;  %v2746_v19 = vld [vmem:[%s3053_s22 + $0x70] sm:$0xff]  }
  0x15   : > { %v2747_v20 = vld [vmem:[%s3053_s22 + $0x78] sm:$0xff]   ;;  %v2748_v21 = vld [vmem:[%s3053_s22 + $0x80] sm:$0xff]   ;;  %v2749_v22 = vld [vmem:[%s3053_s22 + $0x88] sm:$0xff]  }
  0x16   : > { %2414 = vmatmul.mubr.msk.bf16.vlgmr.msra.gmra.mxu0 %vm545_vm1, %v2731_v5  ;;  %v2750_v23 = vld [vmem:[%s3053_s22 + $0x90] sm:$0xff]   ;;  %v2751_v24 = vld [vmem:[%s3053_s22 + $0x98] sm:$0xff]   ;;  %v2752_v25 = vld [vmem:[%s3053_s22 + $0xa0] sm:$0xff]  }
  0x17   : > { %2417 = vmatprep.mubr.msk.bf16.mxu0 %vm2964_vm0, %v2963_v2  ;;  %2514 = vmatpush3.bf16.msra.mxu0 %v2733_v4  ;;  %v2753_v26 = vld [vmem:[%s3053_s22 + $0xa8] sm:$0xff]   ;;  %v2754_v27 = vld [vmem:[%s3053_s22 + $0xb0] sm:$0xff]   ;;  %v2755_v28 = vld [vmem:[%s3053_s22 + $0xb8] sm:$0xff]  }
  0x18   : > { %v2756_v29 = vld [vmem:[%s3053_s22 + $0xc0] ss:$0 sps:$4 sm:$0xff]  }
  0x1e   : > { %2418 = vmatmul.mubr.msk.bf16.gmra.mxu0 %vm545_vm1, %v2732_v6 }
  0x1f   : > { %2421 = vmatprep.mubr.msk.bf16.mxu0 %vm2964_vm0, %v2963_v2 }
  0x26   : > { %2422 = vmatmul.mubr.msk.bf16.gmra.mxu0 %vm545_vm1, %v2734_v7 }
  0x27   : > { %2425 = vmatprep.mubr.msk.bf16.mxu0 %vm2964_vm0, %v2963_v2 }
  0x2e   : > { %2426 = vmatmul.mubr.msk.bf16.gmra.mxu0 %vm545_vm1, %v2735_v8 }
  0x2f   : > { %2429 = vmatprep.mubr.msk.bf16.mxu0 %vm2964_vm0, %v2963_v2 }
  0x36   : > { %2430 = vmatmul.mubr.msk.bf16.gmra.mxu0 %vm545_vm1, %v2736_v9 }
  0x37   : > { %2433 = vmatprep.mubr.msk.bf16.mxu0 %vm2964_vm0, %v2963_v2 }
  0x3e   : > { %2434 = vmatmul.mubr.msk.bf16.gmra.mxu0 %vm545_vm1, %v2737_v10 }
  0x3f   : > { %2437 = vmatprep.mubr.msk.bf16.mxu0 %vm2964_vm0, %v2963_v2 }
  0x46   : > { %2438 = vmatmul.mubr.msk.bf16.gmra.mxu0 %vm545_vm1, %v2738_v11 }
  0x47   : > { %2441 = vmatprep.mubr.msk.bf16.mxu0 %vm2964_vm0, %v2963_v2 }
  0x4e   : > { %2442 = vmatmul.mubr.msk.bf16.gmra.mxu0 %vm545_vm1, %v2739_v12 }
  0x4f   : > { %2445 = vmatprep.mubr.msk.bf16.mxu0 %vm2964_vm0, %v2963_v2 }
  0x56   : > { %2446 = vmatmul.mubr.msk.bf16.gmra.mxu0 %vm545_vm1, %v2740_v13 }
  0x57   : > { %2449 = vmatprep.mubr.msk.bf16.mxu0 %vm2964_vm0, %v2963_v2 }
  0x5e   : > { %2450 = vmatmul.mubr.msk.bf16.gmra.mxu0 %vm545_vm1, %v2741_v14 }
  0x5f   : > { %2453 = vmatprep.mubr.msk.bf16.mxu0 %vm2964_vm0, %v2963_v2 }
  0x66   : > { %2454 = vmatmul.mubr.msk.bf16.gmra.mxu0 %vm545_vm1, %v2742_v15 }
  0x67   : > { %2457 = vmatprep.mubr.msk.bf16.mxu0 %vm2964_vm0, %v2963_v2 }
  0x6e   : > { %2458 = vmatmul.mubr.msk.bf16.gmra.mxu0 %vm545_vm1, %v2743_v16 }
  0x6f   : > { %2461 = vmatprep.mubr.msk.bf16.mxu0 %vm2964_vm0, %v2963_v2 }
  0x76   : > { %2462 = vmatmul.mubr.msk.bf16.gmra.mxu0 %vm545_vm1, %v2744_v17 }
  0x77   : > { %2465 = vmatprep.mubr.msk.bf16.mxu0 %vm2964_vm0, %v2963_v2 }
  0x7e   : > { %2466 = vmatmul.mubr.msk.bf16.gmra.mxu0 %vm545_vm1, %v2745_v18 }
  0x7f   : > { %2469 = vmatprep.mubr.msk.bf16.mxu0 %vm2964_vm0, %v2963_v2 }
  0x86   : > { %2470 = vmatmul.mubr.msk.bf16.gmra.mxu0 %vm545_vm1, %v2746_v19 }
  0x87   : > { %2473 = vmatprep.mubr.msk.bf16.mxu0 %vm2964_vm0, %v2963_v2 }
  0x8e   : > { %2474 = vmatmul.mubr.msk.bf16.gmra.mxu0 %vm545_vm1, %v2747_v20 }
  0x8f   : > { %2477 = vmatprep.mubr.msk.bf16.mxu0 %vm2964_vm0, %v2963_v2 }
  0x96   : > { %2478 = vmatmul.mubr.msk.bf16.gmra.mxu0 %vm545_vm1, %v2748_v21 }
  0x97   : > { %2481 = vmatprep.mubr.msk.bf16.mxu0 %vm2964_vm0, %v2963_v2 }
  0x9e   : > { %2482 = vmatmul.mubr.msk.bf16.gmra.mxu0 %vm545_vm1, %v2749_v22 }
  0x9f   : > { %2485 = vmatprep.mubr.msk.bf16.mxu0 %vm2964_vm0, %v2963_v2 }
  0xa6   : > { %2486 = vmatmul.mubr.msk.bf16.gmra.mxu0 %vm545_vm1, %v2750_v23 }
  0xa7   : > { %2489 = vmatprep.mubr.msk.bf16.mxu0 %vm2964_vm0, %v2963_v2 }
  0xae   : > { %2490 = vmatmul.mubr.msk.bf16.gmra.mxu0 %vm545_vm1, %v2751_v24 }
  0xaf   : > { %2493 = vmatprep.mubr.msk.bf16.mxu0 %vm2964_vm0, %v2963_v2 }
  0xb6   : > { %2494 = vmatmul.mubr.msk.bf16.gmra.mxu0 %vm545_vm1, %v2752_v25 }
  0xb7   : > { %2497 = vmatprep.mubr.msk.bf16.mxu0 %vm2964_vm0, %v2963_v2 }
  0xbe   : > { %2498 = vmatmul.mubr.msk.bf16.gmra.mxu0 %vm545_vm1, %v2753_v26 }
  0xbf   : > { %2501 = vmatprep.mubr.msk.bf16.mxu0 %vm2964_vm0, %v2963_v2 }
  0xc6   : > { %2502 = vmatmul.mubr.msk.bf16.gmra.mxu0 %vm545_vm1, %v2754_v27 }
  0xc7   : > { %2505 = vmatprep.mubr.msk.bf16.mxu0 %vm2964_vm0, %v2963_v2 }
  0xce   : > { %2506 = vmatmul.mubr.msk.bf16.gmra.mxu0 %vm545_vm1, %v2755_v28 }
  0xcf   : > { %2509 = vmatprep.mubr.msk.bf16.mxu0 %vm2964_vm0, %v2963_v2 }
  0xd6   : > { %v655_v31 = vpop.f32.mrf.mxu0  ;;  %2510 = vmatmul.mubr.msk.bf16.gmra.mxu0 %vm545_vm1, %v2756_v29 }
  0xd7   : > { %2515 = vmatprep.mubr.msk.bf16.mxu0 %vm2964_vm0, %v2963_v2  ;;  %v656_v33 = vadd.f32 %v3155_v30, %v655_v31 }
  0xd8   : > { %v2415_v32 = vpop.f32.mrf.mxu0 }
  0xd9   : > { %v853_v37 = vmax.f32 %v656_v33, 0.0 }
  0xda   : > { %v658_v34 = vpop.f32.mrf.mxu0 }
  0xdb   : > { %v659_v35 = vadd.f32 %v3155_v30, %v658_v34 }
  0xdc   : > { %v2416_v36 = vpop.f32.mrf.mxu0 }
  0xdd   : > { %v854_v38 = vmax.f32 %v659_v35, 0.0 }
  0xde   : > { %v663_v39 = vpop.f32.mrf.mxu0 }
  0xdf   : > { %v902_v40 = vpack.c.bf16 %v854_v38, %v853_v37  ;;  %v664_v42 = vadd.f32 %v3155_v30, %v663_v39 }
  0xe0   : > { %v2419_v41 = vpop.f32.mrf.mxu0 }
  0xe1   : > { %2516 = vmatmul.mubr.msk.bf16.vlgmr.msra.gmra.mxu0 %vm942_vm2, %v902_v40  ;;  %v855_v46 = vmax.f32 %v664_v42, 0.0 }
  0xe2   : > { %v666_v43 = vpop.f32.mrf.mxu0  ;;  %2519 = vmatprep.mubr.msk.bf16.mxu0 %vm2964_vm0, %v2963_v2 }
  0xe3   : > { %v667_v44 = vadd.f32 %v3155_v30, %v666_v43 }
  0xe4   : > { %v2420_v45 = vpop.f32.mrf.mxu0 }
  0xe5   : > { %v856_v47 = vmax.f32 %v667_v44, 0.0 }
  0xe6   : > { %v671_v48 = vpop.f32.mrf.mxu0 }
  0xe7   : > { %v903_v49 = vpack.c.bf16 %v856_v47, %v855_v46  ;;  %v672_v51 = vadd.f32 %v3155_v30, %v671_v48 }
  0xe8   : > { %v2423_v50 = vpop.f32.mrf.mxu0 }
  0xe9   : > { %2520 = vmatmul.mubr.msk.bf16.gmra.mxu0 %vm942_vm2, %v903_v49  ;;  %v857_v55 = vmax.f32 %v672_v51, 0.0 }
  0xea   : > { %v674_v52 = vpop.f32.mrf.mxu0  ;;  %2523 = vmatprep.mubr.msk.bf16.mxu0 %vm2964_vm0, %v2963_v2 }
  0xeb   : > { %v675_v53 = vadd.f32 %v3155_v30, %v674_v52 }
  0xec   : > { %v2424_v54 = vpop.f32.mrf.mxu0 }
  0xed   : > { %v858_v56 = vmax.f32 %v675_v53, 0.0 }
  0xee   : > { %v679_v57 = vpop.f32.mrf.mxu0 }
  0xef   : > { %v904_v58 = vpack.c.bf16 %v858_v56, %v857_v55  ;;  %v680_v60 = vadd.f32 %v3155_v30, %v679_v57 }
  0xf0   : > { %v2427_v59 = vpop.f32.mrf.mxu0 }
  0xf1   : > { %2524 = vmatmul.mubr.msk.bf16.gmra.mxu0 %vm942_vm2, %v904_v58  ;;  %v859_v0 = vmax.f32 %v680_v60, 0.0  ;;  %v2757_v59 = vld [vmem:[%s3753_s6] sm:$0xff]  }
  0xf2   : > { %v682_v61 = vpop.f32.mrf.mxu0  ;;  %2527 = vmatprep.mubr.msk.bf16.mxu0 %vm2964_vm0, %v2963_v2 }
  0xf3   : > { %v683_v62 = vadd.f32 %v3155_v30, %v682_v61 }
  0xf4   : > { %v2428_v63 = vpop.f32.mrf.mxu0 }
  0xf5   : > { %v860_v1 = vmax.f32 %v683_v62, 0.0 }
  0xf6   : > { %v687_v3 = vpop.f32.mrf.mxu0 }
  0xf7   : > { %v905_v4 = vpack.c.bf16 %v860_v1, %v859_v0  ;;  %v688_v6 = vadd.f32 %v3155_v30, %v687_v3 }
  0xf8   : > { %v2431_v5 = vpop.f32.mrf.mxu0 }
  0xf9   : > { %2528 = vmatmul.mubr.msk.bf16.gmra.mxu0 %vm942_vm2, %v905_v4  ;;  %v861_v10 = vmax.f32 %v688_v6, 0.0 }
  0xfa   : > { %v690_v7 = vpop.f32.mrf.mxu0  ;;  %2531 = vmatprep.mubr.msk.bf16.mxu0 %vm2964_vm0, %v2963_v2 }
  0xfb   : > { %v691_v8 = vadd.f32 %v3155_v30, %v690_v7 }
  0xfc   : > { %v2432_v9 = vpop.f32.mrf.mxu0 }
  0xfd   : > { %v862_v11 = vmax.f32 %v691_v8, 0.0 }
  0xfe   : > { %v695_v12 = vpop.f32.mrf.mxu0 }
  0xff   : > { %v906_v13 = vpack.c.bf16 %v862_v11, %v861_v10  ;;  %v696_v15 = vadd.f32 %v3155_v30, %v695_v12 }
 0x100   : > { %v2435_v14 = vpop.f32.mrf.mxu0 }
 0x101   : > { %2532 = vmatmul.mubr.msk.bf16.gmra.mxu0 %vm942_vm2, %v906_v13  ;;  %v863_v19 = vmax.f32 %v696_v15, 0.0 }
 0x102   : > { %v698_v16 = vpop.f32.mrf.mxu0  ;;  %2535 = vmatprep.mubr.msk.bf16.mxu0 %vm2964_vm0, %v2963_v2 }
 0x103   : > { %v699_v17 = vadd.f32 %v3155_v30, %v698_v16 }
 0x104   : > { %v2436_v18 = vpop.f32.mrf.mxu0 }
 0x105   : > { %v864_v20 = vmax.f32 %v699_v17, 0.0 }
 0x106   : > { %v703_v21 = vpop.f32.mrf.mxu0 }
 0x107   : > { %v907_v22 = vpack.c.bf16 %v864_v20, %v863_v19  ;;  %v704_v24 = vadd.f32 %v3155_v30, %v703_v21 }
 0x108   : > { %v2439_v23 = vpop.f32.mrf.mxu0 }
 0x109   : > { %2536 = vmatmul.mubr.msk.bf16.gmra.mxu0 %vm942_vm2, %v907_v22  ;;  %v865_v28 = vmax.f32 %v704_v24, 0.0 }
 0x10a   : > { %v706_v25 = vpop.f32.mrf.mxu0  ;;  %2539 = vmatprep.mubr.msk.bf16.mxu0 %vm2964_vm0, %v2963_v2 }
 0x10b   : > { %v707_v26 = vadd.f32 %v3155_v30, %v706_v25 }
 0x10c   : > { %v2440_v27 = vpop.f32.mrf.mxu0 }
 0x10d   : > { %v866_v29 = vmax.f32 %v707_v26, 0.0 }
 0x10e   : > { %v711_v31 = vpop.f32.mrf.mxu0 }
 0x10f   : > { %v908_v32 = vpack.c.bf16 %v866_v29, %v865_v28  ;;  %v712_v34 = vadd.f32 %v3155_v30, %v711_v31 }
 0x110   : > { %v2443_v33 = vpop.f32.mrf.mxu0 }
 0x111   : > { %2540 = vmatmul.mubr.msk.bf16.gmra.mxu0 %vm942_vm2, %v908_v32  ;;  %v867_v38 = vmax.f32 %v712_v34, 0.0 }
 0x112   : > { %v714_v35 = vpop.f32.mrf.mxu0  ;;  %2543 = vmatprep.mubr.msk.bf16.mxu0 %vm2964_vm0, %v2963_v2 }
 0x113   : > { %v715_v36 = vadd.f32 %v3155_v30, %v714_v35 }
 0x114   : > { %v2444_v37 = vpop.f32.mrf.mxu0 }
 0x115   : > { %v868_v39 = vmax.f32 %v715_v36, 0.0 }
 0x116   : > { %v719_v40 = vpop.f32.mrf.mxu0 }
 0x117   : > { %v909_v41 = vpack.c.bf16 %v868_v39, %v867_v38  ;;  %v720_v43 = vadd.f32 %v3155_v30, %v719_v40 }
 0x118   : > { %v2447_v42 = vpop.f32.mrf.mxu0 }
 0x119   : > { %2544 = vmatmul.mubr.msk.bf16.gmra.mxu0 %vm942_vm2, %v909_v41  ;;  %v869_v47 = vmax.f32 %v720_v43, 0.0 }
 0x11a   : > { %v722_v44 = vpop.f32.mrf.mxu0  ;;  %2547 = vmatprep.mubr.msk.bf16.mxu0 %vm2964_vm0, %v2963_v2 }
 0x11b   : > { %v723_v45 = vadd.f32 %v3155_v30, %v722_v44 }
 0x11c   : > { %v2448_v46 = vpop.f32.mrf.mxu0 }
 0x11d   : > { %v870_v48 = vmax.f32 %v723_v45, 0.0 }
 0x11e   : > { %v727_v49 = vpop.f32.mrf.mxu0 }
 0x11f   : > { %v910_v50 = vpack.c.bf16 %v870_v48, %v869_v47  ;;  %v728_v52 = vadd.f32 %v3155_v30, %v727_v49 }
 0x120   : > { %v2451_v51 = vpop.f32.mrf.mxu0 }
 0x121   : > { %2548 = vmatmul.mubr.msk.bf16.gmra.mxu0 %vm942_vm2, %v910_v50  ;;  %v871_v56 = vmax.f32 %v728_v52, 0.0 }
 0x122   : > { %v730_v53 = vpop.f32.mrf.mxu0 }
 0x123   : > { %v731_v54 = vadd.f32 %v3155_v30, %v730_v53 }
 0x124   : > { %v2452_v55 = vpop.f32.mrf.mxu0 }
 0x125   : > { %v872_v57 = vmax.f32 %v731_v54, 0.0 }
 0x126   : > { %v735_v58 = vpop.f32.mrf.mxu0 }
 0x127   : > { %v911_v60 = vpack.c.bf16 %v872_v57, %v871_v56  ;;  %v736_v62 = vadd.f32 %v3155_v30, %v735_v58 }
 0x128   : > { %v2455_v61 = vpop.f32.mrf.mxu0 }
 0x129   : > { %2552 = vmatmul.mubr.msk.bf16.vlgmr.msra.gmra.mxu1 %vm942_vm2, %v911_v60  ;;  %v873_v3 = vmax.f32 %v736_v62, 0.0 }
 0x12a   : > { %v738_v63 = vpop.f32.mrf.mxu0  ;;  %2555 = vmatprep.mubr.msk.bf16.mxu1 %vm2964_vm0, %v2963_v2  ;;  %2616 = vmatpush3.bf16.msra.mxu1 %v2757_v59 }
 0x12b   : > { %v739_v0 = vadd.f32 %v3155_v30, %v738_v63 }
 0x12c   : > { %v2456_v1 = vpop.f32.mrf.mxu0 }
 0x12d   : > { %v874_v4 = vmax.f32 %v739_v0, 0.0 }
 0x12e   : > { %v743_v5 = vpop.f32.mrf.mxu0 }
 0x12f   : > { %v912_v6 = vpack.c.bf16 %v874_v4, %v873_v3  ;;  %v744_v8 = vadd.f32 %v3155_v30, %v743_v5 }
 0x130   : > { %v2459_v7 = vpop.f32.mrf.mxu0 }
 0x131   : > { %2556 = vmatmul.mubr.msk.bf16.gmra.mxu1 %vm942_vm2, %v912_v6  ;;  %v875_v12 = vmax.f32 %v744_v8, 0.0 }
 0x132   : > { %v746_v9 = vpop.f32.mrf.mxu0  ;;  %2559 = vmatprep.mubr.msk.bf16.mxu1 %vm2964_vm0, %v2963_v2 }
 0x133   : > { %v747_v10 = vadd.f32 %v3155_v30, %v746_v9 }
 0x134   : > { %v2460_v11 = vpop.f32.mrf.mxu0 }
 0x135   : > { %v876_v13 = vmax.f32 %v747_v10, 0.0 }
 0x136   : > { %v751_v14 = vpop.f32.mrf.mxu0 }
 0x137   : > { %v913_v15 = vpack.c.bf16 %v876_v13, %v875_v12  ;;  %v752_v17 = vadd.f32 %v3155_v30, %v751_v14 }
 0x138   : > { %v2463_v16 = vpop.f32.mrf.mxu0 }
 0x139   : > { %2560 = vmatmul.mubr.msk.bf16.gmra.mxu1 %vm942_vm2, %v913_v15  ;;  %v877_v21 = vmax.f32 %v752_v17, 0.0 }
 0x13a   : > { %v754_v18 = vpop.f32.mrf.mxu0  ;;  %2563 = vmatprep.mubr.msk.bf16.mxu1 %vm2964_vm0, %v2963_v2 }
 0x13b   : > { %v755_v19 = vadd.f32 %v3155_v30, %v754_v18 }
 0x13c   : > { %v2464_v20 = vpop.f32.mrf.mxu0 }
 0x13d   : > { %v878_v22 = vmax.f32 %v755_v19, 0.0 }
 0x13e   : > { %v759_v23 = vpop.f32.mrf.mxu0 }
 0x13f   : > { %v914_v24 = vpack.c.bf16 %v878_v22, %v877_v21  ;;  %v760_v26 = vadd.f32 %v3155_v30, %v759_v23 }
 0x140   : > { %v2467_v25 = vpop.f32.mrf.mxu0 }
 0x141   : > { %2564 = vmatmul.mubr.msk.bf16.gmra.mxu1 %vm942_vm2, %v914_v24  ;;  %v879_v31 = vmax.f32 %v760_v26, 0.0 }
 0x142   : > { %v762_v27 = vpop.f32.mrf.mxu0  ;;  %2567 = vmatprep.mubr.msk.bf16.mxu1 %vm2964_vm0, %v2963_v2 }
 0x143   : > { %v763_v28 = vadd.f32 %v3155_v30, %v762_v27 }
 0x144   : > { %v2468_v29 = vpop.f32.mrf.mxu0 }
 0x145   : > { %v880_v32 = vmax.f32 %v763_v28, 0.0 }
 0x146   : > { %v767_v33 = vpop.f32.mrf.mxu0 }
 0x147   : > { %v915_v34 = vpack.c.bf16 %v880_v32, %v879_v31  ;;  %v768_v36 = vadd.f32 %v3155_v30, %v767_v33 }
 0x148   : > { %v2471_v35 = vpop.f32.mrf.mxu0 }
 0x149   : > { %2568 = vmatmul.mubr.msk.bf16.gmra.mxu1 %vm942_vm2, %v915_v34  ;;  %v881_v40 = vmax.f32 %v768_v36, 0.0 }
 0x14a   : > { %v770_v37 = vpop.f32.mrf.mxu0  ;;  %2571 = vmatprep.mubr.msk.bf16.mxu1 %vm2964_vm0, %v2963_v2 }
 0x14b   : > { %v771_v38 = vadd.f32 %v3155_v30, %v770_v37 }
 0x14c   : > { %v2472_v39 = vpop.f32.mrf.mxu0 }
 0x14d   : > { %v882_v41 = vmax.f32 %v771_v38, 0.0 }
 0x14e   : > { %v775_v42 = vpop.f32.mrf.mxu0 }
 0x14f   : > { %v916_v43 = vpack.c.bf16 %v882_v41, %v881_v40  ;;  %v776_v45 = vadd.f32 %v3155_v30, %v775_v42 }
 0x150   : > { %v2475_v44 = vpop.f32.mrf.mxu0 }
 0x151   : > { %2572 = vmatmul.mubr.msk.bf16.gmra.mxu1 %vm942_vm2, %v916_v43  ;;  %v883_v49 = vmax.f32 %v776_v45, 0.0 }
 0x152   : > { %v778_v46 = vpop.f32.mrf.mxu0  ;;  %2575 = vmatprep.mubr.msk.bf16.mxu1 %vm2964_vm0, %v2963_v2 }
 0x153   : > { %v779_v47 = vadd.f32 %v3155_v30, %v778_v46 }
 0x154   : > { %v2476_v48 = vpop.f32.mrf.mxu0 }
 0x155   : > { %v884_v50 = vmax.f32 %v779_v47, 0.0 }
 0x156   : > { %v783_v51 = vpop.f32.mrf.mxu0 }
 0x157   : > { %v917_v52 = vpack.c.bf16 %v884_v50, %v883_v49  ;;  %v784_v54 = vadd.f32 %v3155_v30, %v783_v51 }
 0x158   : > { %v2479_v53 = vpop.f32.mrf.mxu0 }
 0x159   : > { %2576 = vmatmul.mubr.msk.bf16.gmra.mxu1 %vm942_vm2, %v917_v52  ;;  %v885_v58 = vmax.f32 %v784_v54, 0.0 }
 0x15a   : > { %v786_v55 = vpop.f32.mrf.mxu0  ;;  %2579 = vmatprep.mubr.msk.bf16.mxu1 %vm2964_vm0, %v2963_v2 }
 0x15b   : > { %v787_v56 = vadd.f32 %v3155_v30, %v786_v55 }
 0x15c   : > { %v2480_v57 = vpop.f32.mrf.mxu0 }
 0x15d   : > { %v886_v59 = vmax.f32 %v787_v56, 0.0 }
 0x15e   : > { %v791_v60 = vpop.f32.mrf.mxu0 }
 0x15f   : > { %v918_v61 = vpack.c.bf16 %v886_v59, %v885_v58  ;;  %v792_v63 = vadd.f32 %v3155_v30, %v791_v60 }
 0x160   : > { %v2483_v62 = vpop.f32.mrf.mxu0 }
 0x161   : > { %2580 = vmatmul.mubr.msk.bf16.gmra.mxu1 %vm942_vm2, %v918_v61  ;;  %v887_v4 = vmax.f32 %v792_v63, 0.0 }
 0x162   : > { %v794_v0 = vpop.f32.mrf.mxu0  ;;  %2583 = vmatprep.mubr.msk.bf16.mxu1 %vm2964_vm0, %v2963_v2 }
 0x163   : > { %v795_v1 = vadd.f32 %v3155_v30, %v794_v0 }
 0x164   : > { %v2484_v3 = vpop.f32.mrf.mxu0 }
 0x165   : > { %v888_v5 = vmax.f32 %v795_v1, 0.0 }
 0x166   : > { %v799_v6 = vpop.f32.mrf.mxu0 }
 0x167   : > { %v919_v7 = vpack.c.bf16 %v888_v5, %v887_v4  ;;  %v800_v9 = vadd.f32 %v3155_v30, %v799_v6  ;;  %v3285_v6 = vld [vmem:[%s3752_s5] ss:$0 sm:$0xff] }
 0x168   : > { %v2487_v8 = vpop.f32.mrf.mxu0 }
 0x169   : > { %2584 = vmatmul.mubr.msk.bf16.gmra.mxu1 %vm942_vm2, %v919_v7  ;;  %v889_v13 = vmax.f32 %v800_v9, 0.0 }
 0x16a   : > { %v802_v10 = vpop.f32.mrf.mxu0  ;;  %2587 = vmatprep.mubr.msk.bf16.mxu1 %vm2964_vm0, %v2963_v2 }
 0x16b   : > { %v803_v11 = vadd.f32 %v3155_v30, %v802_v10 }
 0x16c   : > { %v2488_v12 = vpop.f32.mrf.mxu0 }
 0x16d   : > { %v890_v14 = vmax.f32 %v803_v11, 0.0 }
 0x16e   : > { %v807_v15 = vpop.f32.mrf.mxu0 }
 0x16f   : > { %v920_v16 = vpack.c.bf16 %v890_v14, %v889_v13  ;;  %v808_v18 = vadd.f32 %v3155_v30, %v807_v15 }
 0x170   : > { %v2491_v17 = vpop.f32.mrf.mxu0 }
 0x171   : > { %2588 = vmatmul.mubr.msk.bf16.gmra.mxu1 %vm942_vm2, %v920_v16  ;;  %v891_v22 = vmax.f32 %v808_v18, 0.0 }
 0x172   : > { %v810_v19 = vpop.f32.mrf.mxu0  ;;  %2591 = vmatprep.mubr.msk.bf16.mxu1 %vm2964_vm0, %v2963_v2 }
 0x173   : > { %v811_v20 = vadd.f32 %v3155_v30, %v810_v19 }
 0x174   : > { %v2492_v21 = vpop.f32.mrf.mxu0 }
 0x175   : > { %v892_v23 = vmax.f32 %v811_v20, 0.0 }
 0x176   : > { %v815_v24 = vpop.f32.mrf.mxu0 }
 0x177   : > { %v921_v25 = vpack.c.bf16 %v892_v23, %v891_v22  ;;  %v816_v27 = vadd.f32 %v3155_v30, %v815_v24 }
 0x178   : > { %v2495_v26 = vpop.f32.mrf.mxu0 }
 0x179   : > { %2592 = vmatmul.mubr.msk.bf16.gmra.mxu1 %vm942_vm2, %v921_v25  ;;  %v893_v32 = vmax.f32 %v816_v27, 0.0 }
 0x17a   : > { %v818_v28 = vpop.f32.mrf.mxu0  ;;  %2595 = vmatprep.mubr.msk.bf16.mxu1 %vm2964_vm0, %v2963_v2 }
 0x17b   : > { %v819_v29 = vadd.f32 %v3155_v30, %v818_v28 }
 0x17c   : > { %v2496_v31 = vpop.f32.mrf.mxu0 }
 0x17d   : > { %v894_v33 = vmax.f32 %v819_v29, 0.0 }
 0x17e   : > { %v823_v34 = vpop.f32.mrf.mxu0 }
 0x17f   : > { %v922_v35 = vpack.c.bf16 %v894_v33, %v893_v32  ;;  %v824_v37 = vadd.f32 %v3155_v30, %v823_v34 }
 0x180   : > { %v2499_v36 = vpop.f32.mrf.mxu0 }
 0x181   : > { %2596 = vmatmul.mubr.msk.bf16.gmra.mxu1 %vm942_vm2, %v922_v35  ;;  %v895_v41 = vmax.f32 %v824_v37, 0.0 }
 0x182   : > { %v826_v38 = vpop.f32.mrf.mxu0  ;;  %2599 = vmatprep.mubr.msk.bf16.mxu1 %vm2964_vm0, %v2963_v2 }
 0x183   : > { %v827_v39 = vadd.f32 %v3155_v30, %v826_v38 }
 0x184   : > { %v2500_v40 = vpop.f32.mrf.mxu0 }
 0x185   : > { %v896_v42 = vmax.f32 %v827_v39, 0.0 }
 0x186   : > { %v831_v43 = vpop.f32.mrf.mxu0 }
 0x187   : > { %v923_v44 = vpack.c.bf16 %v896_v42, %v895_v41  ;;  %v832_v46 = vadd.f32 %v3155_v30, %v831_v43 }
 0x188   : > { %v2503_v45 = vpop.f32.mrf.mxu0 }
 0x189   : > { %2600 = vmatmul.mubr.msk.bf16.gmra.mxu1 %vm942_vm2, %v923_v44  ;;  %v897_v50 = vmax.f32 %v832_v46, 0.0 }
 0x18a   : > { %v834_v47 = vpop.f32.mrf.mxu0  ;;  %2603 = vmatprep.mubr.msk.bf16.mxu1 %vm2964_vm0, %v2963_v2 }
 0x18b   : > { %v835_v48 = vadd.f32 %v3155_v30, %v834_v47 }
 0x18c   : > { %v2504_v49 = vpop.f32.mrf.mxu0 }
 0x18d   : > { %v898_v51 = vmax.f32 %v835_v48, 0.0 }
 0x18e   : > { %v839_v52 = vpop.f32.mrf.mxu0 }
 0x18f   : > { %v924_v53 = vpack.c.bf16 %v898_v51, %v897_v50  ;;  %v840_v55 = vadd.f32 %v3155_v30, %v839_v52 }
 0x190   : > { %v2507_v54 = vpop.f32.mrf.mxu0 }
 0x191   : > { %2604 = vmatmul.mubr.msk.bf16.gmra.mxu1 %vm942_vm2, %v924_v53  ;;  %v899_v59 = vmax.f32 %v840_v55, 0.0 }
 0x192   : > { %v842_v56 = vpop.f32.mrf.mxu0  ;;  %2607 = vmatprep.mubr.msk.bf16.mxu1 %vm2964_vm0, %v2963_v2 }
 0x193   : > { %v843_v57 = vadd.f32 %v3155_v30, %v842_v56 }
 0x194   : > { %v2508_v58 = vpop.f32.mrf.mxu0 }
 0x195   : > { %v900_v60 = vmax.f32 %v843_v57, 0.0 }
 0x196   : > { %v847_v61 = vpop.f32.mrf.mxu0 }
 0x197   : > { %v925_v62 = vpack.c.bf16 %v900_v60, %v899_v59  ;;  %v848_v63 = vadd.f32 %v3155_v30, %v847_v61 }
 0x198   : > { %v2511_v0 = vpop.f32.mrf.mxu0 }
 0x199   : > { %v901_v1 = vmax.f32 %v848_v63, 0.0  ;;  %2608 = vmatmul.mubr.msk.bf16.gmra.mxu1 %vm942_vm2, %v925_v62 }
 0x19a   : > { %v850_v3 = vpop.f32.mrf.mxu0  ;;  %2611 = vmatprep.mubr.msk.bf16.mxu1 %vm2964_vm0, %v2963_v2 }
 0x19b   : > { %v926_v5 = vpack.c.bf16 %v901_v1, %v901_v1 }
 0x19c   : > { %v2512_v4 = vpop.f32.mrf.mxu0 }
 0x1a1   : > { %v1052_v7 = vpop.f32.mrf.mxu0  ;;  %2612 = vmatmul.mubr.msk.bf16.gmra.mxu1 %vm942_vm2, %v926_v5 }
 0x1a2   : > { %2617 = vmatprep.mubr.msk.bf16.mxu1 %vm2964_vm0, %v2963_v2  ;;  %v1053_v8 = vadd.f32 %v3285_v6, %v1052_v7 }
 0x1a3   : > { %v2517_v30 = vpop.f32.mrf.mxu0 }
 0x1a4   : > { %v1250_v12 = vmax.f32 %v1053_v8, 0.0 }
 0x1a5   : > { %v1055_v9 = vpop.f32.mrf.mxu0 }
 0x1a6   : > { %v1056_v10 = vadd.f32 %v3285_v6, %v1055_v9 }
 0x1a7   : > { %v2518_v11 = vpop.f32.mrf.mxu0 }
 0x1a8   : > { %v1251_v13 = vmax.f32 %v1056_v10, 0.0 }
 0x1a9   : > { %v1060_v14 = vpop.f32.mrf.mxu0 }
 0x1aa   : > { %v1299_v15 = vpack.c.bf16 %v1251_v13, %v1250_v12  ;;  %v1061_v17 = vadd.f32 %v3285_v6, %v1060_v14 }
 0x1ab   : > { %v2521_v16 = vpop.f32.mrf.mxu0 }
 0x1ac   : > { %2618 = vmatmul.mubr.msk.bf16.vlgmr.msra.gmra.mxu1 %vm942_vm2, %v1299_v15  ;;  %v1252_v21 = vmax.f32 %v1061_v17, 0.0 }
 0x1ad   : > { %v1063_v18 = vpop.f32.mrf.mxu0  ;;  %2621 = vmatprep.mubr.msk.bf16.mxu1 %vm2964_vm0, %v2963_v2 }
 0x1ae   : > { %v1064_v19 = vadd.f32 %v3285_v6, %v1063_v18 }
 0x1af   : > { %v2522_v20 = vpop.f32.mrf.mxu0 }
 0x1b0   : > { %v1253_v22 = vmax.f32 %v1064_v19, 0.0 }
 0x1b1   : > { %v1068_v23 = vpop.f32.mrf.mxu0 }
 0x1b2   : > { %v1300_v24 = vpack.c.bf16 %v1253_v22, %v1252_v21  ;;  %v1069_v26 = vadd.f32 %v3285_v6, %v1068_v23 }
 0x1b3   : > { %v2525_v25 = vpop.f32.mrf.mxu0 }
 0x1b4   : > { %2622 = vmatmul.mubr.msk.bf16.gmra.mxu1 %vm942_vm2, %v1300_v24  ;;  %v1254_v31 = vmax.f32 %v1069_v26, 0.0 }
 0x1b5   : > { %v1071_v27 = vpop.f32.mrf.mxu0  ;;  %2625 = vmatprep.mubr.msk.bf16.mxu1 %vm2964_vm0, %v2963_v2 }
 0x1b6   : > { %v1072_v28 = vadd.f32 %v3285_v6, %v1071_v27 }
 0x1b7   : > { %v2526_v29 = vpop.f32.mrf.mxu0 }
 0x1b8   : > { %v1255_v32 = vmax.f32 %v1072_v28, 0.0 }
 0x1b9   : > { %v1076_v33 = vpop.f32.mrf.mxu0 }
 0x1ba   : > { %v1301_v34 = vpack.c.bf16 %v1255_v32, %v1254_v31  ;;  %v1077_v36 = vadd.f32 %v3285_v6, %v1076_v33 }
 0x1bb   : > { %v2529_v35 = vpop.f32.mrf.mxu0 }
 0x1bc   : > { %2626 = vmatmul.mubr.msk.bf16.gmra.mxu1 %vm942_vm2, %v1301_v34  ;;  %v1256_v40 = vmax.f32 %v1077_v36, 0.0 }
 0x1bd   : > { %v1079_v37 = vpop.f32.mrf.mxu0  ;;  %2629 = vmatprep.mubr.msk.bf16.mxu1 %vm2964_vm0, %v2963_v2 }
 0x1be   : > { %v1080_v38 = vadd.f32 %v3285_v6, %v1079_v37 }
 0x1bf   : > { %v2530_v39 = vpop.f32.mrf.mxu0 }
 0x1c0   : > { %v1257_v41 = vmax.f32 %v1080_v38, 0.0 }
 0x1c1   : > { %v1084_v42 = vpop.f32.mrf.mxu0 }
 0x1c2   : > { %v1302_v43 = vpack.c.bf16 %v1257_v41, %v1256_v40  ;;  %v1085_v45 = vadd.f32 %v3285_v6, %v1084_v42 }
 0x1c3   : > { %v2533_v44 = vpop.f32.mrf.mxu0 }
 0x1c4   : > { %2630 = vmatmul.mubr.msk.bf16.gmra.mxu1 %vm942_vm2, %v1302_v43  ;;  %v1258_v49 = vmax.f32 %v1085_v45, 0.0 }
 0x1c5   : > { %v1087_v46 = vpop.f32.mrf.mxu0  ;;  %2633 = vmatprep.mubr.msk.bf16.mxu1 %vm2964_vm0, %v2963_v2 }
 0x1c6   : > { %v1088_v47 = vadd.f32 %v3285_v6, %v1087_v46 }
 0x1c7   : > { %v2534_v48 = vpop.f32.mrf.mxu0 }
 0x1c8   : > { %v1259_v50 = vmax.f32 %v1088_v47, 0.0 }
 0x1c9   : > { %v1092_v51 = vpop.f32.mrf.mxu0 }
 0x1ca   : > { %v1303_v52 = vpack.c.bf16 %v1259_v50, %v1258_v49  ;;  %v1093_v54 = vadd.f32 %v3285_v6, %v1092_v51 }
 0x1cb   : > { %v2537_v53 = vpop.f32.mrf.mxu0 }
 0x1cc   : > { %2634 = vmatmul.mubr.msk.bf16.gmra.mxu1 %vm942_vm2, %v1303_v52  ;;  %v1260_v58 = vmax.f32 %v1093_v54, 0.0 }
 0x1cd   : > { %v1095_v55 = vpop.f32.mrf.mxu0  ;;  %2637 = vmatprep.mubr.msk.bf16.mxu1 %vm2964_vm0, %v2963_v2 }
 0x1ce   : > { %v1096_v56 = vadd.f32 %v3285_v6, %v1095_v55 }
 0x1cf   : > { %v2538_v57 = vpop.f32.mrf.mxu0 }
 0x1d0   : > { %v1261_v59 = vmax.f32 %v1096_v56, 0.0 }
 0x1d1   : > { %v1100_v60 = vpop.f32.mrf.mxu0 }
 0x1d2   : > { %v1304_v61 = vpack.c.bf16 %v1261_v59, %v1260_v58  ;;  %v1101_v63 = vadd.f32 %v3285_v6, %v1100_v60 }
 0x1d3   : > { %v2541_v62 = vpop.f32.mrf.mxu0 }
 0x1d4   : > { %2638 = vmatmul.mubr.msk.bf16.gmra.mxu1 %vm942_vm2, %v1304_v61  ;;  %v1262_v4 = vmax.f32 %v1101_v63, 0.0 }
 0x1d5   : > { %v1103_v0 = vpop.f32.mrf.mxu0  ;;  %2641 = vmatprep.mubr.msk.bf16.mxu1 %vm2964_vm0, %v2963_v2 }
 0x1d6   : > { %v1104_v1 = vadd.f32 %v3285_v6, %v1103_v0 }
 0x1d7   : > { %v2542_v3 = vpop.f32.mrf.mxu0 }
 0x1d8   : > { %v1263_v5 = vmax.f32 %v1104_v1, 0.0 }
 0x1d9   : > { %v1108_v7 = vpop.f32.mrf.mxu0 }
 0x1da   : > { %v1305_v30 = vpack.c.bf16 %v1263_v5, %v1262_v4  ;;  %v1109_v9 = vadd.f32 %v3285_v6, %v1108_v7 }
 0x1db   : > { %v2545_v8 = vpop.f32.mrf.mxu0 }
 0x1dc   : > { %2642 = vmatmul.mubr.msk.bf16.gmra.mxu1 %vm942_vm2, %v1305_v30  ;;  %v1264_v13 = vmax.f32 %v1109_v9, 0.0 }
 0x1dd   : > { %v1111_v10 = vpop.f32.mrf.mxu0  ;;  %2645 = vmatprep.mubr.msk.bf16.mxu1 %vm2964_vm0, %v2963_v2 }
 0x1de   : > { %v1112_v11 = vadd.f32 %v3285_v6, %v1111_v10 }
 0x1df   : > { %v2546_v12 = vpop.f32.mrf.mxu0 }
 0x1e0   : > { %v1265_v14 = vmax.f32 %v1112_v11, 0.0 }
 0x1e1   : > { %v1116_v15 = vpop.f32.mrf.mxu0 }
 0x1e2   : > { %v1306_v16 = vpack.c.bf16 %v1265_v14, %v1264_v13  ;;  %v1117_v18 = vadd.f32 %v3285_v6, %v1116_v15 }
 0x1e3   : > { %v2549_v17 = vpop.f32.mrf.mxu0 }
 0x1e4   : > { %2646 = vmatmul.mubr.msk.bf16.gmra.mxu1 %vm942_vm2, %v1306_v16  ;;  %v1266_v22 = vmax.f32 %v1117_v18, 0.0 }
 0x1e5   : > { %v1119_v19 = vpop.f32.mrf.mxu0  ;;  %2649 = vmatprep.mubr.msk.bf16.mxu1 %vm2964_vm0, %v2963_v2 }
 0x1e6   : > { %v1120_v20 = vadd.f32 %v3285_v6, %v1119_v19 }
 0x1e7   : > { %v2550_v21 = vpop.f32.mrf.mxu0 }
 0x1e8   : > { %v1267_v23 = vmax.f32 %v1120_v20, 0.0 }
 0x1e9   : > { %v1124_v24 = vpop.f32.mrf.mxu1 }
 0x1ea   : > { %v1307_v25 = vpack.c.bf16 %v1267_v23, %v1266_v22  ;;  %v1125_v27 = vadd.f32 %v3285_v6, %v1124_v24 }
 0x1eb   : > { %v2553_v26 = vpop.f32.mrf.mxu1 }
 0x1ec   : > { %2650 = vmatmul.mubr.msk.bf16.gmra.mxu1 %vm942_vm2, %v1307_v25  ;;  %v1268_v32 = vmax.f32 %v1125_v27, 0.0 }
 0x1ed   : > { %v1127_v28 = vpop.f32.mrf.mxu1  ;;  %2653 = vmatprep.mubr.msk.bf16.mxu1 %vm2964_vm0, %v2963_v2 }
 0x1ee   : > { %v1128_v29 = vadd.f32 %v3285_v6, %v1127_v28 }
 0x1ef   : > { %v2554_v31 = vpop.f32.mrf.mxu1 }
 0x1f0   : > { %v1269_v33 = vmax.f32 %v1128_v29, 0.0 }
 0x1f1   : > { %v1132_v34 = vpop.f32.mrf.mxu1 }
 0x1f2   : > { %v1308_v35 = vpack.c.bf16 %v1269_v33, %v1268_v32  ;;  %v1133_v37 = vadd.f32 %v3285_v6, %v1132_v34 }
 0x1f3   : > { %v2557_v36 = vpop.f32.mrf.mxu1 }
 0x1f4   : > { %2654 = vmatmul.mubr.msk.bf16.gmra.mxu1 %vm942_vm2, %v1308_v35  ;;  %v1270_v41 = vmax.f32 %v1133_v37, 0.0 }
 0x1f5   : > { %v1135_v38 = vpop.f32.mrf.mxu1  ;;  %2657 = vmatprep.mubr.msk.bf16.mxu1 %vm2964_vm0, %v2963_v2 }
 0x1f6   : > { %v1136_v39 = vadd.f32 %v3285_v6, %v1135_v38 }
 0x1f7   : > { %v2558_v40 = vpop.f32.mrf.mxu1 }
 0x1f8   : > { %v1271_v42 = vmax.f32 %v1136_v39, 0.0 }
 0x1f9   : > { %v1140_v43 = vpop.f32.mrf.mxu1 }
 0x1fa   : > { %v1309_v44 = vpack.c.bf16 %v1271_v42, %v1270_v41  ;;  %v1141_v46 = vadd.f32 %v3285_v6, %v1140_v43 }
 0x1fb   : > { %v2561_v45 = vpop.f32.mrf.mxu1 }
 0x1fc   : > { %2658 = vmatmul.mubr.msk.bf16.gmra.mxu1 %vm942_vm2, %v1309_v44  ;;  %v1272_v50 = vmax.f32 %v1141_v46, 0.0 }
 0x1fd   : > { %v1143_v47 = vpop.f32.mrf.mxu1  ;;  %2661 = vmatprep.mubr.msk.bf16.mxu1 %vm2964_vm0, %v2963_v2 }
 0x1fe   : > { %v1144_v48 = vadd.f32 %v3285_v6, %v1143_v47 }
 0x1ff   : > { %v2562_v49 = vpop.f32.mrf.mxu1 }
 0x200   : > { %v1273_v51 = vmax.f32 %v1144_v48, 0.0 }
 0x201   : > { %v1148_v52 = vpop.f32.mrf.mxu1 }
 0x202   : > { %v1310_v53 = vpack.c.bf16 %v1273_v51, %v1272_v50  ;;  %v1149_v55 = vadd.f32 %v3285_v6, %v1148_v52 }
 0x203   : > { %v2565_v54 = vpop.f32.mrf.mxu1 }
 0x204   : > { %2662 = vmatmul.mubr.msk.bf16.gmra.mxu1 %vm942_vm2, %v1310_v53  ;;  %v1274_v59 = vmax.f32 %v1149_v55, 0.0 }
 0x205   : > { %v1151_v56 = vpop.f32.mrf.mxu1  ;;  %2665 = vmatprep.mubr.msk.bf16.mxu1 %vm2964_vm0, %v2963_v2 }
 0x206   : > { %v1152_v57 = vadd.f32 %v3285_v6, %v1151_v56 }
 0x207   : > { %v2566_v58 = vpop.f32.mrf.mxu1 }
 0x208   : > { %v1275_v60 = vmax.f32 %v1152_v57, 0.0 }
 0x209   : > { %v1156_v61 = vpop.f32.mrf.mxu1 }
 0x20a   : > { %v1311_v62 = vpack.c.bf16 %v1275_v60, %v1274_v59  ;;  %v1157_v0 = vadd.f32 %v3285_v6, %v1156_v61 }
 0x20b   : > { %v2569_v63 = vpop.f32.mrf.mxu1 }
 0x20c   : > { %2666 = vmatmul.mubr.msk.bf16.gmra.mxu1 %vm942_vm2, %v1311_v62  ;;  %v1276_v5 = vmax.f32 %v1157_v0, 0.0 }
 0x20d   : > { %v1159_v1 = vpop.f32.mrf.mxu1  ;;  %2669 = vmatprep.mubr.msk.bf16.mxu1 %vm2964_vm0, %v2963_v2 }
 0x20e   : > { %v1160_v3 = vadd.f32 %v3285_v6, %v1159_v1 }
 0x20f   : > { %v2570_v4 = vpop.f32.mrf.mxu1 }
 0x210   : > { %v1277_v7 = vmax.f32 %v1160_v3, 0.0 }
 0x211   : > { %v1164_v30 = vpop.f32.mrf.mxu1 }
 0x212   : > { %v1312_v8 = vpack.c.bf16 %v1277_v7, %v1276_v5  ;;  %v1165_v10 = vadd.f32 %v3285_v6, %v1164_v30 }
 0x213   : > { %v2573_v9 = vpop.f32.mrf.mxu1 }
 0x214   : > { %2670 = vmatmul.mubr.msk.bf16.gmra.mxu1 %vm942_vm2, %v1312_v8  ;;  %v1278_v14 = vmax.f32 %v1165_v10, 0.0 }
 0x215   : > { %v1167_v11 = vpop.f32.mrf.mxu1  ;;  %2673 = vmatprep.mubr.msk.bf16.mxu1 %vm2964_vm0, %v2963_v2 }
 0x216   : > { %v1168_v12 = vadd.f32 %v3285_v6, %v1167_v11 }
 0x217   : > { %v2574_v13 = vpop.f32.mrf.mxu1 }
 0x218   : > { %v1279_v15 = vmax.f32 %v1168_v12, 0.0 }
 0x219   : > { %v1172_v16 = vpop.f32.mrf.mxu1 }
 0x21a   : > { %v1313_v17 = vpack.c.bf16 %v1279_v15, %v1278_v14  ;;  %v1173_v19 = vadd.f32 %v3285_v6, %v1172_v16 }
 0x21b   : > { %v2577_v18 = vpop.f32.mrf.mxu1 }
 0x21c   : > { %2674 = vmatmul.mubr.msk.bf16.gmra.mxu1 %vm942_vm2, %v1313_v17  ;;  %v1280_v23 = vmax.f32 %v1173_v19, 0.0 }
 0x21d   : > { %v1175_v20 = vpop.f32.mrf.mxu1  ;;  %2677 = vmatprep.mubr.msk.bf16.mxu1 %vm2964_vm0, %v2963_v2 }
 0x21e   : > { %v1176_v21 = vadd.f32 %v3285_v6, %v1175_v20 }
 0x21f   : > { %v2578_v22 = vpop.f32.mrf.mxu1 }
 0x220   : > { %v1281_v24 = vmax.f32 %v1176_v21, 0.0 }
 0x221   : > { %v1180_v25 = vpop.f32.mrf.mxu1 }
 0x222   : > { %v1314_v26 = vpack.c.bf16 %v1281_v24, %v1280_v23  ;;  %v1181_v28 = vadd.f32 %v3285_v6, %v1180_v25 }
 0x223   : > { %v2581_v27 = vpop.f32.mrf.mxu1 }
 0x224   : > { %2678 = vmatmul.mubr.msk.bf16.gmra.mxu1 %vm942_vm2, %v1314_v26  ;;  %v1282_v33 = vmax.f32 %v1181_v28, 0.0 }
 0x225   : > { %v1183_v29 = vpop.f32.mrf.mxu1  ;;  %2681 = vmatprep.mubr.msk.bf16.mxu1 %vm2964_vm0, %v2963_v2 }
 0x226   : > { %v1184_v31 = vadd.f32 %v3285_v6, %v1183_v29 }
 0x227   : > { %v2582_v32 = vpop.f32.mrf.mxu1 }
 0x228   : > { %v1283_v34 = vmax.f32 %v1184_v31, 0.0 }
 0x229   : > { %v1188_v35 = vpop.f32.mrf.mxu1 }
 0x22a   : > { %v1315_v36 = vpack.c.bf16 %v1283_v34, %v1282_v33  ;;  %v1189_v38 = vadd.f32 %v3285_v6, %v1188_v35 }
 0x22b   : > { %v2585_v37 = vpop.f32.mrf.mxu1 }
 0x22c   : > { %2682 = vmatmul.mubr.msk.bf16.gmra.mxu1 %vm942_vm2, %v1315_v36  ;;  %v1284_v42 = vmax.f32 %v1189_v38, 0.0 }
 0x22d   : > { %v1191_v39 = vpop.f32.mrf.mxu1  ;;  %2685 = vmatprep.mubr.msk.bf16.mxu1 %vm2964_vm0, %v2963_v2 }
 0x22e   : > { %v1192_v40 = vadd.f32 %v3285_v6, %v1191_v39 }
 0x22f   : > { %v2586_v41 = vpop.f32.mrf.mxu1 }
 0x230   : > { %v1285_v43 = vmax.f32 %v1192_v40, 0.0 }
 0x231   : > { %v1196_v44 = vpop.f32.mrf.mxu1 }
 0x232   : > { %v1316_v45 = vpack.c.bf16 %v1285_v43, %v1284_v42  ;;  %v1197_v47 = vadd.f32 %v3285_v6, %v1196_v44  ;;  %v3411_v44 = vld [vmem:[#allocation2] ss:$0 sm:$0xff] }
 0x233   : > { %v2589_v46 = vpop.f32.mrf.mxu1 }
 0x234   : > { %2686 = vmatmul.mubr.msk.bf16.gmra.mxu1 %vm942_vm2, %v1316_v45  ;;  %v1286_v51 = vmax.f32 %v1197_v47, 0.0 }
 0x235   : > { %v1199_v48 = vpop.f32.mrf.mxu1  ;;  %2689 = vmatprep.mubr.msk.bf16.mxu1 %vm2964_vm0, %v2963_v2 }
 0x236   : > { %v1200_v49 = vadd.f32 %v3285_v6, %v1199_v48 }
 0x237   : > { %v2590_v50 = vpop.f32.mrf.mxu1 }
 0x238   : > { %v1287_v52 = vmax.f32 %v1200_v49, 0.0 }
 0x239   : > { %v1204_v53 = vpop.f32.mrf.mxu1 }
 0x23a   : > { %v1317_v54 = vpack.c.bf16 %v1287_v52, %v1286_v51  ;;  %v1205_v56 = vadd.f32 %v3285_v6, %v1204_v53 }
 0x23b   : > { %v2593_v55 = vpop.f32.mrf.mxu1 }
 0x23c   : > { %2690 = vmatmul.mubr.msk.bf16.gmra.mxu1 %vm942_vm2, %v1317_v54  ;;  %v1288_v60 = vmax.f32 %v1205_v56, 0.0 }
 0x23d   : > { %v1207_v57 = vpop.f32.mrf.mxu1  ;;  %2693 = vmatprep.mubr.msk.bf16.mxu1 %vm2964_vm0, %v2963_v2 }
 0x23e   : > { %v1208_v58 = vadd.f32 %v3285_v6, %v1207_v57 }
 0x23f   : > { %v2594_v59 = vpop.f32.mrf.mxu1 }
 0x240   : > { %v1289_v61 = vmax.f32 %v1208_v58, 0.0 }
 0x241   : > { %v1212_v62 = vpop.f32.mrf.mxu1 }
 0x242   : > { %v1318_v63 = vpack.c.bf16 %v1289_v61, %v1288_v60  ;;  %v1213_v1 = vadd.f32 %v3285_v6, %v1212_v62 }
 0x243   : > { %v2597_v0 = vpop.f32.mrf.mxu1 }
 0x244   : > { %2694 = vmatmul.mubr.msk.bf16.gmra.mxu1 %vm942_vm2, %v1318_v63  ;;  %v1290_v7 = vmax.f32 %v1213_v1, 0.0 }
 0x245   : > { %v1215_v3 = vpop.f32.mrf.mxu1  ;;  %2697 = vmatprep.mubr.msk.bf16.mxu1 %vm2964_vm0, %v2963_v2 }
 0x246   : > { %v1216_v4 = vadd.f32 %v3285_v6, %v1215_v3 }
 0x247   : > { %v2598_v5 = vpop.f32.mrf.mxu1 }
 0x248   : > { %v1291_v30 = vmax.f32 %v1216_v4, 0.0 }
 0x249   : > { %v1220_v8 = vpop.f32.mrf.mxu1 }
 0x24a   : > { %v1319_v9 = vpack.c.bf16 %v1291_v30, %v1290_v7  ;;  %v1221_v11 = vadd.f32 %v3285_v6, %v1220_v8 }
 0x24b   : > { %v2601_v10 = vpop.f32.mrf.mxu1 }
 0x24c   : > { %2698 = vmatmul.mubr.msk.bf16.gmra.mxu1 %vm942_vm2, %v1319_v9  ;;  %v1292_v15 = vmax.f32 %v1221_v11, 0.0 }
 0x24d   : > { %v1223_v12 = vpop.f32.mrf.mxu1  ;;  %2701 = vmatprep.mubr.msk.bf16.mxu1 %vm2964_vm0, %v2963_v2 }
 0x24e   : > { %v1224_v13 = vadd.f32 %v3285_v6, %v1223_v12 }
 0x24f   : > { %v2602_v14 = vpop.f32.mrf.mxu1 }
 0x250   : > { %v1293_v16 = vmax.f32 %v1224_v13, 0.0 }
 0x251   : > { %v1228_v17 = vpop.f32.mrf.mxu1 }
 0x252   : > { %v1320_v18 = vpack.c.bf16 %v1293_v16, %v1292_v15  ;;  %v1229_v20 = vadd.f32 %v3285_v6, %v1228_v17 }
 0x253   : > { %v2605_v19 = vpop.f32.mrf.mxu1 }
 0x254   : > { %2702 = vmatmul.mubr.msk.bf16.gmra.mxu1 %vm942_vm2, %v1320_v18  ;;  %v1294_v24 = vmax.f32 %v1229_v20, 0.0 }
 0x255   : > { %v1231_v21 = vpop.f32.mrf.mxu1  ;;  %2705 = vmatprep.mubr.msk.bf16.mxu1 %vm2964_vm0, %v2963_v2 }
 0x256   : > { %v1232_v22 = vadd.f32 %v3285_v6, %v1231_v21 }
 0x257   : > { %v2606_v23 = vpop.f32.mrf.mxu1 }
 0x258   : > { %v1295_v25 = vmax.f32 %v1232_v22, 0.0 }
 0x259   : > { %v1236_v26 = vpop.f32.mrf.mxu1 }
 0x25a   : > { %v1321_v27 = vpack.c.bf16 %v1295_v25, %v1294_v24  ;;  %v1237_v29 = vadd.f32 %v3285_v6, %v1236_v26 }
 0x25b   : > { %v2609_v28 = vpop.f32.mrf.mxu1 }
 0x25c   : > { %2706 = vmatmul.mubr.msk.bf16.gmra.mxu1 %vm942_vm2, %v1321_v27  ;;  %v1296_v34 = vmax.f32 %v1237_v29, 0.0 }
 0x25d   : > { %v1239_v31 = vpop.f32.mrf.mxu1  ;;  %2709 = vmatprep.mubr.msk.bf16.mxu1 %vm2964_vm0, %v2963_v2 }
 0x25e   : > { %v1240_v32 = vadd.f32 %v3285_v6, %v1239_v31 }
 0x25f   : > { %v2610_v33 = vpop.f32.mrf.mxu1 }
 0x260   : > { %v1297_v35 = vmax.f32 %v1240_v32, 0.0 }
 0x261   : > { %v1244_v36 = vpop.f32.mrf.mxu1 }
 0x262   : > { %v1322_v37 = vpack.c.bf16 %v1297_v35, %v1296_v34  ;;  %v1245_v38 = vadd.f32 %v3285_v6, %v1244_v36 }
 0x263   : > { %v2613_v39 = vpop.f32.mrf.mxu1 }
 0x264   : > { %2710 = vmatmul.mubr.msk.bf16.gmra.mxu1 %vm942_vm2, %v1322_v37  ;;  %v1298_v41 = vmax.f32 %v1245_v38, 0.0 }
 0x265   : > { %v1247_v40 = vpop.f32.mrf.mxu1  ;;  %2713 = vmatprep.mubr.msk.bf16.mxu1 %vm2964_vm0, %v2963_v2 }
 0x266   : > { %v1323_v43 = vpack.c.bf16 %v1298_v41, %v1298_v41 }
 0x267   : > { %v2614_v42 = vpop.f32.mrf.mxu1 }
 0x26c   : > { %v1448_v45 = vpop.f32.mrf.mxu1  ;;  %2714 = vmatmul.mubr.msk.bf16.gmra.mxu1 %vm942_vm2, %v1323_v43 }
 0x26d   : > { %v1449_v46 = vadd.f32 %v3411_v44, %v1448_v45 }
 0x26e   : > { %v2619_v47 = vpop.f32.mrf.mxu1 }
 0x26f   : > { %v1646_v48 = vsub.f32 0.0, %v1449_v46 }
 0x270   : > { %v1451_v6 = vpop.f32.mrf.mxu1 }
 0x271   : > { %v1695_v49 = vmul.f32 1.442695, %v1646_v48  ;;  %v1452_v50 = vadd.f32 %v3411_v44, %v1451_v6 }
 0x272   : > { %v2620_v51 = vpop.f32.mrf.mxu1 }
 0x273   : > { %2758 = vpow2.f32 %v1695_v49  ;;  %v1647_v52 = vsub.f32 0.0, %v1452_v50 }
 0x274   : > { %v1456_v53 = vpop.f32.mrf.mxu1 }
 0x275   : > { %v1697_v54 = vmul.f32 1.442695, %v1647_v52  ;;  %v1457_v55 = vadd.f32 %v3411_v44, %v1456_v53 }
 0x276   : > { %v2623_v56 = vpop.f32.mrf.mxu1 }
 0x277   : > { %2760 = vpow2.f32 %v1697_v54  ;;  %v1648_v57 = vsub.f32 0.0, %v1457_v55 }
 0x278   : > { %v1459_v58 = vpop.f32.mrf.mxu1 }
 0x279   : > { %v1699_v59 = vmul.f32 1.442695, %v1648_v57  ;;  %v1460_v60 = vadd.f32 %v3411_v44, %v1459_v58 }
 0x27a   : > { %v2624_v61 = vpop.f32.mrf.mxu1 }
 0x27b   : > { %2762 = vpow2.f32 %v1699_v59  ;;  %v1649_v62 = vsub.f32 0.0, %v1460_v60 }
 0x27c   : > { %v1464_v63 = vpop.f32.mrf.mxu1 }
 0x27d   : > { %v1701_v0 = vmul.f32 1.442695, %v1649_v62  ;;  %v1465_v1 = vadd.f32 %v3411_v44, %v1464_v63 }
 0x27e   : > { %v2627_v3 = vpop.f32.mrf.mxu1 }
 0x27f   : > { %2764 = vpow2.f32 %v1701_v0  ;;  %v1650_v4 = vsub.f32 0.0, %v1465_v1 }
 0x280   : > { %v2759_v5 = vpop.eup %2758  ;;  %v1467_v7 = vpop.f32.mrf.mxu1 }
 0x281   : > { %v1793_v30 = vadd.f32 1.0, %v2759_v5  ;;  %v1703_v8 = vmul.f32 1.442695, %v1650_v4  ;;  %v1468_v9 = vadd.f32 %v3411_v44, %v1467_v7 }
 0x282   : > { %v2628_v10 = vpop.f32.mrf.mxu1 }
 0x283   : > { %2766 = vrcp.f32 %v1793_v30  ;;  %v1651_v11 = vsub.f32 0.0, %v1468_v9 }
 0x284   : > { %v2761_v12 = vpop.eup %2760  ;;  %2768 = vpow2.f32 %v1703_v8  ;;  %v1472_v13 = vpop.f32.mrf.mxu1 }
 0x285   : > { %v1794_v14 = vadd.f32 1.0, %v2761_v12  ;;  %v1705_v15 = vmul.f32 1.442695, %v1651_v11  ;;  %v1473_v16 = vadd.f32 %v3411_v44, %v1472_v13 }
 0x286   : > { %v2631_v17 = vpop.f32.mrf.mxu1 }
 0x287   : > { %2770 = vrcp.f32 %v1794_v14  ;;  %v1652_v18 = vsub.f32 0.0, %v1473_v16 }
 0x288   : > { %v2763_v19 = vpop.eup %2762  ;;  %2772 = vpow2.f32 %v1705_v15  ;;  %v1475_v20 = vpop.f32.mrf.mxu1 }
 0x289   : > { %v1795_v21 = vadd.f32 1.0, %v2763_v19  ;;  %v1707_v22 = vmul.f32 1.442695, %v1652_v18  ;;  %v1476_v23 = vadd.f32 %v3411_v44, %v1475_v20 }
 0x28a   : > { %v2632_v24 = vpop.f32.mrf.mxu1 }
 0x28b   : > { %2774 = vrcp.f32 %v1795_v21  ;;  %v1653_v25 = vsub.f32 0.0, %v1476_v23 }
 0x28c   : > { %v2765_v26 = vpop.eup %2764  ;;  %2776 = vpow2.f32 %v1707_v22  ;;  %v1480_v27 = vpop.f32.mrf.mxu1 }
 0x28d   : > { %v1796_v28 = vadd.f32 1.0, %v2765_v26  ;;  %v1709_v29 = vmul.f32 1.442695, %v1653_v25  ;;  %v1481_v31 = vadd.f32 %v3411_v44, %v1480_v27 }
 0x28e   : > { %v2635_v32 = vpop.f32.mrf.mxu1 }
 0x28f   : > { %2778 = vrcp.f32 %v1796_v28  ;;  %v1654_v33 = vsub.f32 0.0, %v1481_v31 }
 0x290   : > { %v3429_v34 = vpop.eup %2766  ;;  %2780 = vpow2.f32 %v1709_v29  ;;  %v1483_v35 = vpop.f32.mrf.mxu1 }
 0x291   : > { %v2769_v36 = vpop.eup %2768  ;;  %1892 = vst.msk [vmem:[%s3427_s13] sm:$0xff] %vm1891_vm3, %v3429_v34  ;;  %v1711_v37 = vmul.f32 1.442695, %v1654_v33  ;;  %v1484_v38 = vadd.f32 %v3411_v44, %v1483_v35 }
 0x292   : > { %v1797_v39 = vadd.f32 1.0, %v2769_v36  ;;  %v2636_v40 = vpop.f32.mrf.mxu1 }
 0x293   : > { %2782 = vpow2.f32 %v1711_v37  ;;  %v1655_v41 = vsub.f32 0.0, %v1484_v38 }
 0x294   : > { %v3435_v42 = vpop.eup %2770  ;;  %2784 = vrcp.f32 %v1797_v39  ;;  %v1488_v43 = vpop.f32.mrf.mxu1 }
 0x295   : > { %v2773_v45 = vpop.eup %2772  ;;  %1893 = vst.msk [vmem:[%s3427_s13 + $0x8] sm:$0xff] %vm1891_vm3, %v3435_v42  ;;  %v1713_v46 = vmul.f32 1.442695, %v1655_v41  ;;  %v1489_v47 = vadd.f32 %v3411_v44, %v1488_v43 }
 0x296   : > { %v1798_v48 = vadd.f32 1.0, %v2773_v45  ;;  %v2639_v6 = vpop.f32.mrf.mxu1 }
 0x297   : > { %2786 = vpow2.f32 %v1713_v46  ;;  %v1656_v49 = vsub.f32 0.0, %v1489_v47 }
 0x298   : > { %v3441_v50 = vpop.eup %2774  ;;  %2788 = vrcp.f32 %v1798_v48  ;;  %v1491_v51 = vpop.f32.mrf.mxu1 }
 0x299   : > { %v2777_v52 = vpop.eup %2776  ;;  %1894 = vst.msk [vmem:[%s3427_s13 + $0x10] sm:$0xff] %vm1891_vm3, %v3441_v50  ;;  %v1715_v53 = vmul.f32 1.442695, %v1656_v49  ;;  %v1492_v54 = vadd.f32 %v3411_v44, %v1491_v51 }
 0x29a   : > { %v1799_v55 = vadd.f32 1.0, %v2777_v52  ;;  %v2640_v56 = vpop.f32.mrf.mxu1 }
 0x29b   : > { %2790 = vpow2.f32 %v1715_v53  ;;  %v1657_v57 = vsub.f32 0.0, %v1492_v54 }
 0x29c   : > { %v3447_v58 = vpop.eup %2778  ;;  %2792 = vrcp.f32 %v1799_v55  ;;  %v1496_v59 = vpop.f32.mrf.mxu1 }
 0x29d   : > { %v2781_v60 = vpop.eup %2780  ;;  %1895 = vst.msk [vmem:[%s3427_s13 + $0x18] sm:$0xff] %vm1891_vm3, %v3447_v58  ;;  %v1717_v61 = vmul.f32 1.442695, %v1657_v57  ;;  %v1497_v62 = vadd.f32 %v3411_v44, %v1496_v59 }
 0x29e   : > { %v1800_v63 = vadd.f32 1.0, %v2781_v60  ;;  %v2643_v0 = vpop.f32.mrf.mxu1 }
 0x29f   : > { %2794 = vpow2.f32 %v1717_v61  ;;  %v1658_v1 = vsub.f32 0.0, %v1497_v62 }
 0x2a0   : > { %v2783_v3 = vpop.eup %2782  ;;  %2796 = vrcp.f32 %v1800_v63  ;;  %v1499_v4 = vpop.f32.mrf.mxu1 }
 0x2a1   : > { %v3453_v5 = vpop.eup %2784  ;;  %v1801_v7 = vadd.f32 1.0, %v2783_v3  ;;  %v1719_v30 = vmul.f32 1.442695, %v1658_v1  ;;  %v1500_v8 = vadd.f32 %v3411_v44, %v1499_v4 }
 0x2a2   : > { %1896 = vst.msk [vmem:[%s3427_s13 + $0x20] sm:$0xff] %vm1891_vm3, %v3453_v5  ;;  %v2644_v9 = vpop.f32.mrf.mxu1 }
 0x2a3   : > { %2798 = vrcp.f32 %v1801_v7  ;;  %v1659_v10 = vsub.f32 0.0, %v1500_v8 }
 0x2a4   : > { %v2787_v11 = vpop.eup %2786  ;;  %2800 = vpow2.f32 %v1719_v30  ;;  %v1504_v12 = vpop.f32.mrf.mxu1 }
 0x2a5   : > { %v3459_v13 = vpop.eup %2788  ;;  %v1802_v14 = vadd.f32 1.0, %v2787_v11  ;;  %v1721_v15 = vmul.f32 1.442695, %v1659_v10  ;;  %v1505_v16 = vadd.f32 %v3411_v44, %v1504_v12 }
 0x2a6   : > { %1897 = vst.msk [vmem:[%s3427_s13 + $0x28] sm:$0xff] %vm1891_vm3, %v3459_v13  ;;  %v2647_v17 = vpop.f32.mrf.mxu1 }
 0x2a7   : > { %2802 = vrcp.f32 %v1802_v14  ;;  %v1660_v18 = vsub.f32 0.0, %v1505_v16 }
 0x2a8   : > { %v2791_v19 = vpop.eup %2790  ;;  %2804 = vpow2.f32 %v1721_v15  ;;  %v1507_v20 = vpop.f32.mrf.mxu1 }
 0x2a9   : > { %v3465_v21 = vpop.eup %2792  ;;  %v1803_v22 = vadd.f32 1.0, %v2791_v19  ;;  %v1723_v23 = vmul.f32 1.442695, %v1660_v18  ;;  %v1508_v24 = vadd.f32 %v3411_v44, %v1507_v20 }
 0x2aa   : > { %1898 = vst.msk [vmem:[%s3427_s13 + $0x30] sm:$0xff] %vm1891_vm3, %v3465_v21  ;;  %v2648_v25 = vpop.f32.mrf.mxu1 }
 0x2ab   : > { %2806 = vrcp.f32 %v1803_v22  ;;  %v1661_v26 = vsub.f32 0.0, %v1508_v24 }
 0x2ac   : > { %v2795_v27 = vpop.eup %2794  ;;  %2808 = vpow2.f32 %v1723_v23  ;;  %v1512_v28 = vpop.f32.mrf.mxu1 }
 0x2ad   : > { %v3471_v29 = vpop.eup %2796  ;;  %v1804_v31 = vadd.f32 1.0, %v2795_v27  ;;  %v1725_v32 = vmul.f32 1.442695, %v1661_v26  ;;  %v1513_v33 = vadd.f32 %v3411_v44, %v1512_v28 }
 0x2ae   : > { %1899 = vst.msk [vmem:[%s3427_s13 + $0x38] sm:$0xff] %vm1891_vm3, %v3471_v29  ;;  %v2651_v35 = vpop.f32.mrf.mxu1 }
 0x2af   : > { %2810 = vrcp.f32 %v1804_v31  ;;  %v1662_v36 = vsub.f32 0.0, %v1513_v33 }
 0x2b0   : > { %v3477_v37 = vpop.eup %2798  ;;  %2812 = vpow2.f32 %v1725_v32  ;;  %v1515_v38 = vpop.f32.mrf.mxu1 }
 0x2b1   : > { %v2801_v39 = vpop.eup %2800  ;;  %1900 = vst.msk [vmem:[%s3427_s13 + $0x40] sm:$0xff] %vm1891_vm3, %v3477_v37  ;;  %v1727_v40 = vmul.f32 1.442695, %v1662_v36  ;;  %v1516_v41 = vadd.f32 %v3411_v44, %v1515_v38 }
 0x2b2   : > { %v1805_v43 = vadd.f32 1.0, %v2801_v39  ;;  %v2652_v45 = vpop.f32.mrf.mxu1  ;;  %v1942_v39 = vld [vmem:[%s3748_s1 + $0x8] sm:$0xff] }
 0x2b3   : > { %2814 = vpow2.f32 %v1727_v40  ;;  %v1663_v46 = vsub.f32 0.0, %v1516_v41  ;;  %2013 = vmatprep.mubr.f32.mxu0 %v1942_v39 }
 0x2b4   : > { %v3483_v47 = vpop.eup %2802  ;;  %2816 = vrcp.f32 %v1805_v43  ;;  %v1520_v48 = vpop.f32.mrf.mxu1 }
 0x2b5   : > { %v2805_v6 = vpop.eup %2804  ;;  %1901 = vst.msk [vmem:[%s3427_s13 + $0x48] sm:$0xff] %vm1891_vm3, %v3483_v47  ;;  %v1729_v49 = vmul.f32 1.442695, %v1663_v46  ;;  %v1521_v51 = vadd.f32 %v3411_v44, %v1520_v48 }
 0x2b6   : > { %v1806_v52 = vadd.f32 1.0, %v2805_v6  ;;  %v2655_v53 = vpop.f32.mrf.mxu1 }
 0x2b7   : > { %2818 = vpow2.f32 %v1729_v49  ;;  %v1664_v54 = vsub.f32 0.0, %v1521_v51 }
 0x2b8   : > { %v3489_v55 = vpop.eup %2806  ;;  %2820 = vrcp.f32 %v1806_v52  ;;  %v1523_v56 = vpop.f32.mrf.mxu1 }
 0x2b9   : > { %v2809_v57 = vpop.eup %2808  ;;  %1902 = vst.msk [vmem:[%s3427_s13 + $0x50] sm:$0xff] %vm1891_vm3, %v3489_v55  ;;  %v1731_v59 = vmul.f32 1.442695, %v1664_v54  ;;  %v1524_v60 = vadd.f32 %v3411_v44, %v1523_v56 }
 0x2ba   : > { %v1807_v61 = vadd.f32 1.0, %v2809_v57  ;;  %v2656_v62 = vpop.f32.mrf.mxu1 }
 0x2bb   : > { %2822 = vpow2.f32 %v1731_v59  ;;  %v1665_v63 = vsub.f32 0.0, %v1524_v60 }
 0x2bc   : > { %v3495_v0 = vpop.eup %2810  ;;  %2824 = vrcp.f32 %v1807_v61  ;;  %v1528_v1 = vpop.f32.mrf.mxu1 }
 0x2bd   : > { %v2813_v3 = vpop.eup %2812  ;;  %1903 = vst.msk [vmem:[%s3427_s13 + $0x58] sm:$0xff] %vm1891_vm3, %v3495_v0  ;;  %v1733_v4 = vmul.f32 1.442695, %v1665_v63  ;;  %v1529_v7 = vadd.f32 %v3411_v44, %v1528_v1 }
 0x2be   : > { %v1808_v30 = vadd.f32 1.0, %v2813_v3  ;;  %v2659_v8 = vpop.f32.mrf.mxu1 }
 0x2bf   : > { %2826 = vpow2.f32 %v1733_v4  ;;  %v1666_v9 = vsub.f32 0.0, %v1529_v7 }
 0x2c0   : > { %v2815_v10 = vpop.eup %2814  ;;  %2828 = vrcp.f32 %v1808_v30  ;;  %v1531_v11 = vpop.f32.mrf.mxu1 }
 0x2c1   : > { %v3501_v12 = vpop.eup %2816  ;;  %v1809_v14 = vadd.f32 1.0, %v2815_v10  ;;  %v1735_v15 = vmul.f32 1.442695, %v1666_v9  ;;  %v1532_v16 = vadd.f32 %v3411_v44, %v1531_v11 }
 0x2c2   : > { %1904 = vst.msk [vmem:[%s3427_s13 + $0x60] sm:$0xff] %vm1891_vm3, %v3501_v12  ;;  %v2660_v17 = vpop.f32.mrf.mxu1 }
 0x2c3   : > { %2830 = vrcp.f32 %v1809_v14  ;;  %v1667_v18 = vsub.f32 0.0, %v1532_v16 }
 0x2c4   : > { %v2819_v19 = vpop.eup %2818  ;;  %2832 = vpow2.f32 %v1735_v15  ;;  %v1536_v20 = vpop.f32.mrf.mxu1 }
 0x2c5   : > { %v3507_v22 = vpop.eup %2820  ;;  %v1810_v23 = vadd.f32 1.0, %v2819_v19  ;;  %v1737_v24 = vmul.f32 1.442695, %v1667_v18  ;;  %v1537_v25 = vadd.f32 %v3411_v44, %v1536_v20 }
 0x2c6   : > { %1905 = vst.msk [vmem:[%s3427_s13 + $0x68] sm:$0xff] %vm1891_vm3, %v3507_v22  ;;  %v2663_v26 = vpop.f32.mrf.mxu1 }
 0x2c7   : > { %2834 = vrcp.f32 %v1810_v23  ;;  %v1668_v27 = vsub.f32 0.0, %v1537_v25 }
 0x2c8   : > { %v2823_v28 = vpop.eup %2822  ;;  %2836 = vpow2.f32 %v1737_v24  ;;  %v1539_v31 = vpop.f32.mrf.mxu1 }
 0x2c9   : > { %v3513_v32 = vpop.eup %2824  ;;  %v1811_v33 = vadd.f32 1.0, %v2823_v28  ;;  %v1739_v35 = vmul.f32 1.442695, %v1668_v27  ;;  %v1540_v36 = vadd.f32 %v3411_v44, %v1539_v31 }
 0x2ca   : > { %1906 = vst.msk [vmem:[%s3427_s13 + $0x70] sm:$0xff] %vm1891_vm3, %v3513_v32  ;;  %v2664_v38 = vpop.f32.mrf.mxu1 }
 0x2cb   : > { %2838 = vrcp.f32 %v1811_v33  ;;  %v1669_v40 = vsub.f32 0.0, %v1540_v36 }
 0x2cc   : > { %v2827_v41 = vpop.eup %2826  ;;  %2840 = vpow2.f32 %v1739_v35  ;;  %v1544_v43 = vpop.f32.mrf.mxu1 }
 0x2cd   : > { %v3522_v45 = vpop.eup %2828  ;;  %v1812_v46 = vadd.f32 1.0, %v2827_v41  ;;  %v1741_v48 = vmul.f32 1.442695, %v1669_v40  ;;  %v1545_v6 = vadd.f32 %v3411_v44, %v1544_v43 }
 0x2ce   : > { %1907 = vst.msk [vmem:[%s3427_s13 + $0x78] sm:$0xff] %vm1891_vm3, %v3522_v45  ;;  %v2667_v49 = vpop.f32.mrf.mxu1 }
 0x2cf   : > { %2842 = vrcp.f32 %v1812_v46  ;;  %v1670_v51 = vsub.f32 0.0, %v1545_v6 }
 0x2d0   : > { %v3528_v52 = vpop.eup %2830  ;;  %2844 = vpow2.f32 %v1741_v48  ;;  %v1547_v53 = vpop.f32.mrf.mxu1 }
 0x2d1   : > { %v2833_v54 = vpop.eup %2832  ;;  %1908 = vst.msk [vmem:[%s3427_s13 + $0x80] sm:$0xff] %vm1891_vm3, %v3528_v52  ;;  %v1743_v56 = vmul.f32 1.442695, %v1670_v51  ;;  %v1548_v57 = vadd.f32 %v3411_v44, %v1547_v53 }
 0x2d2   : > { %v1813_v59 = vadd.f32 1.0, %v2833_v54  ;;  %v2668_v60 = vpop.f32.mrf.mxu1 }
 0x2d3   : > { %2846 = vpow2.f32 %v1743_v56  ;;  %v1671_v61 = vsub.f32 0.0, %v1548_v57 }
 0x2d4   : > { %v3534_v62 = vpop.eup %2834  ;;  %2848 = vrcp.f32 %v1813_v59  ;;  %v1552_v63 = vpop.f32.mrf.mxu1 }
 0x2d5   : > { %v2837_v1 = vpop.eup %2836  ;;  %1909 = vst.msk [vmem:[%s3427_s13 + $0x88] sm:$0xff] %vm1891_vm3, %v3534_v62  ;;  %v1745_v3 = vmul.f32 1.442695, %v1671_v61  ;;  %v1553_v4 = vadd.f32 %v3411_v44, %v1552_v63 }
 0x2d6   : > { %v1814_v7 = vadd.f32 1.0, %v2837_v1  ;;  %v2671_v30 = vpop.f32.mrf.mxu1 }
 0x2d7   : > { %2850 = vpow2.f32 %v1745_v3  ;;  %v1672_v8 = vsub.f32 0.0, %v1553_v4 }
 0x2d8   : > { %v3540_v9 = vpop.eup %2838  ;;  %2852 = vrcp.f32 %v1814_v7  ;;  %v1555_v10 = vpop.f32.mrf.mxu1 }
 0x2d9   : > { %v2841_v11 = vpop.eup %2840  ;;  %1910 = vst.msk [vmem:[%s3427_s13 + $0x90] sm:$0xff] %vm1891_vm3, %v3540_v9  ;;  %v1747_v14 = vmul.f32 1.442695, %v1672_v8  ;;  %v1556_v15 = vadd.f32 %v3411_v44, %v1555_v10 }
 0x2da   : > { %v1815_v16 = vadd.f32 1.0, %v2841_v11  ;;  %v2672_v17 = vpop.f32.mrf.mxu1 }
 0x2db   : > { %2854 = vpow2.f32 %v1747_v14  ;;  %v1673_v18 = vsub.f32 0.0, %v1556_v15 }
 0x2dc   : > { %v3546_v19 = vpop.eup %2842  ;;  %2856 = vrcp.f32 %v1815_v16  ;;  %v1560_v20 = vpop.f32.mrf.mxu1 }
 0x2dd   : > { %v2845_v23 = vpop.eup %2844  ;;  %1911 = vst.msk [vmem:[%s3427_s13 + $0x98] sm:$0xff] %vm1891_vm3, %v3546_v19  ;;  %v1749_v24 = vmul.f32 1.442695, %v1673_v18  ;;  %v1561_v25 = vadd.f32 %v3411_v44, %v1560_v20 }
 0x2de   : > { %v1816_v26 = vadd.f32 1.0, %v2845_v23  ;;  %v2675_v27 = vpop.f32.mrf.mxu1 }
 0x2df   : > { %2858 = vpow2.f32 %v1749_v24  ;;  %v1674_v28 = vsub.f32 0.0, %v1561_v25 }
 0x2e0   : > { %v2847_v31 = vpop.eup %2846  ;;  %2860 = vrcp.f32 %v1816_v26  ;;  %v1563_v33 = vpop.f32.mrf.mxu1 }
 0x2e1   : > { %v3552_v35 = vpop.eup %2848  ;;  %v1817_v36 = vadd.f32 1.0, %v2847_v31  ;;  %v1751_v38 = vmul.f32 1.442695, %v1674_v28  ;;  %v1564_v39 = vadd.f32 %v3411_v44, %v1563_v33 }
 0x2e2   : > { %1912 = vst.msk [vmem:[%s3427_s13 + $0xa0] sm:$0xff] %vm1891_vm3, %v3552_v35  ;;  %v2676_v40 = vpop.f32.mrf.mxu1 }
 0x2e3   : > { %2862 = vrcp.f32 %v1817_v36  ;;  %v1675_v41 = vsub.f32 0.0, %v1564_v39 }
 0x2e4   : > { %v2851_v43 = vpop.eup %2850  ;;  %2864 = vpow2.f32 %v1751_v38  ;;  %v1568_v46 = vpop.f32.mrf.mxu1 }
 0x2e5   : > { %v3558_v48 = vpop.eup %2852  ;;  %v1818_v6 = vadd.f32 1.0, %v2851_v43  ;;  %v1753_v49 = vmul.f32 1.442695, %v1675_v41  ;;  %v1569_v51 = vadd.f32 %v3411_v44, %v1568_v46 }
 0x2e6   : > { %1913 = vst.msk [vmem:[%s3427_s13 + $0xa8] sm:$0xff] %vm1891_vm3, %v3558_v48  ;;  %v2679_v53 = vpop.f32.mrf.mxu1 }
 0x2e7   : > { %2866 = vrcp.f32 %v1818_v6  ;;  %v1676_v54 = vsub.f32 0.0, %v1569_v51 }
 0x2e8   : > { %v2855_v56 = vpop.eup %2854  ;;  %2868 = vpow2.f32 %v1753_v49  ;;  %v1571_v57 = vpop.f32.mrf.mxu1 }
 0x2e9   : > { %v3564_v59 = vpop.eup %2856  ;;  %v1819_v60 = vadd.f32 1.0, %v2855_v56  ;;  %v1755_v61 = vmul.f32 1.442695, %v1676_v54  ;;  %v1572_v63 = vadd.f32 %v3411_v44, %v1571_v57 }
 0x2ea   : > { %1914 = vst.msk [vmem:[%s3427_s13 + $0xb0] sm:$0xff] %vm1891_vm3, %v3564_v59  ;;  %v2680_v1 = vpop.f32.mrf.mxu1 }
 0x2eb   : > { %2870 = vrcp.f32 %v1819_v60  ;;  %v1677_v3 = vsub.f32 0.0, %v1572_v63 }
 0x2ec   : > { %v2859_v4 = vpop.eup %2858  ;;  %2872 = vpow2.f32 %v1755_v61  ;;  %v1576_v7 = vpop.f32.mrf.mxu1 }
 0x2ed   : > { %v3570_v30 = vpop.eup %2860  ;;  %v1820_v8 = vadd.f32 1.0, %v2859_v4  ;;  %v1757_v10 = vmul.f32 1.442695, %v1677_v3  ;;  %v1577_v11 = vadd.f32 %v3411_v44, %v1576_v7 }
 0x2ee   : > { %1915 = vst.msk [vmem:[%s3427_s13 + $0xb8] sm:$0xff] %vm1891_vm3, %v3570_v30  ;;  %v2683_v14 = vpop.f32.mrf.mxu1 }
 0x2ef   : > { %2874 = vrcp.f32 %v1820_v8  ;;  %v1678_v15 = vsub.f32 0.0, %v1577_v11 }
 0x2f0   : > { %v3576_v16 = vpop.eup %2862  ;;  %2876 = vpow2.f32 %v1757_v10  ;;  %v1579_v17 = vpop.f32.mrf.mxu1 }
 0x2f1   : > { %v2865_v18 = vpop.eup %2864  ;;  %1916 = vst.msk [vmem:[%s3427_s13 + $0xc0] sm:$0xff] %vm1891_vm3, %v3576_v16  ;;  %v1759_v20 = vmul.f32 1.442695, %v1678_v15  ;;  %v1580_v23 = vadd.f32 %v3411_v44, %v1579_v17 }
 0x2f2   : > { %v1821_v24 = vadd.f32 1.0, %v2865_v18  ;;  %v2684_v25 = vpop.f32.mrf.mxu1 }
 0x2f3   : > { %2878 = vpow2.f32 %v1759_v20  ;;  %v1679_v26 = vsub.f32 0.0, %v1580_v23 }
 0x2f4   : > { %v3582_v27 = vpop.eup %2866  ;;  %2880 = vrcp.f32 %v1821_v24  ;;  %v1584_v28 = vpop.f32.mrf.mxu1 }
 0x2f5   : > { %v2869_v31 = vpop.eup %2868  ;;  %1917 = vst.msk [vmem:[%s3427_s13 + $0xc8] sm:$0xff] %vm1891_vm3, %v3582_v27  ;;  %v1761_v33 = vmul.f32 1.442695, %v1679_v26  ;;  %v1585_v36 = vadd.f32 %v3411_v44, %v1584_v28 }
 0x2f6   : > { %v1822_v38 = vadd.f32 1.0, %v2869_v31  ;;  %v2687_v39 = vpop.f32.mrf.mxu1 }
 0x2f7   : > { %2882 = vpow2.f32 %v1761_v33  ;;  %v1680_v40 = vsub.f32 0.0, %v1585_v36 }
 0x2f8   : > { %v3588_v41 = vpop.eup %2870  ;;  %2884 = vrcp.f32 %v1822_v38  ;;  %v1587_v43 = vpop.f32.mrf.mxu1 }
 0x2f9   : > { %v2873_v46 = vpop.eup %2872  ;;  %1918 = vst.msk [vmem:[%s3427_s13 + $0xd0] sm:$0xff] %vm1891_vm3, %v3588_v41  ;;  %v1763_v6 = vmul.f32 1.442695, %v1680_v40  ;;  %v1588_v49 = vadd.f32 %v3411_v44, %v1587_v43 }
 0x2fa   : > { %v1823_v51 = vadd.f32 1.0, %v2873_v46  ;;  %v2688_v53 = vpop.f32.mrf.mxu1 }
 0x2fb   : > { %2886 = vpow2.f32 %v1763_v6  ;;  %v1681_v54 = vsub.f32 0.0, %v1588_v49 }
 0x2fc   : > { %v3594_v56 = vpop.eup %2874  ;;  %2888 = vrcp.f32 %v1823_v51  ;;  %v1592_v57 = vpop.f32.mrf.mxu1 }
 0x2fd   : > { %v2877_v60 = vpop.eup %2876  ;;  %1919 = vst.msk [vmem:[%s3427_s13 + $0xd8] sm:$0xff] %vm1891_vm3, %v3594_v56  ;;  %v1765_v61 = vmul.f32 1.442695, %v1681_v54  ;;  %v1593_v63 = vadd.f32 %v3411_v44, %v1592_v57 }
 0x2fe   : > { %v1824_v1 = vadd.f32 1.0, %v2877_v60  ;;  %v2691_v3 = vpop.f32.mrf.mxu1 }
 0x2ff   : > { %2890 = vpow2.f32 %v1765_v61  ;;  %v1682_v4 = vsub.f32 0.0, %v1593_v63 }
 0x300   : > { %v2879_v7 = vpop.eup %2878  ;;  %2892 = vrcp.f32 %v1824_v1  ;;  %v1595_v8 = vpop.f32.mrf.mxu1 }
 0x301   : > { %v2881_v10 = vpop.eup %2880  ;;  %v1825_v11 = vadd.f32 1.0, %v2879_v7  ;;  %v1767_v14 = vmul.f32 1.442695, %v1682_v4  ;;  %v1596_v15 = vadd.f32 %v3411_v44, %v1595_v8 }
 0x302   : > { %1920 = vst.msk [vmem:[%s3427_s13 + $0xe0] sm:$0xff] %vm1891_vm3, %v2881_v10  ;;  %v2692_v17 = vpop.f32.mrf.mxu1 }
 0x303   : > { %2894 = vrcp.f32 %v1825_v11  ;;  %v1683_v18 = vsub.f32 0.0, %v1596_v15 }
 0x304   : > { %v2883_v20 = vpop.eup %2882  ;;  %2896 = vpow2.f32 %v1767_v14  ;;  %v1600_v23 = vpop.f32.mrf.mxu1 }
 0x305   : > { %v2885_v24 = vpop.eup %2884  ;;  %v1826_v25 = vadd.f32 1.0, %v2883_v20  ;;  %v1769_v26 = vmul.f32 1.442695, %v1683_v18  ;;  %v1601_v28 = vadd.f32 %v3411_v44, %v1600_v23 }
 0x306   : > { %1921 = vst.msk [vmem:[%s3427_s13 + $0xe8] sm:$0xff] %vm1891_vm3, %v2885_v24  ;;  %v2695_v31 = vpop.f32.mrf.mxu1 }
 0x307   : > { %2898 = vrcp.f32 %v1826_v25  ;;  %v1684_v33 = vsub.f32 0.0, %v1601_v28 }
 0x308   : > { %v2887_v36 = vpop.eup %2886  ;;  %2900 = vpow2.f32 %v1769_v26  ;;  %v1603_v38 = vpop.f32.mrf.mxu1 }
 0x309   : > { %v2889_v39 = vpop.eup %2888  ;;  %v1827_v40 = vadd.f32 1.0, %v2887_v36  ;;  %v1771_v43 = vmul.f32 1.442695, %v1684_v33  ;;  %v1604_v46 = vadd.f32 %v3411_v44, %v1603_v38 }
 0x30a   : > { %1922 = vst.msk [vmem:[%s3427_s13 + $0xf0] sm:$0xff] %vm1891_vm3, %v2889_v39  ;;  %v2696_v6 = vpop.f32.mrf.mxu1 }
 0x30b   : > { %2902 = vrcp.f32 %v1827_v40  ;;  %v1685_v49 = vsub.f32 0.0, %v1604_v46 }
 0x30c   : > { %v2891_v51 = vpop.eup %2890  ;;  %2904 = vpow2.f32 %v1771_v43  ;;  %v1608_v53 = vpop.f32.mrf.mxu1 }
 0x30d   : > { %v2893_v54 = vpop.eup %2892  ;;  %v1828_v57 = vadd.f32 1.0, %v2891_v51  ;;  %v1773_v60 = vmul.f32 1.442695, %v1685_v49  ;;  %v1609_v61 = vadd.f32 %v3411_v44, %v1608_v53 }
 0x30e   : > { %1923 = vst.msk [vmem:[%s3427_s13 + $0xf8] sm:$0xff] %vm1891_vm3, %v2893_v54  ;;  %2374 = vmatprep.subr.mxu0 %v2893_v54  ;;  %v2699_v63 = vpop.f32.mrf.mxu1 }
 0x30f   : > { %2906 = vrcp.f32 %v1828_v57  ;;  %v1686_v1 = vsub.f32 0.0, %v1609_v61  ;;  %2375 = vmatpush3.msra.mxu0 %v3522_v45  ;;  %v2954_v63 = vld [vmem:[#allocation2] ss:$0 sm:$0xff] }
 0x310   : > { %v3613_v3 = vpop.eup %2894  ;;  %2908 = vpow2.f32 %v1773_v60  ;;  %2376 = vmatprep.subr.mxu0 %v2889_v39  ;;  %v1611_v4 = vpop.f32.mrf.mxu1 }
 0x311   : > { %v2897_v7 = vpop.eup %2896  ;;  %1924 = vst.msk [vmem:[%s3427_s13 + $0x100] sm:$0xff] %vm1891_vm3, %v3613_v3  ;;  %v1775_v8 = vmul.f32 1.442695, %v1686_v1  ;;  %v1612_v11 = vadd.f32 %v3411_v44, %v1611_v4  ;;  %2377 = vmatpush3.msra.mxu0 %v3513_v32 }
 0x312   : > { %v1829_v14 = vadd.f32 1.0, %v2897_v7  ;;  %2378 = vmatprep.subr.mxu0 %v2885_v24  ;;  %v2700_v15 = vpop.f32.mrf.mxu1  ;;  %v1944_v7 = vld [vmem:[%s3748_s1 + $0x18] sm:$0xff] }
 0x313   : > { %2910 = vpow2.f32 %v1775_v8  ;;  %v1687_v45 = vsub.f32 0.0, %v1612_v11  ;;  %2379 = vmatpush3.msra.mxu0 %v3507_v22 }
 0x314   : > { %v3621_v17 = vpop.eup %2898  ;;  %2912 = vrcp.f32 %v1829_v14  ;;  %2380 = vmatprep.subr.mxu0 %v2881_v10  ;;  %v1616_v18 = vpop.f32.mrf.mxu1 }
 0x315   : > { %v2901_v20 = vpop.eup %2900  ;;  %1925 = vst.msk [vmem:[%s3427_s13 + $0x108] sm:$0xff] %vm1891_vm3, %v3621_v17  ;;  %v1777_v23 = vmul.f32 1.442695, %v1687_v45  ;;  %v1617_v32 = vadd.f32 %v3411_v44, %v1616_v18  ;;  %2381 = vmatpush3.msra.mxu0 %v3501_v12 }
 0x316   : > { %v1830_v24 = vadd.f32 1.0, %v2901_v20  ;;  %2382 = vmatprep.subr.mxu0 %v3594_v56  ;;  %v2703_v25 = vpop.f32.mrf.mxu1 }
 0x317   : > { %2914 = vpow2.f32 %v1777_v23  ;;  %v1688_v22 = vsub.f32 0.0, %v1617_v32  ;;  %2383 = vmatpush3.msra.mxu0 %v3495_v0 }
 0x318   : > { %v3630_v10 = vpop.eup %2902  ;;  %2916 = vrcp.f32 %v1830_v24  ;;  %2384 = vmatprep.subr.mxu0 %v3588_v41  ;;  %v1619_v26 = vpop.f32.mrf.mxu1 }
 0x319   : > { %v2905_v28 = vpop.eup %2904  ;;  %1926 = vst.msk [vmem:[%s3427_s13 + $0x110] sm:$0xff] %vm1891_vm3, %v3630_v10  ;;  %v1779_v12 = vmul.f32 1.442695, %v1688_v22  ;;  %v1620_v31 = vadd.f32 %v3411_v44, %v1619_v26  ;;  %2385 = vmatpush3.msra.mxu0 %v3489_v55 }
 0x31a   : > { %v1831_v56 = vadd.f32 1.0, %v2905_v28  ;;  %2386 = vmatprep.subr.mxu0 %v3582_v27  ;;  %v2704_v0 = vpop.f32.mrf.mxu1 }
 0x31b   : > { %2918 = vpow2.f32 %v1779_v12  ;;  %v1689_v33 = vsub.f32 0.0, %v1620_v31  ;;  %2387 = vmatpush3.msra.mxu0 %v3483_v47 }
 0x31c   : > { %v3640_v41 = vpop.eup %2906  ;;  %2920 = vrcp.f32 %v1831_v56  ;;  %2388 = vmatprep.subr.mxu0 %v3576_v16  ;;  %v1624_v36 = vpop.f32.mrf.mxu1 }
 0x31d   : > { %v2909_v38 = vpop.eup %2908  ;;  %1927 = vst.msk [vmem:[%s3427_s13 + $0x118] sm:$0xff] %vm1891_vm3, %v3640_v41  ;;  %v1781_v39 = vmul.f32 1.442695, %v1689_v33  ;;  %v1625_v55 = vadd.f32 %v3411_v44, %v1624_v36  ;;  %2389 = vmatpush3.msra.mxu0 %v3477_v37 }
 0x31e   : > { %v1832_v27 = vadd.f32 1.0, %v2909_v38  ;;  %2390 = vmatprep.subr.mxu0 %v3570_v30  ;;  %v2707_v47 = vpop.f32.mrf.mxu1 }
 0x31f   : > { %2922 = vpow2.f32 %v1781_v39  ;;  %v1690_v40 = vsub.f32 0.0, %v1625_v55  ;;  %2391 = vmatpush3.msra.mxu0 %v3471_v29  ;;  %v1943_v47 = vld [vmem:[%s3748_s1 + $0x10] sm:$0xff] }
 0x320   : > { %v2911_v16 = vpop.eup %2910  ;;  %2924 = vrcp.f32 %v1832_v27  ;;  %2392 = vmatprep.subr.mxu0 %v3564_v59  ;;  %v1627_v43 = vpop.f32.mrf.mxu1 }
 0x321   : > { %v3651_v46 = vpop.eup %2912  ;;  %v1833_v6 = vadd.f32 1.0, %v2911_v16  ;;  %v1783_v49 = vmul.f32 1.442695, %v1690_v40  ;;  %v1628_v37 = vadd.f32 %v3411_v44, %v1627_v43  ;;  %2393 = vmatpush3.msra.mxu0 %v3465_v21 }
 0x322   : > { %1928 = vst.msk [vmem:[%s3427_s13 + $0x120] sm:$0xff] %vm1891_vm3, %v3651_v46  ;;  %2394 = vmatprep.subr.mxu0 %v3558_v48  ;;  %v2708_v29 = vpop.f32.mrf.mxu1 }
 0x323   : > { %2926 = vrcp.f32 %v1833_v6  ;;  %v1691_v30 = vsub.f32 0.0, %v1628_v37  ;;  %2395 = vmatpush3.msra.mxu0 %v3459_v13 }
 0x324   : > { %v2915_v59 = vpop.eup %2914  ;;  %2928 = vpow2.f32 %v1783_v49  ;;  %2396 = vmatprep.subr.mxu0 %v3552_v35  ;;  %v1632_v51 = vpop.f32.mrf.mxu1 }
 0x325   : > { %v3661_v53 = vpop.eup %2916  ;;  %v1834_v54 = vadd.f32 1.0, %v2915_v59  ;;  %v1785_v21 = vmul.f32 1.442695, %v1691_v30  ;;  %v1633_v57 = vadd.f32 %v3411_v44, %v1632_v51  ;;  %2397 = vmatpush3.msra.mxu0 %v3453_v5 }
 0x326   : > { %1929 = vst.msk [vmem:[%s3427_s13 + $0x128] sm:$0xff] %vm1891_vm3, %v3661_v53  ;;  %2398 = vmatprep.subr.mxu0 %v3546_v19  ;;  %v2711_v13 = vpop.f32.mrf.mxu1 }
 0x327   : > { %2930 = vrcp.f32 %v1834_v54  ;;  %v1692_v48 = vsub.f32 0.0, %v1633_v57  ;;  %2399 = vmatpush3.msra.mxu0 %v3447_v58 }
 0x328   : > { %v2919_v35 = vpop.eup %2918  ;;  %2932 = vpow2.f32 %v1785_v21  ;;  %2400 = vmatprep.subr.mxu0 %v3540_v9  ;;  %v1635_v60 = vpop.f32.mrf.mxu1  ;;  %v1941_v9 = vld [vmem:[%s3748_s1] sm:$0xff] }
 0x329   : > { %v3671_v61 = vpop.eup %2920  ;;  %v1835_v44 = vadd.f32 1.0, %v2919_v35  ;;  %v1787_v5 = vmul.f32 1.442695, %v1692_v48  ;;  %v1636_v1 = vadd.f32 %v2954_v63, %v1635_v60  ;;  %2401 = vmatpush3.msra.mxu0 %v3441_v50 }
 0x32a   : > { %1930 = vst.msk [vmem:[%s3427_s13 + $0x130] sm:$0xff] %vm1891_vm3, %v3671_v61  ;;  %2402 = vmatprep.subr.mxu0 %v3534_v62  ;;  %v2712_v19 = vpop.f32.mrf.mxu1 }
 0x32b   : > { %2934 = vrcp.f32 %v1835_v44  ;;  %v1693_v58 = vsub.f32 0.0, %v1636_v1  ;;  %2403 = vmatpush3.msra.mxu0 %v3435_v42 }
 0x32c   : > { %v2923_v4 = vpop.eup %2922  ;;  %2936 = vpow2.f32 %v1787_v5  ;;  %2404 = vmatprep.subr.mxu0 %v3528_v52  ;;  %v1640_v50 = vpop.f32.mrf.mxu1 }
 0x32d   : > { %v3686_v62 = vpop.eup %2924  ;;  %v1836_v8 = vadd.f32 1.0, %v2923_v4  ;;  %v1789_v11 = vmul.f32 1.442695, %v1693_v58  ;;  %v1641_v42 = vadd.f32 %v2954_v63, %v1640_v50  ;;  %2405 = vmatpush3.msra.mxu0 %v3429_v34 }
 0x32e   : > { %1931 = vst.msk [vmem:[%s3427_s13 + $0x138] sm:$0xff] %vm1891_vm3, %v3686_v62  ;;  %v2715_v14 = vpop.f32.mrf.mxu1  ;;  %2019 = vmatprep.subr.mxu0 %v2963_v2  ;;  %2014 = vmatmul.mubr.f32.vlgmr.msra.gmra.mxu0 %v1941_v9 }
 0x32f   : > { %2938 = vrcp.f32 %v1836_v8  ;;  %v1694_v52 = vsub.f32 0.0, %v1641_v42  ;;  %2292 = vmatprep.mubr.msk.f32.mxu0 %vm1945_vm4, %v1944_v7 }
 0x330   : > { %v2927_v15 = vpop.eup %2926  ;;  %2940 = vpow2.f32 %v1789_v11  ;;  %v1643_v45 = vpop.f32.mrf.mxu1 }
 0x331   : > { %v2929_v18 = vpop.eup %2928  ;;  %1932 = vst.msk [vmem:[%s3427_s13 + $0x140] sm:$0xff] %vm1891_vm3, %v2927_v15  ;;  %v1791_v20 = vmul.f32 1.442695, %v1694_v52 }
 0x332   : > { %v1837_v34 = vadd.f32 1.0, %v2929_v18  ;;  %v2716_v23 = vpop.f32.mrf.mxu1 }
 0x333   : > { %2942 = vpow2.f32 %v1791_v20 }
 0x334   : > { %v2931_v32 = vpop.eup %2930  ;;  %2944 = vrcp.f32 %v1837_v34 }
 0x335   : > { %v2933_v24 = vpop.eup %2932  ;;  %1933 = vst.msk [vmem:[%s3427_s13 + $0x148] sm:$0xff] %vm1891_vm3, %v2931_v32 }
 0x336   : > { %v1838_v25 = vadd.f32 1.0, %v2933_v24 }
 0x338   : > { %v2935_v22 = vpop.eup %2934  ;;  %2946 = vrcp.f32 %v1838_v25 }
 0x339   : > { %v2937_v26 = vpop.eup %2936  ;;  %1934 = vst.msk [vmem:[%s3427_s13 + $0x150] sm:$0xff] %vm1891_vm3, %v2935_v22 }
 0x33a   : > { %v1839_v28 = vadd.f32 1.0, %v2937_v26 }
 0x33c   : > { %v2939_v12 = vpop.eup %2938  ;;  %2948 = vrcp.f32 %v1839_v28 }
 0x33d   : > { %v2941_v31 = vpop.eup %2940  ;;  %1935 = vst.msk [vmem:[%s3427_s13 + $0x158] sm:$0xff] %vm1891_vm3, %v2939_v12 }
 0x33e   : > { %v1840_v56 = vadd.f32 1.0, %v2941_v31 }
 0x340   : > { %v2943_v0 = vpop.eup %2942  ;;  %2950 = vrcp.f32 %v1840_v56 }
 0x341   : > { %v2945_v33 = vpop.eup %2944  ;;  %v1841_v36 = vadd.f32 1.0, %v2943_v0 }
 0x342   : > { %1936 = vst.msk [vmem:[%s3427_s13 + $0x160] sm:$0xff] %vm1891_vm3, %v2945_v33 }
 0x343   : > { %2952 = vrcp.f32 %v1841_v36 }
 0x345   : > { %v2947_v38 = vpop.eup %2946 }
 0x346   : > { %1937 = vst.msk [vmem:[%s3427_s13 + $0x168] sm:$0xff] %vm1891_vm3, %v2947_v38 }
 0x349   : > { %v2949_v39 = vpop.eup %2948 }
 0x34a   : > { %1938 = vst.msk [vmem:[%s3427_s13 + $0x170] sm:$0xff] %vm1891_vm3, %v2949_v39 }
 0x34d   : > { %v2951_v55 = vpop.eup %2950 }
 0x34e   : > { %1939 = vst.msk [vmem:[%s3427_s13 + $0x178] sm:$0xff] %vm1891_vm3, %v2951_v55  ;;  %2020 = vmatpush1.msra.mxu0 %v2951_v55 }
 0x34f   : > { %2021 = vmatprep.subr.mxu0 %v2963_v2 }
 0x350   : > { %v2953_v27 = vpop.eup %2952  ;;  %2022 = vmatpush1.msra.mxu0 %v2949_v39 }
 0x351   : > { %1940 = vst.msk [vmem:[%s3427_s13 + $0x180] sm:$0xff] %vm1891_vm3, %v2953_v27  ;;  %2023 = vmatprep.subr.mxu0 %v2963_v2 }
 0x352   : > { %2024 = vmatpush1.msra.mxu0 %v2947_v38 }
 0x353   : > { %2025 = vmatprep.subr.mxu0 %v2963_v2 }
 0x354   : > { %2026 = vmatpush1.msra.mxu0 %v2945_v33 }
 0x355   : > { %2027 = vmatprep.subr.mxu0 %v2963_v2 }
 0x356   : > { %2028 = vmatpush1.msra.mxu0 %v2939_v12 }
 0x357   : > { %2029 = vmatprep.subr.mxu0 %v2963_v2 }
 0x358   : > { %2030 = vmatpush1.msra.mxu0 %v2935_v22 }
 0x359   : > { %2031 = vmatprep.subr.mxu0 %v2963_v2 }
 0x35a   : > { %2032 = vmatpush1.msra.mxu0 %v2931_v32 }
 0x35b   : > { %2033 = vmatprep.subr.mxu0 %v2963_v2 }
 0x35c   : > { %2034 = vmatpush1.msra.mxu0 %v2927_v15 }
 0x35d   : > { %2035 = vmatprep.subr.mxu0 %v2963_v2 }
 0x35e   : > { %2036 = vmatpush1.msra.mxu0 %v3686_v62 }
 0x35f   : > { %2037 = vmatprep.subr.mxu0 %v2963_v2 }
 0x360   : > { %2038 = vmatpush1.msra.mxu0 %v3671_v61 }
 0x361   : > { %2039 = vmatprep.subr.mxu0 %v2963_v2 }
 0x362   : > { %2040 = vmatpush1.msra.mxu0 %v3661_v53 }
 0x363   : > { %2041 = vmatprep.subr.mxu0 %v2963_v2 }
 0x364   : > { %2042 = vmatpush1.msra.mxu0 %v3651_v46 }
 0x365   : > { %2043 = vmatprep.subr.mxu0 %v2963_v2 }
 0x366   : > { %2044 = vmatpush1.msra.mxu0 %v3640_v41 }
 0x367   : > { %2045 = vmatprep.subr.mxu0 %v2963_v2 }
 0x368   : > { %2046 = vmatpush1.msra.mxu0 %v3630_v10 }
 0x369   : > { %2047 = vmatprep.subr.mxu0 %v2963_v2 }
 0x36a   : > { %2048 = vmatpush1.msra.mxu0 %v3621_v17 }
 0x36b   : > { %2049 = vmatprep.subr.mxu0 %v2963_v2 }
 0x36c   : > { %2050 = vmatpush1.msra.mxu0 %v3613_v3 }
 0x36d   : > { %2081 = vmatprep.subr.mxu0 %v2963_v2 }
 0x36e   : > { %2082 = vmatpush2.msra.mxu0 %v2953_v27 }
 0x36f   : > { %2084 = vmatmul.mubr.f32.vlgmr.msra.gmra.mxu0 %v1943_v47 }
 0x3ee   : > { %v2406_v41 = vpop.f32.mrf.mxu0 }
 0x3f0   : > { %v2407_v10 = vpop.f32.mrf.mxu0 }
 0x3f1   : > { %v2408_v40 = vadd.f32 %v2407_v10, %v2406_v41 }
 0x42f   : > { %v2085_v17 = vpop.f32.mrf.mxu0 }
 0x430   : > { %v2086_v3 = vadd.f32 %v2408_v40, %v2085_v17 }
 0x431   : > { %v2087_v16 = vpop.f32.mrf.mxu0 }
 0x432   : > { %2089 = vst.msk [vmem:[%s348_s24] sm:$0xff] %vm1891_vm3, %v2086_v3 }
 0x433 PF: > { %s22_s11 = sadd.s32 1, %s2961_s11  }
 0x434   : > { %p19_p5 = scmp.ge.s32.totalorder %s22_s11, 4  }
 0x436   :  { %21 = sbr.rel (!%p19_p5) target bundleno = 3 (0x3), region = 94 }

// kernel: faster_rcnn_forward.7
= control target key start
LH: loop header
LB: loop body
LE: loop exit
PB: predicated region body
PF: predicated region fallthrough
CT: control target
= control target key end

     0   :  { %s2966_s0 = inlined_call_operand.vmem [shape: bf16[16,1568], index: 0, kind: input, shape index: {}]   ;;  %s2967_s1 = inlined_call_operand.vmem [shape: bf16[1568,64], index: 1, kind: input, shape index: {}]   ;;  %s2968_s2 = inlined_call_operand.vmem [shape: f32[1,64], index: 2, kind: input, shape index: {}]   ;;  %s2969_s3 = inlined_call_operand.vmem [shape: bf16[64,64], index: 3, kind: input, shape index: {}]   ;;  %s2970_s4 = inlined_call_operand.vmem [shape: f32[1,64], index: 4, kind: input, shape index: {}]   ;;  %s2971_s5 = inlined_call_operand.vmem [shape: bf16[64,5], index: 5, kind: input, shape index: {}]   ;;  %s2972_s6 = inlined_call_operand.vmem [shape: f32[1,5], index: 6, kind: input, shape index: {}]   ;;  %s2973_s7 = inlined_call_operand.vmem [shape: bf16[64,20], index: 7, kind: input, shape index: {}]   ;;  %s2974_s8 = inlined_call_operand.vmem [shape: f32[1,20], index: 8, kind: input, shape index: {}]   ;;  %s2975_s9 = inlined_call_operand.vmem [shape: f32[16,5], index: 9, kind: output, shape index: {0}]   ;;  %s2976_s10 = inlined_call_operand.hbm [shape: f32[16,20], index: 10, kind: output, shape index: {1}]  }
   0x1   :  { %2977 = sst [smem:[#allocation6_spill]] %s2966_s0 }
   0x2   :  { %16 = vsyncpa [#allocation3], 0 }
   0x3   :  { %18 = vsyncpa [#allocation3 + $0x1], 0  ;;  %s2489_s13 = smov 0   ;;  %s2491_s14 = smov 0  }
   0x4   :  { %s2493_s15 = smov 0   ;;  %s2495_s16 = smov 0  }
   0x5 LB: > { %s2510_s17 = sadd.s32 4294967295, %s2429_s16   ;;  %s1864_s18 = sadd.s32 4294967294, %s2429_s16   ;;  %s2429_s16 = sphi %s2495_s16, %s2986_s16   ;;  %s2425_s15 = sphi %s2493_s15, %s2985_s15   ;;  %s2421_s14 = sphi %s2491_s14, %s2984_s14   ;;  %s2417_s13 = sphi %s2489_s13, %s2983_s13  }
   0x6   : > { %s2514_s19 = sadd.s32 1, %s2429_s16   ;;  %s251_s20 = sadd.s32 1, %s2425_s15 }
   0x7   : > { %s248_s21 = ssub.s32 %s2429_s16, %s2514_s19  ;;  %p261_p0 = scmp.ne.s32.totalorder %s2425_s15, %s2421_s14 }
   0x8   : > { %p249_p1 = scmp.eq.s32.totalorder %s248_s21, 0  ;;  %p262_p2 = scmp.eq.s32.totalorder %s2510_s17, 1 }
   0x9   : > { %p267_p3 = scmp.ne.s32.totalorder %s2421_s14, %s2417_s13  ;;  %p268_p4 = scmp.eq.s32.totalorder %s1864_s18, 1 }
   0xa   : > { %s2525_s22 = scalar_select %p249_p1, %s2425_s15, %s251_s20  }
   0xb   : > { %p2527_p5 = por %p262_p2, %p261_p0  ;;  %p2531_p6 = por %p268_p4, %p267_p3 }
   0xc   : > { %2978 = sst [smem:[#allocation5_spill]] %s2525_s22  ;;  %p1867_p7 = scmp.ge.s32.totalorder %s2429_s16, 1 }
   0xd   : > { %p318_p8 = scmp.lt.s32.totalorder %s2429_s16, 3 }
   0xf   : > { %p319_p9 = pnand %p1867_p7, %p318_p8 }
  0x10   : > { %p360_p10 = scmp.lt.s32.totalorder (!%p319_p9), %s2510_s17, 1  ;;  %s2981_s0 = sld [smem:[#allocation6_spill]] (!%p319_p9) }
  0x11   : > { %322 = sbr.rel (%p319_p9) target bundleno = 1034 (0x40a), region = 56  ;;  %s357_s27 = sand.u32 (!%p319_p9), 1, %s2421_s14  }
  0x12   : > { %s1868_s28 = sshll.u32 (!%p319_p9), %s357_s27, 3  ;;  %s2003_s12 = sshll.u32 (!%p319_p9), %s2510_s17, 7 }
  0x13   : > { %s359_s11 = scalar_lea.vmem (!%p319_p9), [#allocation2], %s1868_s28  ;;  %s1779_s28 = scalar_lea.hbm (!%p319_p9), %s2976_s10, %s2003_s12 }
  0x14   : > { %s1781_s18 = sshll.u32 (!%p319_p9), %s359_s11, 4  ;;  %s1765_s29 = scalar_lea.sflag (!%p319_p9), [#allocation3], %s357_s27  ;;  %s1782_s18 = int_to_ptr.vmem [resolvable:$true] %s1781_s18 }
  0x15   : > { %s2369_s22 = scalar_lea.vmem (!%p319_p9), %s1782_s18, 128 }
  0x16   : > { %v2242_v0 = vld [vmem:[%s2967_s1 + $0x78] sm:$0xff]   ;;  %v2246_v4 = vld [vmem:[%s2967_s1 + $0x70] sm:$0xff]   ;;  %v2250_v8 = vld [vmem:[%s2967_s1 + $0x68] sm:$0xff]   ;;  %s2605_s25 = scalar_select %p360_p10, %s2510_s17, 1  ;;  %vm1213_vm0 = vcmask 261120   ;;  %vm2432_vm1 = vmmov 0  }
  0x17   : > { %v2243_v1 = vld [vmem:[%s2967_s1 + $0xf8] sm:$0xff]   ;;  %2006 = vmatprep.subr.bf16.mxu0 %v2242_v0  ;;  %v2247_v5 = vld [vmem:[%s2967_s1 + $0xf0] sm:$0xff]   ;;  %v2251_v9 = vld [vmem:[%s2967_s1 + $0xe8] sm:$0xff]   ;;  %vm1538_vm2 = vcmask 523264   ;;  %vm1747_vm3 = vcmask 39936   ;;  %vm1745_vm4 = vcmask 162816   ;;  %p2370_p11 = scmp.ne.s32.totalorder %s1782_s18, %s2369_s22 }
  0x18   : > { %v2244_v2 = vld [vmem:[%s2967_s1 + $0x38] sm:$0xff]   ;;  %2028 = vmatprep.subr.bf16.mxu1 %v2243_v1  ;;  %v2248_v6 = vld [vmem:[%s2967_s1 + $0x30] sm:$0xff]   ;;  %v2252_v10 = vld [vmem:[%s2967_s1 + $0x28] sm:$0xff]   ;;  %s2200_s20 = smul.u32 52, %s2605_s25 }
  0x19   : > { %v2245_v3 = vld [vmem:[%s2967_s1 + $0xb8] sm:$0xff]   ;;  %2007 = vmatpush3.bf16.msra.mxu0 %v2244_v2  ;;  %v2249_v7 = vld [vmem:[%s2967_s1 + $0xb0] sm:$0xff]   ;;  %v2253_v11 = vld [vmem:[%s2967_s1 + $0xa8] sm:$0xff]   ;;  %p2371_p12 = pnand %p2370_p11, %p2527_p5 }
  0x1a   : > { %2029 = vmatpush3.bf16.msra.mxu1 %v2245_v3  ;;  %2008 = vmatprep.subr.bf16.mxu0 %v2246_v4  ;;  %v2254_v12 = vld [vmem:[%s2967_s1 + $0x60] sm:$0xff]   ;;  %v2258_v16 = vld [vmem:[%s2967_s1 + $0x58] sm:$0xff]   ;;  %v2262_v20 = vld [vmem:[%s2967_s1 + $0x50] sm:$0xff]   ;;  %s2635_s21 = scalar_lea.vmem %s2981_s0, %s2200_s20  ;;  %s2433_s20 = smov [#allocation2]  }
  0x1b   : > { %2030 = vmatprep.subr.bf16.mxu1 %v2247_v5  ;;  %v2255_v13 = vld [vmem:[%s2967_s1 + $0xe0] sm:$0xff]   ;;  %v2259_v17 = vld [vmem:[%s2967_s1 + $0xd8] sm:$0xff]   ;;  %v2263_v21 = vld [vmem:[%s2967_s1 + $0xd0] sm:$0xff]   ;;  %p2372_p13 = pneg %p2371_p12  ;;  %s2373_s30 = sshll.u32 %s2433_s20, 4  ;;  %s2374_s30 = int_to_ptr.vmem [resolvable:$false] %s2373_s30 }
  0x1c   : > { %v2256_v14 = vld [vmem:[%s2967_s1 + $0x20] sm:$0xff]   ;;  %v2260_v18 = vld [vmem:[%s2967_s1 + $0x18] sm:$0xff]   ;;  %v2264_v22 = vld [vmem:[%s2967_s1 + $0x10] sm:$0xff]   ;;  %s2375_s0 = scalar_lea.vmem %s2374_s30, 256  ;;  %p2376_p0 = scmp.lt.s32.totalorder %s1782_s18, %s2374_s30 }
  0x1d   : > { %2009 = vmatpush3.bf16.msra.mxu0 %v2248_v6  ;;  %v2257_v15 = vld [vmem:[%s2967_s1 + $0xa0] sm:$0xff]   ;;  %v2261_v19 = vld [vmem:[%s2967_s1 + $0x98] sm:$0xff]   ;;  %v2265_v23 = vld [vmem:[%s2967_s1 + $0x90] sm:$0xff]   ;;  %p2377_p1 = scmp.lt.s32.totalorder %s2375_s0, %s2369_s22 }
  0x1e   : > { %2031 = vmatpush3.bf16.msra.mxu1 %v2249_v7  ;;  %2010 = vmatprep.subr.bf16.mxu0 %v2250_v8  ;;  %v2266_v24 = vld [vmem:[%s2967_s1 + $0x48] sm:$0xff]   ;;  %v2270_v28 = vld [vmem:[%s2967_s1 + $0x40] sm:$0xff]   ;;  %v2278_v38 = vld [vmem:[%s2967_s1 + $0x178] sm:$0xff]  }
  0x1f   : > { %2032 = vmatprep.subr.bf16.mxu1 %v2251_v9  ;;  %v2267_v25 = vld [vmem:[%s2967_s1 + $0xc8] sm:$0xff]   ;;  %v2271_v29 = vld [vmem:[%s2967_s1 + $0xc0] sm:$0xff]   ;;  %v2279_v39 = vld [vmem:[%s2967_s1 + $0x1f8] sm:$0xff]   ;;  %p2378_p2 = por %p2377_p1, %p2376_p0 }
  0x20   : > { %v2268_v26 = vld [vmem:[%s2967_s1 + $0x8] sm:$0xff]   ;;  %v2272_v30 = vld [vmem:[%s2967_s1] sm:$0xff]   ;;  %v2280_v40 = vld [vmem:[%s2967_s1 + $0x138] sm:$0xff]  }
  0x21   : > { %2011 = vmatpush3.bf16.msra.mxu0 %v2252_v10  ;;  %v2269_v27 = vld [vmem:[%s2967_s1 + $0x88] sm:$0xff]   ;;  %v2273_v31 = vld [vmem:[%s2967_s1 + $0x80] sm:$0xff]   ;;  %v2281_v41 = vld [vmem:[%s2967_s1 + $0x1b8] sm:$0xff]   ;;  %p2379_p3 = pnand %p2378_p2, %p2372_p13 }
  0x22   : > { %2033 = vmatpush3.bf16.msra.mxu1 %v2253_v11  ;;  %2012 = vmatprep.subr.bf16.mxu0 %v2254_v12  ;;  %v370_v32 = vld [vmem:[%s2635_s21] sm:$0xff]  ;;  %v371_v33 = vld [vmem:[%s2635_s21 + $0x8] sm:$0xff]  ;;  %v2282_v42 = vld [vmem:[%s2967_s1 + $0x170] sm:$0xff]  }
  0x23   : > { %2034 = vmatprep.subr.bf16.mxu1 %v2255_v13  ;;  %v1872_v34 = vcombine.low %v370_v32, %v370_v32  ;;  %v1873_v35 = vcombine.high %v370_v32, %v370_v32  ;;  %v1874_v36 = vcombine.low %v371_v33, %v371_v33  ;;  %v1875_v37 = vcombine.high %v371_v33, %v371_v33  ;;  %v2283_v43 = vld [vmem:[%s2967_s1 + $0x1f0] sm:$0xff]   ;;  %v2286_v46 = vld [vmem:[%s2967_s1 + $0x168] sm:$0xff]   ;;  %v2290_v50 = vld [vmem:[%s2967_s1 + $0x160] sm:$0xff]  }
  0x24   : > { %v2284_v44 = vld [vmem:[%s2967_s1 + $0x130] sm:$0xff]   ;;  %v2287_v47 = vld [vmem:[%s2967_s1 + $0x1e8] sm:$0xff]   ;;  %v2291_v51 = vld [vmem:[%s2967_s1 + $0x1e0] sm:$0xff]  }
  0x25   : > { %2013 = vmatpush3.bf16.msra.mxu0 %v2256_v14  ;;  %1249 = vmatprep.mubr.bf16.mxu0 %v1873_v35  ;;  %v2285_v45 = vld [vmem:[%s2967_s1 + $0x1b0] sm:$0xff]   ;;  %v2288_v48 = vld [vmem:[%s2967_s1 + $0x128] sm:$0xff]   ;;  %v2292_v52 = vld [vmem:[%s2967_s1 + $0x120] sm:$0xff]  }
  0x26   : > { %2035 = vmatpush3.bf16.msra.mxu1 %v2257_v15  ;;  %2014 = vmatprep.subr.bf16.mxu0 %v2258_v16  ;;  %v2289_v49 = vld [vmem:[%s2967_s1 + $0x1a8] sm:$0xff]   ;;  %v2293_v53 = vld [vmem:[%s2967_s1 + $0x1a0] sm:$0xff]   ;;  %v2294_v54 = vld [vmem:[%s2967_s1 + $0x158] sm:$0xff]  }
  0x27   : > { %2036 = vmatprep.subr.bf16.mxu1 %v2259_v17  ;;  %1289 = vmatprep.mubr.bf16.mxu1 %v1875_v37  ;;  %v2295_v55 = vld [vmem:[%s2967_s1 + $0x1d8] sm:$0xff]   ;;  %v2298_v58 = vld [vmem:[%s2967_s1 + $0x150] sm:$0xff]   ;;  %v2302_v62 = vld [vmem:[%s2967_s1 + $0x148] sm:$0xff]  }
  0x28   : > { %v2296_v56 = vld [vmem:[%s2967_s1 + $0x118] sm:$0xff]   ;;  %v2299_v59 = vld [vmem:[%s2967_s1 + $0x1d0] sm:$0xff]   ;;  %v2303_v63 = vld [vmem:[%s2967_s1 + $0x1c8] sm:$0xff]  }
  0x29   : > { %2015 = vmatpush3.bf16.msra.mxu0 %v2260_v18  ;;  %v2297_v57 = vld [vmem:[%s2967_s1 + $0x198] sm:$0xff]   ;;  %v2300_v60 = vld [vmem:[%s2967_s1 + $0x110] sm:$0xff]   ;;  %v2304_v0 = vld [vmem:[%s2967_s1 + $0x108] sm:$0xff]  }
  0x2a   : > { %2037 = vmatpush3.bf16.msra.mxu1 %v2261_v19  ;;  %2016 = vmatprep.subr.bf16.mxu0 %v2262_v20  ;;  %v2301_v61 = vld [vmem:[%s2967_s1 + $0x190] sm:$0xff]   ;;  %v2305_v1 = vld [vmem:[%s2967_s1 + $0x188] sm:$0xff]   ;;  %v2306_v2 = vld [vmem:[%s2967_s1 + $0x140] sm:$0xff]  }
  0x2b   : > { %2038 = vmatprep.subr.bf16.mxu1 %v2263_v21  ;;  %v2307_v3 = vld [vmem:[%s2967_s1 + $0x1c0] sm:$0xff]   ;;  %v372_v6 = vld [vmem:[%s2635_s21 + $0x10] sm:$0xff]  ;;  %v373_v9 = vld [vmem:[%s2635_s21 + $0x18] sm:$0xff] }
  0x2c   : > { %v2308_v4 = vld [vmem:[%s2967_s1 + $0x100] sm:$0xff]   ;;  %v1876_v7 = vcombine.low %v372_v6, %v372_v6  ;;  %v1877_v8 = vcombine.high %v372_v6, %v372_v6  ;;  %v1878_v10 = vcombine.low %v373_v9, %v373_v9  ;;  %v1879_v11 = vcombine.high %v373_v9, %v373_v9  ;;  %v2314_v12 = vld [vmem:[%s2967_s1 + $0x278] sm:$0xff]   ;;  %v2318_v16 = vld [vmem:[%s2967_s1 + $0x270] sm:$0xff]  }
  0x2d   : > { %2017 = vmatpush3.bf16.msra.mxu0 %v2264_v22  ;;  %v2309_v5 = vld [vmem:[%s2967_s1 + $0x180] sm:$0xff]   ;;  %v2315_v13 = vld [vmem:[%s2967_s1 + $0x2f8] sm:$0xff]   ;;  %v2319_v17 = vld [vmem:[%s2967_s1 + $0x2f0] sm:$0xff]  }
  0x2e   : > { %2039 = vmatpush3.bf16.msra.mxu1 %v2265_v23  ;;  %2018 = vmatprep.subr.bf16.mxu0 %v2266_v24  ;;  %v2316_v14 = vld [vmem:[%s2967_s1 + $0x238] sm:$0xff]   ;;  %v2320_v18 = vld [vmem:[%s2967_s1 + $0x230] sm:$0xff]   ;;  %v2322_v20 = vld [vmem:[%s2967_s1 + $0x268] sm:$0xff]  }
  0x2f   : > { %2040 = vmatprep.subr.bf16.mxu1 %v2267_v25  ;;  %v2317_v15 = vld [vmem:[%s2967_s1 + $0x2b8] sm:$0xff]   ;;  %v2321_v19 = vld [vmem:[%s2967_s1 + $0x2b0] sm:$0xff]   ;;  %v2323_v21 = vld [vmem:[%s2967_s1 + $0x2e8] sm:$0xff]  }
  0x30   : > { %v2324_v22 = vld [vmem:[%s2967_s1 + $0x228] sm:$0xff]   ;;  %v2326_v24 = vld [vmem:[%s2967_s1 + $0x260] sm:$0xff]   ;;  %v2334_v32 = vld [vmem:[%s2967_s1 + $0x250] sm:$0xff]  }
  0x31   : > { %2019 = vmatpush3.bf16.msra.mxu0 %v2268_v26  ;;  %v2325_v23 = vld [vmem:[%s2967_s1 + $0x2a8] sm:$0xff]   ;;  %v2327_v25 = vld [vmem:[%s2967_s1 + $0x2e0] sm:$0xff]   ;;  %v2335_v33 = vld [vmem:[%s2967_s1 + $0x2d0] sm:$0xff]  }
  0x32   : > { %2041 = vmatpush3.bf16.msra.mxu1 %v2269_v27  ;;  %2020 = vmatprep.subr.bf16.mxu0 %v2270_v28  ;;  %v2328_v26 = vld [vmem:[%s2967_s1 + $0x220] sm:$0xff]   ;;  %v2330_v28 = vld [vmem:[%s2967_s1 + $0x258] sm:$0xff]   ;;  %v2337_v35 = vld [vmem:[%s2967_s1 + $0x290] sm:$0xff]  }
  0x33   : > { %2042 = vmatprep.subr.bf16.mxu1 %v2271_v29  ;;  %v2329_v27 = vld [vmem:[%s2967_s1 + $0x2a0] sm:$0xff]   ;;  %v2331_v29 = vld [vmem:[%s2967_s1 + $0x2d8] sm:$0xff]   ;;  %v2339_v37 = vld [vmem:[%s2967_s1 + $0x2c8] sm:$0xff]  }
  0x35   : > { %2021 = vmatpush3.bf16.msra.mxu0 %v2272_v30  ;;  %v2332_v30 = vld [vmem:[%s2967_s1 + $0x218] sm:$0xff]  }
  0x36   : > { %2043 = vmatpush3.bf16.msra.mxu1 %v2273_v31  ;;  %2050 = vmatprep.subr.bf16.mxu0 %v2278_v38  ;;  %v2333_v31 = vld [vmem:[%s2967_s1 + $0x298] sm:$0xff]   ;;  %v2340_v38 = vld [vmem:[%s2967_s1 + $0x208] sm:$0xff]  }
  0x37   : > { %2072 = vmatprep.subr.bf16.mxu1 %v2279_v39  ;;  %v2341_v39 = vld [vmem:[%s2967_s1 + $0x288] sm:$0xff]  }
  0x38   : > { %1250 = vmatmul.mubr.bf16.vlgmr.msra.gmra.mxu0 %v1872_v34  ;;  %v2336_v34 = vld [vmem:[%s2967_s1 + $0x210] sm:$0xff]  }
  0x39   : > { %1290 = vmatmul.mubr.bf16.vlgmr.msra.gmra.mxu1 %v1874_v36  ;;  %2051 = vmatpush3.bf16.msra.mxu0 %v2280_v40  ;;  %v2338_v36 = vld [vmem:[%s2967_s1 + $0x248] sm:$0xff]   ;;  %v2342_v40 = vld [vmem:[%s2967_s1 + $0x240] sm:$0xff]  }
  0x3a   : > { %2073 = vmatpush3.bf16.msra.mxu1 %v2281_v41  ;;  %2052 = vmatprep.subr.bf16.mxu0 %v2282_v42  ;;  %v2343_v41 = vld [vmem:[%s2967_s1 + $0x2c0] sm:$0xff]  }
  0x3b   : > { %2074 = vmatprep.subr.bf16.mxu1 %v2283_v43  ;;  %1329 = vmatprep.mubr.bf16.mxu0 %v1877_v8  ;;  %v2344_v42 = vld [vmem:[%s2967_s1 + $0x200] sm:$0xff]  }
  0x3c   : > { %1369 = vmatprep.mubr.bf16.mxu1 %v1879_v11  ;;  %v2345_v43 = vld [vmem:[%s2967_s1 + $0x280] sm:$0xff]  }
  0x3d   : > { %2053 = vmatpush3.bf16.msra.mxu0 %v2284_v44  ;;  %v374_v44 = vld [vmem:[%s2635_s21 + $0x20] sm:$0xff] }
  0x3e   : > { %2075 = vmatpush3.bf16.msra.mxu1 %v2285_v45  ;;  %2054 = vmatprep.subr.bf16.mxu0 %v2286_v46  ;;  %v375_v45 = vld [vmem:[%s2635_s21 + $0x28] sm:$0xff]  ;;  %v1880_v46 = vcombine.low %v374_v44, %v374_v44 }
  0x3f   : > { %2076 = vmatprep.subr.bf16.mxu1 %v2287_v47  ;;  %v1881_v47 = vcombine.high %v374_v44, %v374_v44  ;;  %v2363_v44 = vld [vmem:[%s2971_s5] sm:$0xff]  }
  0x41   : > { %2055 = vmatpush3.bf16.msra.mxu0 %v2288_v48  ;;  %v1882_v48 = vcombine.low %v375_v45, %v375_v45 }
  0x42   : > { %2077 = vmatpush3.bf16.msra.mxu1 %v2289_v49  ;;  %2056 = vmatprep.subr.bf16.mxu0 %v2290_v50  ;;  %v1883_v49 = vcombine.high %v375_v45, %v375_v45  ;;  %v2350_v50 = vld [vmem:[%s2967_s1 + $0x308] sm:$0xff]   ;;  %v2364_v45 = vld [vmem:[%s2973_s7] sm:$0xff]  }
  0x43   : > { %2078 = vmatprep.subr.bf16.mxu1 %v2291_v51  ;;  %v2431_v51 = vmov 0.0  }
  0x45   : > { %2057 = vmatpush3.bf16.msra.mxu0 %v2292_v52  ;;  %v2351_v52 = vld [vmem:[%s2967_s1 + $0x300] sm:$0xff]  }
  0x46   : > { %2079 = vmatpush3.bf16.msra.mxu1 %v2293_v53  ;;  %2058 = vmatprep.subr.bf16.mxu0 %v2294_v54  ;;  %v2352_v53 = vld [vmem:[%s2635_s21 + $0x30] ss:$0 sps:$4 sm:$0xff]   ;;  %v2353_v54 = vld [vmem:[%s2969_s3 + $0x18] sm:$0xff]  }
  0x47   : > { %2080 = vmatprep.subr.bf16.mxu1 %v2295_v55  ;;  %v2354_v55 = vld [vmem:[%s2969_s3 + $0x10] sm:$0xff]  }
  0x49   : > { %2059 = vmatpush3.bf16.msra.mxu0 %v2296_v56  ;;  %v2355_v56 = vld [vmem:[%s2969_s3 + $0x8] sm:$0xff]  }
  0x4a   : > { %2081 = vmatpush3.bf16.msra.mxu1 %v2297_v57  ;;  %2060 = vmatprep.subr.bf16.mxu0 %v2298_v58  ;;  %v2356_v57 = vld [vmem:[%s2969_s3] sm:$0xff]   ;;  %v2357_v58 = vld [vmem:[%s2971_s5 + $0x18] sm:$0xff]  }
  0x4b   : > { %2082 = vmatprep.subr.bf16.mxu1 %v2299_v59  ;;  %v2359_v59 = vld [vmem:[%s2971_s5 + $0x10] sm:$0xff]  }
  0x4d   : > { %2061 = vmatpush3.bf16.msra.mxu0 %v2300_v60 }
  0x4e   : > { %2083 = vmatpush3.bf16.msra.mxu1 %v2301_v61  ;;  %2062 = vmatprep.subr.bf16.mxu0 %v2302_v62 }
  0x4f   : > { %2084 = vmatprep.subr.bf16.mxu1 %v2303_v63 }
  0x51   : > { %2063 = vmatpush3.bf16.msra.mxu0 %v2304_v0 }
  0x52   : > { %2085 = vmatpush3.bf16.msra.mxu1 %v2305_v1  ;;  %2064 = vmatprep.subr.bf16.mxu0 %v2306_v2 }
  0x53   : > { %2086 = vmatprep.subr.bf16.mxu1 %v2307_v3 }
  0x55   : > { %2065 = vmatpush3.bf16.msra.mxu0 %v2308_v4 }
  0x56   : > { %2087 = vmatpush3.bf16.msra.mxu1 %v2309_v5  ;;  %2094 = vmatprep.subr.bf16.mxu0 %v2314_v12 }
  0x57   : > { %2116 = vmatprep.subr.bf16.mxu1 %v2315_v13  ;;  %v1871_v13 = vld [vmem:[%s2968_s2] ss:$0 sm:$0xff] }
  0x58   : > { %1330 = vmatmul.mubr.bf16.vlgmr.msra.gmra.mxu0 %v1876_v7 }
  0x59   : > { %1370 = vmatmul.mubr.bf16.vlgmr.msra.gmra.mxu1 %v1878_v10  ;;  %2095 = vmatpush3.bf16.msra.mxu0 %v2316_v14 }
  0x5a   : > { %2117 = vmatpush3.bf16.msra.mxu1 %v2317_v15  ;;  %2096 = vmatprep.subr.bf16.mxu0 %v2318_v16 }
  0x5b   : > { %2118 = vmatprep.subr.bf16.mxu1 %v2319_v17  ;;  %1409 = vmatprep.mubr.bf16.mxu0 %v1881_v47 }
  0x5c   : > { %1449 = vmatprep.mubr.bf16.mxu1 %v1883_v49 }
  0x5d   : > { %2097 = vmatpush3.bf16.msra.mxu0 %v2320_v18 }
  0x5e   : > { %2119 = vmatpush3.bf16.msra.mxu1 %v2321_v19  ;;  %2098 = vmatprep.subr.bf16.mxu0 %v2322_v20 }
  0x5f   : > { %2120 = vmatprep.subr.bf16.mxu1 %v2323_v21 }
  0x61   : > { %2099 = vmatpush3.bf16.msra.mxu0 %v2324_v22 }
  0x62   : > { %2121 = vmatpush3.bf16.msra.mxu1 %v2325_v23  ;;  %2100 = vmatprep.subr.bf16.mxu0 %v2326_v24 }
  0x63   : > { %2122 = vmatprep.subr.bf16.mxu1 %v2327_v25 }
  0x65   : > { %2101 = vmatpush3.bf16.msra.mxu0 %v2328_v26 }
  0x66   : > { %2123 = vmatpush3.bf16.msra.mxu1 %v2329_v27  ;;  %2102 = vmatprep.subr.bf16.mxu0 %v2330_v28 }
  0x67   : > { %2124 = vmatprep.subr.bf16.mxu1 %v2331_v29 }
  0x69   : > { %2103 = vmatpush3.bf16.msra.mxu0 %v2332_v30 }
  0x6a   : > { %2125 = vmatpush3.bf16.msra.mxu1 %v2333_v31  ;;  %2104 = vmatprep.subr.bf16.mxu0 %v2334_v32 }
  0x6b   : > { %2126 = vmatprep.subr.bf16.mxu1 %v2335_v33 }
  0x6d   : > { %2105 = vmatpush3.bf16.msra.mxu0 %v2336_v34 }
  0x6e   : > { %2127 = vmatpush3.bf16.msra.mxu1 %v2337_v35  ;;  %2106 = vmatprep.subr.bf16.mxu0 %v2338_v36 }
  0x6f   : > { %2128 = vmatprep.subr.bf16.mxu1 %v2339_v37 }
  0x71   : > { %2107 = vmatpush3.bf16.msra.mxu0 %v2340_v38  ;;  %v2358_v38 = vld [vmem:[%s2973_s7 + $0x18] sm:$0xff]  }
  0x72   : > { %2129 = vmatpush3.bf16.msra.mxu1 %v2341_v39  ;;  %2108 = vmatprep.subr.bf16.mxu0 %v2342_v40 }
  0x73   : > { %2130 = vmatprep.subr.bf16.mxu1 %v2343_v41  ;;  %v2360_v41 = vld [vmem:[%s2973_s7 + $0x10] sm:$0xff]  }
  0x75   : > { %2109 = vmatpush3.bf16.msra.mxu0 %v2344_v42  ;;  %v2361_v42 = vld [vmem:[%s2971_s5 + $0x8] sm:$0xff]  }
  0x76   : > { %2131 = vmatpush3.bf16.msra.mxu1 %v2345_v43  ;;  %2156 = vmatprep.subr.bf16.mxu0 %v2431_v51  ;;  %v2362_v43 = vld [vmem:[%s2973_s7 + $0x8] sm:$0xff]  }
  0x77   : > { %2164 = vmatprep.subr.bf16.mxu1 %v2431_v51 }
  0x78   : > { %1410 = vmatmul.mubr.bf16.vlgmr.msra.gmra.mxu0 %v1880_v46  ;;  %v1984_v46 = vld [vmem:[%s2970_s4] ss:$0 sm:$0xff] }
  0x79   : > { %1450 = vmatmul.mubr.bf16.vlgmr.msra.gmra.mxu1 %v1882_v48  ;;  %2157 = vmatpush3.bf16.msra.mxu0 %v2350_v50 }
  0x7a   : > { %2158 = vmatprep.subr.bf16.mxu0 %v2431_v51  ;;  %2160 = vmatprep.mubr.msk.bf16.mxu0 %vm2432_vm1, %v2431_v51 }
  0x7b   : > { %2172 = vmatprep.mubr.msk.bf16.mxu1 %vm2432_vm1, %v2431_v51  ;;  %2165 = vmatpush3.bf16.msra.mxu1 %v2353_v54  ;;  %v1990_v54 = vld [vmem:[%s2972_s6] ss:$0 sm:$0xff] }
  0x7c   : > { %2166 = vmatprep.subr.bf16.mxu1 %v2431_v51 }
  0x7d   : > { %2159 = vmatpush3.bf16.msra.mxu0 %v2351_v52 }
  0x7e   : > { %2176 = vmatprep.subr.bf16.mxu0 %v2431_v51 }
  0x7f   : > { %2167 = vmatpush3.bf16.msra.mxu1 %v2354_v55  ;;  %v1996_v55 = vld [vmem:[%s2974_s8] ss:$0 sm:$0xff] }
  0x80   : > { %2161 = vmatmul.mubr.msk.bf16.vlgmr.msra.gmra.mxu0 %vm1213_vm0, %v2352_v53  ;;  %2168 = vmatprep.subr.bf16.mxu1 %v2431_v51 }
  0x81   : > { %2184 = vmatprep.mubr.msk.bf16.mxu0 %vm2432_vm1, %v2431_v51  ;;  %2177 = vmatpush3.bf16.msra.mxu0 %v2357_v58 }
  0x82   : > { %2178 = vmatprep.subr.bf16.mxu0 %v2431_v51 }
  0x83   : > { %2169 = vmatpush3.bf16.msra.mxu1 %v2355_v56 }
  0x84   : > { %2170 = vmatprep.subr.bf16.mxu1 %v2431_v51 }
  0x85   : > { %2179 = vmatpush3.bf16.msra.mxu0 %v2359_v59 }
  0x86   : > { %2180 = vmatprep.subr.bf16.mxu0 %v2431_v51 }
  0x87   : > { %2171 = vmatpush3.bf16.msra.mxu1 %v2356_v57 }
  0x88   : > { %2188 = vmatprep.subr.bf16.mxu1 %v2431_v51 }
  0x89   : > { %2181 = vmatpush3.bf16.msra.mxu0 %v2361_v42 }
  0x8a   : > { %2182 = vmatprep.subr.bf16.mxu0 %v2431_v51 }
  0x8d   : > { %2183 = vmatpush3.bf16.msra.mxu0 %v2363_v44 }
  0xf8   : > { %v2022_v60 = vpop.f32.mrf.mxu0 }
  0xf9   : > { %v2044_v61 = vpop.f32.mrf.mxu1 }
  0xfa   : > { %v2023_v62 = vpop.f32.mrf.mxu0 }
  0xfb   : > { %v2045_v63 = vpop.f32.mrf.mxu1  ;;  %v2024_v12 = vadd.f32 %v2023_v62, %v2022_v60 }
  0xfc   : > { %v2025_v0 = vpop.f32.mrf.mxu0  ;;  %v2046_v15 = vadd.f32 %v2045_v63, %v2044_v61 }
  0xfd   : > { %v2047_v1 = vpop.f32.mrf.mxu1  ;;  %v1252_v14 = vadd.f32 %v2024_v12, %v1871_v13 }
  0xfe   : > { %v2026_v2 = vpop.f32.mrf.mxu0 }
  0xff   : > { %v2048_v3 = vpop.f32.mrf.mxu1  ;;  %v1292_v17 = vadd.f32 %v2046_v15, %v1252_v14 }
 0x118   : > { %v2066_v4 = vpop.f32.mrf.mxu0 }
 0x119   : > { %v2088_v5 = vpop.f32.mrf.mxu1 }
 0x11a   : > { %v2067_v6 = vpop.f32.mrf.mxu0 }
 0x11b   : > { %v2089_v7 = vpop.f32.mrf.mxu1  ;;  %v2068_v16 = vadd.f32 %v2067_v6, %v2066_v4 }
 0x11c   : > { %v2069_v8 = vpop.f32.mrf.mxu0  ;;  %v2090_v19 = vadd.f32 %v2089_v7, %v2088_v5 }
 0x11d   : > { %v2091_v9 = vpop.f32.mrf.mxu1  ;;  %v1332_v18 = vadd.f32 %v2068_v16, %v1292_v17 }
 0x11e   : > { %v2070_v10 = vpop.f32.mrf.mxu0 }
 0x11f   : > { %v2092_v11 = vpop.f32.mrf.mxu1  ;;  %v1372_v23 = vadd.f32 %v2090_v19, %v1332_v18 }
 0x138   : > { %v2110_v20 = vpop.f32.mrf.mxu0 }
 0x139   : > { %v2132_v21 = vpop.f32.mrf.mxu1 }
 0x13a   : > { %v2111_v22 = vpop.f32.mrf.mxu0 }
 0x13b   : > { %v2112_v24 = vadd.f32 %v2111_v22, %v2110_v20  ;;  %v2133_v25 = vpop.f32.mrf.mxu1 }
 0x13c   : > { %v2113_v26 = vpop.f32.mrf.mxu0  ;;  %v2134_v28 = vadd.f32 %v2133_v25, %v2132_v21 }
 0x13d   : > { %v1412_v27 = vadd.f32 %v2112_v24, %v1372_v23  ;;  %v2135_v29 = vpop.f32.mrf.mxu1 }
 0x13e   : > { %v2114_v30 = vpop.f32.mrf.mxu0 }
 0x13f   : > { %v2136_v31 = vpop.f32.mrf.mxu1  ;;  %v1452_v32 = vadd.f32 %v2134_v28, %v1412_v27 }
 0x140   : > { %v1491_v33 = vpop.f32.mrf.mxu0 }
 0x141   : > { %v1492_v34 = vadd.f32 %v1491_v33, %v1452_v32 }
 0x142   : > { %v2162_v35 = vpop.f32.mrf.mxu0 }
 0x143   : > { %v1497_v36 = vmax.f32 %v1492_v34, 0.0 }
 0x144   : > { %v1494_v37 = vpop.f32.mrf.mxu0 }
 0x145   : > { %v1498_v39 = vpack.c.bf16 %v1497_v36, %v1497_v36 }
 0x146   : > { %v2163_v40 = vpop.f32.mrf.mxu0 }
 0x147   : > { %2173 = vmatmul.mubr.msk.bf16.vlgmr.msra.gmra.mxu1 %vm1538_vm2, %v1498_v39 }
 0x148   : > { %2189 = vmatpush3.bf16.msra.mxu1 %v2358_v38  ;;  %2196 = vmatprep.mubr.msk.bf16.mxu1 %vm2432_vm1, %v2431_v51 }
 0x149   : > { %2190 = vmatprep.subr.bf16.mxu1 %v2431_v51 }
 0x14c   : > { %2191 = vmatpush3.bf16.msra.mxu1 %v2360_v41 }
 0x14d   : > { %2192 = vmatprep.subr.bf16.mxu1 %v2431_v51 }
 0x150   : > { %2193 = vmatpush3.bf16.msra.mxu1 %v2362_v43 }
 0x151   : > { %2194 = vmatprep.subr.bf16.mxu1 %v2431_v51 }
 0x154   : > { %2195 = vmatpush3.bf16.msra.mxu1 %v2364_v45 }
 0x207   : > { %v1576_v47 = vpop.f32.mrf.mxu1 }
 0x208   : > { %v1577_v48 = vadd.f32 %v1984_v46, %v1576_v47 }
 0x209   : > { %v2174_v49 = vpop.f32.mrf.mxu1 }
 0x20a   : > { %v1582_v50 = vmax.f32 %v1577_v48, 0.0 }
 0x20b   : > { %v1579_v51 = vpop.f32.mrf.mxu1 }
 0x20c   : > { %v1583_v52 = vpack.c.bf16 %v1582_v50, %v1582_v50 }
 0x20d   : > { %v2175_v53 = vpop.f32.mrf.mxu1 }
 0x20e   : > { %2185 = vmatmul.mubr.msk.bf16.vlgmr.msra.gmra.mxu0 %vm1538_vm2, %v1583_v52  ;;  %2197 = vmatmul.mubr.msk.bf16.vlgmr.msra.gmra.mxu1 %vm1538_vm2, %v1583_v52 }
 0x2ce   : > { %v1660_v56 = vpop.f32.mrf.mxu0  ;;  %v1739_v57 = vpop.f32.mrf.mxu1 }
 0x2cf   : > { %v1661_v58 = vadd.f32 %v1990_v54, %v1660_v56  ;;  %v1740_v59 = vadd.f32 %v1996_v55, %v1739_v57 }
 0x2d0   : > { %v2186_v60 = vpop.f32.mrf.mxu0  ;;  %v2198_v61 = vpop.f32.mrf.mxu1 }
 0x2d1   : > { %v1748_v62 = vsel %vm1747_vm3, %v1661_v58, -inf  ;;  %1746 = vst.msk [vmem:[%s359_s11] sm:$0xff] %vm1745_vm4, %v1740_v59 }
 0x2d2   : > { %1749 = vmax.xlane.f32.xlu0 %v1748_v62  ;;  %v1663_v63 = vpop.f32.mrf.mxu0  ;;  %v1742_v0 = vpop.f32.mrf.mxu1 }
 0x2d4   : > { %v2187_v1 = vpop.f32.mrf.mxu0  ;;  %v2199_v2 = vpop.f32.mrf.mxu1 }
 0x35b   : > { %v1750_v3 = vpop.xlane.xlu0 %1749 }
 0x35c   : > { %v1751_v4 = vsub.f32 %v1661_v58, %v1750_v3 }
 0x35e   : > { %v1752_v5 = vmul.f32 1.442695, %v1751_v4 }
 0x360   : > { %2365 = vpow2.f32 %v1752_v5 }
 0x36d   : > { %v2366_v6 = vpop.eup %2365 }
 0x36e   : > { %v1754_v7 = vsel %vm1747_vm3, %v2366_v6, 0.0 }
 0x36f   : > { %1755 = vadd.xlane.f32.xlu0 %v1754_v7 }
 0x370   : > { %2382 = shalt.err (!%p2379_p3)
}
 0x371   : > { %s2383_s17 = scalar_lea.hbm %s1779_s28, 128  ;;  %s2387_s12 = scalar_lea.hbm %s2976_s10, 256 }
 0x372   : > { %p2384_p4 = scmp.ne.s32.totalorder %s1779_s28, %s2383_s17  ;;  %p2388_p9 = scmp.lt.s32.totalorder %s1779_s28, %s2976_s10 }
 0x373   : > { %p2389_p10 = scmp.lt.s32.totalorder %s2387_s12, %s2383_s17 }
 0x374   : > { %p2385_p7 = pnand %p2384_p4, %p2527_p5 }
 0x375   : > { %p2390_p11 = por %p2389_p10, %p2388_p9 }
 0x376   : > { %p2386_p8 = pneg %p2385_p7 }
 0x378   : > { %p2391_p12 = pnand %p2390_p11, %p2386_p8 }
 0x37a   : > { %2394 = shalt.err (!%p2391_p12)
}
 0x37b   : > { %2201 = dma.vmem_to_hbm [thread:$0]  (%p2527_p5), %s1782_s18, 128, %s1779_s28, %s1765_s29  }
 0x37c   : > { %s1870_s0 = sshll.u32 %s2605_s25, 3 }
 0x37d   : > { %s368_s30 = scalar_lea.vmem %s2975_s9, %s1870_s0 }
 0x3f8   : > { %v1756_v8 = vpop.xlane.xlu0 %1755 }
 0x3f9   : > { %2367 = vrcp.f32 %v1756_v8 }
 0x406   : > { %v2368_v9 = vpop.eup %2367 }
 0x407   : > { %v1758_v10 = vmul.f32 %v2368_v9, %v2366_v6 }
 0x409   : > { %1759 = vst.msk [vmem:[%s368_s30] sm:$0xff] %vm1747_vm3, %v1758_v10 }
 0x40a PF: > { %p2207_p13 = scmp.ge.s32.totalorder %s2429_s16, 2  ;;  %s1800_s17 = sand.u32 1, %s2417_s13  }
 0x40b   : > { %s1801_s23 = scalar_lea.sflag [#allocation3], %s1800_s17 }
 0x40c   : > { %p2204_p0 = pnand %p2207_p13, %p2531_p6 }
 0x40e   : > { %p2205_p5 = pneg %p2204_p0 }
 0x410   : > { %2412 = dma.done.wait (%p2205_p5), %s1801_s23, 128  }
 0x411   : > { %2414 = vsyncadd (%p2205_p5), %s1801_s23, 4294967168  ;;  %s2982_s25 = sld [smem:[#allocation5_spill]]  ;;  %p21_p1 = scmp.ge.s32.totalorder %s2514_s19, 4  }
 0x412   : > { %s2983_s13 = smov %s2421_s14  ;;  %s2984_s14 = smov %s2425_s15 }
 0x413   : > { %s2986_s16 = smov %s2514_s19  ;;  %23 = sbr.rel (!%p21_p1) target bundleno = 5 (0x5), region = 103 }
 0x417   : > { %s2985_s15 = smov %s2982_s25 }
 0x418   :  { %1806 = vsyncpa [#allocation3], 1 }
 0x419   :  { %1808 = vsyncpa [#allocation3 + $0x1], 1 }

</bundles_post_ra>
